<compile_context>
chip_gen: v7x
topology: tpu7x:2x2x1
jax: 0.10.0
libtpu: 0.0.40
codegen_flags: <defaults>
</compile_context>

<pallas_src>
import math
from functools import partial

import jax
import jax.numpy as jnp
from jax.experimental import pallas as pl
from jax.experimental.pallas import tpu as pltpu

BN_EPS = 1e-5
LANE = 128                    # channel dims are zero-padded to a multiple of this
TM_ROWS = 1024                # row tile for the 1x1-conv matmul kernels
ACT_DTYPE = jnp.bfloat16      # inter-kernel activation / matmul-weight dtype

# Sized for v5e/v6e (128 MiB physical VMEM).  At real resolutions on v7x (64 MiB)
# lower this and strip-tile the per-image kernels over H.
VMEM_LIMIT = 64 * 1024 * 1024

_CPARAMS_PAR = pltpu.CompilerParams(
    dimension_semantics=("parallel",), vmem_limit_bytes=VMEM_LIMIT)
_CPARAMS_FLAT = pltpu.CompilerParams(vmem_limit_bytes=VMEM_LIMIT)


# ----------------------------- small helpers -----------------------------

def _ceil_to(v, m):
    return ((v + m - 1) // m) * m


def _pad_axis(a, axis, size):
    if a.shape[axis] == size:
        return a
    widths = [(0, 0)] * a.ndim
    widths[axis] = (0, size - a.shape[axis])
    return jnp.pad(a, widths)


def _pad2(a, rows, cols):
    return _pad_axis(_pad_axis(a, 0, rows), 1, cols)


def _pad_and_phase(x, K, stride):
    """Zero-pad x:(N,H,W,C) spatially; for stride>1 re-layout into stride*stride
    phase slabs concatenated along H so every conv tap is a unit-stride window
    inside the kernel (total size ~1x input, vs K*K for im2col).
    Returns (xin, Ho, Wo, Hps, Wps)."""
    N, H, W, C = x.shape
    p = (K - 1) // 2
    Ho = (H + 2 * p - K) // stride + 1
    Wo = (W + 2 * p - K) // stride + 1
    if stride == 1:
        xin = jnp.pad(x, ((0, 0), (p, p), (p, p), (0, 0)))
        return xin, Ho, Wo, H + 2 * p, W + 2 * p
    Hps = Ho + (K - 1) // stride
    Wps = Wo + (K - 1) // stride
    eh = max(0, stride * Hps - (H + 2 * p))
    ew = max(0, stride * Wps - (W + 2 * p))
    xp = jnp.pad(x, ((0, 0), (p, p + eh), (p, p + ew), (0, 0)))
    phases = [xp[:, ph:ph + stride * Hps:stride, pw:pw + stride * Wps:stride, :]
              for ph in range(stride) for pw in range(stride)]
    xin = jnp.concatenate(phases, axis=1)       # (N, stride*stride*Hps, Wps, C)
    return xin, Ho, Wo, Hps, Wps
    # TODO(synk): handle the halo inside the kernel (H-strip index_map + masking)
    # to remove this wrapper-side HBM pre-pass entirely.


def _im2col(x, K, stride):
    """Tiny im2col used ONLY for the stem (Cin=3): (N,H,W,C) -> (N*Ho*Wo, K*K*C)."""
    N, H, W, C = x.shape
    p = (K - 1) // 2
    Ho = (H + 2 * p - K) // stride + 1
    Wo = (W + 2 * p - K) // stride + 1
    xp = jnp.pad(x, ((0, 0), (p, p), (p, p), (0, 0)))
    taps = [xp[:, kh:kh + stride * (Ho - 1) + 1:stride,
               kw:kw + stride * (Wo - 1) + 1:stride, :]
            for kh in range(K) for kw in range(K)]
    cols = jnp.concatenate(taps, axis=-1)        # (N, Ho, Wo, K*K*C)
    return cols.reshape(N * Ho * Wo, K * K * C), Ho, Wo


# ----------------------------- Pallas kernels -----------------------------

def _mm_bias_act_kernel(x_ref, w_ref, b_ref, o_ref, *, act):
    # (TM, Cin) @ (Cin, Cout) on the MXU (bf16 in, f32 acc) + folded-BN bias (+SiLU).
    y = jnp.dot(x_ref[...], w_ref[...], preferred_element_type=jnp.float32)
    y = y + b_ref[...]
    if act == "silu":
        y = y * jax.nn.sigmoid(y)
    o_ref[...] = y.astype(o_ref.dtype)


def _mbconv_tail_kernel(*refs, K, stride, Ho, Wo, Hps, has_res):
    """Fused MBConv tail for one image:
       depthwise KxK -> bias+SiLU -> SE (pool, fc1, SiLU, fc2, sigmoid) -> scale
       -> project 1x1 (MXU) -> bias (+residual)."""
    if has_res:
        (x_ref, dww_ref, dwb_ref, w1_ref, b1_ref, w2_ref, b2_ref,
         pw_ref, pb_ref, res_ref, o_ref) = refs
    else:
        (x_ref, dww_ref, dwb_ref, w1_ref, b1_ref, w2_ref, b2_ref,
         pw_ref, pb_ref, o_ref) = refs
        res_ref = None
    C = dwb_ref.shape[-1]

    # Depthwise KxK: f32 VPU MACs over unit-stride tap windows of the
    # phase-decomposed padded input.
    acc = jnp.zeros((Ho, Wo, C), jnp.float32)
    for kh in range(K):
        for kw in range(K):
            ph = (kh % stride) * stride + (kw % stride)
            oh, ow = kh // stride, kw // stride
            r0 = ph * Hps + oh
            # TODO(synk): replace the sublane-offset W slice with pltpu.roll over
            # the full padded width to avoid a per-tap relayout copy.
            tap = x_ref[0, r0:r0 + Ho, ow:ow + Wo, :].astype(jnp.float32)
            acc = acc + tap * dww_ref[kh * K + kw]
    y = acc + dwb_ref[...]
    y = y * jax.nn.sigmoid(y)                               # SiLU, f32
    yr = y.reshape(Ho * Wo, C)

    # SqueezeExcitation (bf16 MXU matmuls, f32 epilogue).
    m = jnp.sum(yr, axis=0, keepdims=True) * (1.0 / (Ho * Wo))         # (1, C)
    s1 = jnp.dot(m.astype(jnp.bfloat16), w1_ref[...],
                 preferred_element_type=jnp.float32) + b1_ref[...]
    s1 = s1 * jax.nn.sigmoid(s1)
    gate = jax.nn.sigmoid(jnp.dot(s1.astype(jnp.bfloat16), w2_ref[...],
                                  preferred_element_type=jnp.float32) + b2_ref[...])
    yg = (yr * gate).astype(jnp.bfloat16)                   # (HoWo, C) bf16

    # Project 1x1 conv (MXU) + folded-BN bias (+ residual).
    out = jnp.dot(yg, pw_ref[...], preferred_element_type=jnp.float32) + pb_ref[...]
    if has_res:
        out = out + res_ref[0].astype(jnp.float32)
    o_ref[0] = out.astype(o_ref.dtype)


def _lastconv_pool_kernel(x_ref, w_ref, b_ref, o_ref):
    # Last 1x1 conv + SiLU + AdaptiveAvgPool2d(1), one image per grid step.
    y = jnp.dot(x_ref[0], w_ref[...], preferred_element_type=jnp.float32) + b_ref[...]
    y = y * jax.nn.sigmoid(y)
    o_ref[0] = (jnp.sum(y, axis=0, keepdims=True) * (1.0 / y.shape[0])).astype(o_ref.dtype)


def _fc_kernel(x_ref, w_ref, b_ref, o_ref):
    # One batched (N, C) @ (C, NCpad) classifier matmul.
    o_ref[...] = jnp.dot(x_ref[...], w_ref[...],
                         preferred_element_type=jnp.float32) + b_ref[...]


# ----------------------------- kernel wrappers -----------------------------

def _conv1x1(x_rows, w, b, act):
    """x_rows: (M, Cin) bf16; w: (Cin, Cout) bf16 (BN scale folded); b: (1, Cout) f32."""
    M, Cin = x_rows.shape
    Cout = w.shape[1]
    tm = M if M <= TM_ROWS else TM_ROWS
    grid = (pl.cdiv(M, tm),)
    return pl.pallas_call(
        partial(_mm_bias_act_kernel, act=act),
        out_shape=jax.ShapeDtypeStruct((M, Cout), ACT_DTYPE),
        grid=grid,
        in_specs=[pl.BlockSpec((tm, Cin), lambda i: (i, 0)),
                  pl.BlockSpec((Cin, Cout), lambda i: (0, 0)),
                  pl.BlockSpec((1, Cout), lambda i: (0, 0))],
        out_specs=pl.BlockSpec((tm, Cout), lambda i: (i, 0)),
        compiler_params=_CPARAMS_PAR,
    )(x_rows, w, b)


def stem_conv_bn_silu(x, w, b, K, stride):
    """Stem KxK conv as ONE MXU matmul: wrapper im2col (Cin=3 so blow-up is tiny),
    contraction dim = K*K*Cin.  x: (N,H,W,Cin) bf16; w: (K*K*Cin, Cout_pad) bf16."""
    N = x.shape[0]
    cols, Ho, Wo = _im2col(x, K, stride)
    out = _conv1x1(cols, w, b, act="silu")
    return out.reshape(N, Ho, Wo, -1)


def mbconv_tail(y, p, m, res_rows):
    """Fused depthwise + SE + project (+ residual) for a whole MBConv tail.
    y: (N,H,W,Cexp) bf16 expanded activation; res_rows: (N, Ho*Wo, Cout) bf16 or None."""
    N = y.shape[0]
    Cexp = y.shape[-1]
    K, stride = m["kernel"], m["stride"]
    yin, Ho, Wo, Hps, Wps = _pad_and_phase(y, K, stride)
    Hin = yin.shape[1]
    d, s, pr = p["dw"], p["se"], p["project"]
    Sq = s["w1"].shape[1]
    Cout = pr["w"].shape[1]
    has_res = res_rows is not None

    kern = partial(_mbconv_tail_kernel, K=K, stride=stride, Ho=Ho, Wo=Wo, Hps=Hps,
                   has_res=has_res)
    in_specs = [
        pl.BlockSpec((1, Hin, Wps, Cexp), lambda n: (n, 0, 0, 0)),
        pl.BlockSpec((K * K, 1, Cexp), lambda n: (0, 0, 0)),
        pl.BlockSpec((1, Cexp), lambda n: (0, 0)),
        pl.BlockSpec((Cexp, Sq), lambda n: (0, 0)),
        pl.BlockSpec((1, Sq), lambda n: (0, 0)),
        pl.BlockSpec((Sq, Cexp), lambda n: (0, 0)),
        pl.BlockSpec((1, Cexp), lambda n: (0, 0)),
        pl.BlockSpec((Cexp, Cout), lambda n: (0, 0)),
        pl.BlockSpec((1, Cout), lambda n: (0, 0)),
    ]
    args = [yin, d["w"], d["b"], s["w1"], s["b1"], s["w2"], s["b2"], pr["w"], pr["b"]]
    if has_res:
        in_specs.append(pl.BlockSpec((1, Ho * Wo, Cout), lambda n: (n, 0, 0)))
        args.append(res_rows)

    out = pl.pallas_call(
        kern,
        out_shape=jax.ShapeDtypeStruct((N, Ho * Wo, Cout), ACT_DTYPE),
        grid=(N,),
        in_specs=in_specs,
        out_specs=pl.BlockSpec((1, Ho * Wo, Cout), lambda n: (n, 0, 0)),
        compiler_params=_CPARAMS_PAR,
    )(*args)
    return out.reshape(N, Ho, Wo, Cout)


def classifier_head(x, lw, lb, fw, fb):
    """Fused tail of the network: per-image {last 1x1 conv + SiLU + global avg pool},
    then one batched classifier matmul.  x: (N,H,W,Cin) bf16."""
    N, H, W, Cin = x.shape
    Cl = lw.shape[1]
    NC = fw.shape[1]
    x3 = x.reshape(N, H * W, Cin)
    pooled = pl.pallas_call(
        _lastconv_pool_kernel,
        out_shape=jax.ShapeDtypeStruct((N, 1, Cl), ACT_DTYPE),
        grid=(N,),
        in_specs=[pl.BlockSpec((1, H * W, Cin), lambda n: (n, 0, 0)),
                  pl.BlockSpec((Cin, Cl), lambda n: (0, 0)),
                  pl.BlockSpec((1, Cl), lambda n: (0, 0))],
        out_specs=pl.BlockSpec((1, 1, Cl), lambda n: (n, 0, 0)),
        compiler_params=_CPARAMS_PAR,
    )(x3, lw, lb)
    pooled = pooled.reshape(N, Cl)
    # TODO(synk): Dropout before the Linear is identity in inference mode.
    logits = pl.pallas_call(
        _fc_kernel,
        out_shape=jax.ShapeDtypeStruct((N, NC), jnp.float32),
        compiler_params=_CPARAMS_FLAT,
    )(pooled, fw, fb)
    return logits


# ----------------------------- model definition -----------------------------

def _make_divisible(v, divisor=8, min_value=None):
    if min_value is None:
        min_value = divisor
    new_v = max(min_value, int(v + divisor / 2) // divisor * divisor)
    if new_v < 0.9 * v:
        new_v += divisor
    return new_v


def _kaiming_fan_out(key, cout, cin_per_group, k, groups=1):
    fan_out = cout * k * k // groups
    std = math.sqrt(2.0 / fan_out)
    return jax.random.normal(key, (cout, cin_per_group, k, k), jnp.float32) * std


_BN_SCALE = 1.0 / math.sqrt(1.0 + BN_EPS)   # eval-mode BN: gamma=1, mean=0, var=1


def _prep_conv1x1(w, cin_pad, cout_pad):
    # (Cout, Cin, 1, 1) -> (Cin_pad, Cout_pad) bf16 with BN scale folded; zero bias.
    cout, cin = w.shape[0], w.shape[1]
    w2 = _pad2(w.reshape(cout, cin).T * _BN_SCALE, cin_pad, cout_pad)
    return w2.astype(ACT_DTYPE), jnp.zeros((1, cout_pad), jnp.float32)


def _prep_conv_kxk_im2col(w, cout_pad):
    # (Cout, Cin, K, K) -> (K*K*Cin, Cout_pad) bf16 with BN scale folded; zero bias.
    cout, cin, K, _ = w.shape
    wt = jnp.transpose(w, (2, 3, 1, 0)).reshape(K * K * cin, cout) * _BN_SCALE
    wt = _pad_axis(wt, 1, cout_pad)
    return wt.astype(ACT_DTYPE), jnp.zeros((1, cout_pad), jnp.float32)


def _prep_dw(w, c_pad):
    # (C, 1, K, K) -> (K*K, 1, C_pad) f32 with BN scale folded; zero bias.
    c, _, K, _ = w.shape
    wt = (w.reshape(c, K * K).T * _BN_SCALE).reshape(K * K, 1, c)
    wt = _pad_axis(wt, 2, c_pad)
    return wt.astype(jnp.float32), jnp.zeros((1, c_pad), jnp.float32)


def init_model(key, input_dim=3, num_classes=10, width_mult=1.0, depth_mult=1.0):
    # inverted_residual_setting (small, consistent with MBConvConfig semantics)
    raw = [
        dict(expand_ratio=1, kernel=3, stride=1, in_ch=16, out_ch=16, layers=1),
        dict(expand_ratio=4, kernel=3, stride=2, in_ch=16, out_ch=24, layers=1),
    ]
    cfgs = []
    for r in raw:
        cfgs.append(dict(
            expand_ratio=r["expand_ratio"], kernel=r["kernel"], stride=r["stride"],
            in_ch=_make_divisible(r["in_ch"] * width_mult, 8),
            out_ch=_make_divisible(r["out_ch"] * width_mult, 8),
            layers=int(math.ceil(r["layers"] * depth_mult))))

    keys = iter(jax.random.split(key, 64))
    params, meta = {}, {}

    stem_out = cfgs[0]["in_ch"]
    sw = _kaiming_fan_out(next(keys), stem_out, input_dim, 3)
    w_stem, b_stem = _prep_conv_kxk_im2col(sw, _ceil_to(stem_out, LANE))
    params["stem"] = dict(w=w_stem, b=b_stem)
    meta["stem"] = dict(kernel=3, stride=2)

    blocks_p, blocks_m = [], []
    for cnf in cfgs:
        for li in range(cnf["layers"]):
            in_ch = cnf["in_ch"] if li == 0 else cnf["out_ch"]
            stride = cnf["stride"] if li == 0 else 1
            out_ch = cnf["out_ch"]
            k = cnf["kernel"]
            exp_ch = _make_divisible(in_ch * cnf["expand_ratio"], 8)
            in_pad = _ceil_to(in_ch, LANE)
            exp_pad = _ceil_to(exp_ch, LANE)
            out_pad = _ceil_to(out_ch, LANE)
            bp = {}
            bm = dict(kernel=k, stride=stride,
                      use_res=(stride == 1 and in_ch == out_ch),
                      has_expand=(exp_ch != in_ch))
            if exp_ch != in_ch:
                ew = _kaiming_fan_out(next(keys), exp_ch, in_ch, 1)
                w2, b2 = _prep_conv1x1(ew, in_pad, exp_pad)
                bp["expand"] = dict(w=w2, b=b2)
            dw = _kaiming_fan_out(next(keys), exp_ch, 1, k, groups=exp_ch)
            wd, bd = _prep_dw(dw, exp_pad)
            bp["dw"] = dict(w=wd, b=bd)
            sq_ch = max(1, in_ch // 4)
            sq_pad = _ceil_to(sq_ch, LANE)
            f1 = _kaiming_fan_out(next(keys), sq_ch, exp_ch, 1)    # (Sq, C, 1, 1)
            f2 = _kaiming_fan_out(next(keys), exp_ch, sq_ch, 1)    # (C, Sq, 1, 1)
            bp["se"] = dict(
                w1=_pad2(f1.reshape(sq_ch, exp_ch).T, exp_pad, sq_pad).astype(ACT_DTYPE),
                b1=jnp.zeros((1, sq_pad), jnp.float32),
                w2=_pad2(f2.reshape(exp_ch, sq_ch).T, sq_pad, exp_pad).astype(ACT_DTYPE),
                b2=jnp.zeros((1, exp_pad), jnp.float32))
            pw = _kaiming_fan_out(next(keys), out_ch, exp_ch, 1)
            w2, b2 = _prep_conv1x1(pw, exp_pad, out_pad)
            bp["project"] = dict(w=w2, b=b2)
            blocks_p.append(bp)
            blocks_m.append(bm)
    params["blocks"] = blocks_p
    meta["blocks"] = blocks_m

    last_in = cfgs[-1]["out_ch"]
    last_out = 4 * last_in
    lw = _kaiming_fan_out(next(keys), last_out, last_in, 1)
    w2, b2 = _prep_conv1x1(lw, _ceil_to(last_in, LANE), _ceil_to(last_out, LANE))
    params["last"] = dict(w=w2, b=b2)

    nc_pad = _ceil_to(num_classes, LANE)
    r = 1.0 / math.sqrt(num_classes)
    fc_w = jax.random.uniform(next(keys), (num_classes, last_out), jnp.float32, -r, r)
    params["fc"] = dict(
        w=_pad2(fc_w.T, _ceil_to(last_out, LANE), nc_pad).astype(ACT_DTYPE),
        b=jnp.zeros((1, nc_pad), jnp.float32))
    meta["num_classes"] = num_classes
    return params, meta


def mbconv_forward(x, p, m):
    N, H, W, C = x.shape
    res_rows = x.reshape(N, H * W, C) if m["use_res"] else None
    y = x
    if m["has_expand"]:
        e = p["expand"]
        y = _conv1x1(x.reshape(N * H * W, C), e["w"], e["b"], act="silu")
        y = y.reshape(N, H, W, -1)
    # TODO(synk): StochasticDepth is train-time randomness; identity in eval.
    return mbconv_tail(y, p, m, res_rows)


def efficientnet_forward(params, meta, x_nchw):
    x = jnp.transpose(x_nchw, (0, 2, 3, 1)).astype(ACT_DTYPE)   # NCHW -> NHWC bf16
    st, sm = params["stem"], meta["stem"]
    x = stem_conv_bn_silu(x, st["w"], st["b"], sm["kernel"], sm["stride"])
    for bp, bm in zip(params["blocks"], meta["blocks"]):
        x = mbconv_forward(x, bp, bm)
    logits = classifier_head(x, params["last"]["w"], params["last"]["b"],
                             params["fc"]["w"], params["fc"]["b"])
    return logits[:, :meta["num_classes"]]


if __name__ == "__main__":
    key = jax.random.PRNGKey(0)
    pkey, xkey = jax.random.split(key)
    params, meta = init_model(pkey, input_dim=3, num_classes=10)
    x = jax.random.normal(xkey, (2, 3, 16, 16), jnp.float32)  # NCHW like PyTorch
    fwd = jax.jit(lambda p, xx: efficientnet_forward(p, meta, xx))
    logits = fwd(params, x)
    jax.block_until_ready(logits)
    assert logits.shape == (2, 10), logits.shape
    assert bool(jnp.all(jnp.isfinite(logits)))
    print("KERNEL_OK")
</pallas_src>

<mosaic_0001>
module attributes {stable_mosaic.version = 11 : i64} {
  func.func @_mm_bias_act_kernel(%arg0: i32, %arg1: memref<128x27xbf16, #tpu.memory_space<vmem>>, %arg2: memref<27x128xbf16, #tpu.memory_space<vmem>>, %arg3: memref<1x128xf32, #tpu.memory_space<vmem>>, %arg4: memref<128x128xbf16, #tpu.memory_space<vmem>>) attributes {dimension_semantics = [#tpu.dimension_semantics<parallel>], iteration_bounds = array<i64: 1>, scalar_prefetch = 0 : i64, scratch_operands = 0 : i64, tpu.core_type = #tpu.core_type<tc>, window_params = [{transform_indices = @transform_0, window_bounds = array<i64: 128, 27>}, {pipeline_mode = #tpu.pipeline_mode<synchronous>, transform_indices = @transform_1, window_bounds = array<i64: 27, 128>}, {pipeline_mode = #tpu.pipeline_mode<synchronous>, transform_indices = @transform_2, window_bounds = array<i64: 1, 128>}, {transform_indices = @transform_3, window_bounds = array<i64: 128, 128>}]} {
    %c0 = arith.constant 0 : index
    %c0_0 = arith.constant 0 : index
    %0 = vector.load %arg1[%c0, %c0_0] : memref<128x27xbf16, #tpu.memory_space<vmem>>, vector<128x27xbf16>
    %c0_1 = arith.constant 0 : index
    %c0_2 = arith.constant 0 : index
    %1 = vector.load %arg2[%c0_1, %c0_2] : memref<27x128xbf16, #tpu.memory_space<vmem>>, vector<27x128xbf16>
    %cst = arith.constant dense<0.000000e+00> : vector<128x128xf32>
    %2 = tpu.matmul %0, %1, %cst {dimension_numbers = #tpu.dot_dimension_numbers<[1], [0], [0], [1], [0, 0, 1, 1], [], []>} : vector<128x27xbf16>, vector<27x128xbf16>, vector<128x128xf32> -> vector<128x128xf32>
    %c0_3 = arith.constant 0 : index
    %c0_4 = arith.constant 0 : index
    %3 = vector.load %arg3[%c0_3, %c0_4] : memref<1x128xf32, #tpu.memory_space<vmem>>, vector<1x128xf32>
    %4 = vector.broadcast %3 : vector<1x128xf32> to vector<128x128xf32>
    %5 = arith.addf %2, %4 : vector<128x128xf32>
    %6 = arith.negf %5 : vector<128x128xf32>
    %7 = math.exp %6 : vector<128x128xf32>
    %cst_5 = arith.constant 1.000000e+00 : f32
    %8 = vector.broadcast %cst_5 : f32 to vector<128x128xf32>
    %9 = arith.addf %8, %7 : vector<128x128xf32>
    %10 = arith.divf %8, %9 : vector<128x128xf32>
    %11 = arith.mulf %5, %10 : vector<128x128xf32>
    %12 = arith.truncf %11 : vector<128x128xf32> to vector<128x128xbf16>
    %c0_6 = arith.constant 0 : index
    %c0_7 = arith.constant 0 : index
    %13 = vector.load %arg4[%c0_6, %c0_7] : memref<128x128xbf16, #tpu.memory_space<vmem>>, vector<128x128xbf16>
    tpu.vector_store %arg4[%c0_6, %c0_7], %12 {strides = array<i32>} : memref<128x128xbf16, #tpu.memory_space<vmem>>, vector<128x128xbf16>,
    return
  }
  func.func @transform_0(%arg0: i32) -> (i32, i32) {
    %c0_i32 = arith.constant 0 : i32
    %c0_i32_0 = arith.constant 0 : i32
    return %arg0, %c0_i32 : i32, i32
  }
  func.func @transform_1(%arg0: i32) -> (i32, i32) {
    %c0_i32 = arith.constant 0 : i32
    %c0_i32_0 = arith.constant 0 : i32
    %c0_i32_1 = arith.constant 0 : i32
    return %c0_i32, %c0_i32_0 : i32, i32
  }
  func.func @transform_2(%arg0: i32) -> (i32, i32) {
    %c0_i32 = arith.constant 0 : i32
    %c0_i32_0 = arith.constant 0 : i32
    %c0_i32_1 = arith.constant 0 : i32
    return %c0_i32, %c0_i32_0 : i32, i32
  }
  func.func @transform_3(%arg0: i32) -> (i32, i32) {
    %c0_i32 = arith.constant 0 : i32
    %c0_i32_0 = arith.constant 0 : i32
    return %arg0, %c0_i32 : i32, i32
  }
}

module attributes {stable_mosaic.version = 11 : i64} {
  func.func @_mbconv_tail_kernel(%arg0: i32, %arg1: memref<1x10x10x128xbf16, #tpu.memory_space<vmem>>, %arg2: memref<9x1x128xf32, #tpu.memory_space<vmem>>, %arg3: memref<1x128xf32, #tpu.memory_space<vmem>>, %arg4: memref<128x128xbf16, #tpu.memory_space<vmem>>, %arg5: memref<1x128xf32, #tpu.memory_space<vmem>>, %arg6: memref<128x128xbf16, #tpu.memory_space<vmem>>, %arg7: memref<1x128xf32, #tpu.memory_space<vmem>>, %arg8: memref<128x128xbf16, #tpu.memory_space<vmem>>, %arg9: memref<1x128xf32, #tpu.memory_space<vmem>>, %arg10: memref<1x64x128xbf16, #tpu.memory_space<vmem>>, %arg11: memref<1x64x128xbf16, #tpu.memory_space<vmem>>) attributes {dimension_semantics = [#tpu.dimension_semantics<parallel>], iteration_bounds = array<i64: 2>, scalar_prefetch = 0 : i64, scratch_operands = 0 : i64, tpu.core_type = #tpu.core_type<tc>, window_params = [{transform_indices = @transform_0, window_bounds = array<i64: 1, 10, 10, 128>}, {pipeline_mode = #tpu.pipeline_mode<synchronous>, transform_indices = @transform_1, window_bounds = array<i64: 9, 1, 128>}, {pipeline_mode = #tpu.pipeline_mode<synchronous>, transform_indices = @transform_2, window_bounds = array<i64: 1, 128>}, {pipeline_mode = #tpu.pipeline_mode<synchronous>, transform_indices = @transform_3, window_bounds = array<i64: 128, 128>}, {pipeline_mode = #tpu.pipeline_mode<synchronous>, transform_indices = @transform_4, window_bounds = array<i64: 1, 128>}, {pipeline_mode = #tpu.pipeline_mode<synchronous>, transform_indices = @transform_5, window_bounds = array<i64: 128, 128>}, {pipeline_mode = #tpu.pipeline_mode<synchronous>, transform_indices = @transform_6, window_bounds = array<i64: 1, 128>}, {pipeline_mode = #tpu.pipeline_mode<synchronous>, transform_indices = @transform_7, window_bounds = array<i64: 128, 128>}, {pipeline_mode = #tpu.pipeline_mode<synchronous>, transform_indices = @transform_8, window_bounds = array<i64: 1, 128>}, {transform_indices = @transform_9, window_bounds = array<i64: 1, 64, 128>}, {transform_indices = @transform_10, window_bounds = array<i64: 1, 64, 128>}]} {
    %cst = arith.constant 0.000000e+00 : f32
    %0 = vector.broadcast %cst : f32 to vector<8x8x128xf32>
    %c0 = arith.constant 0 : index
    %c0_0 = arith.constant 0 : index
    %c0_1 = arith.constant 0 : index
    %c0_2 = arith.constant 0 : index
    %1 = vector.load %arg1[%c0, %c0_0, %c0_1, %c0_2] : memref<1x10x10x128xbf16, #tpu.memory_space<vmem>>, vector<1x8x8x128xbf16>
    %2 = vector.shape_cast %1 : vector<1x8x8x128xbf16> to vector<8x8x128xbf16>
    %3 = arith.extf %2 : vector<8x8x128xbf16> to vector<8x8x128xf32>
    %c0_3 = arith.constant 0 : index
    %c0_4 = arith.constant 0 : index
    %c0_5 = arith.constant 0 : index
    %4 = vector.load %arg2[%c0_3, %c0_4, %c0_5] : memref<9x1x128xf32, #tpu.memory_space<vmem>>, vector<1x1x128xf32>
    %5 = vector.shape_cast %4 : vector<1x1x128xf32> to vector<1x128xf32>
    %6 = vector.shape_cast %5 : vector<1x128xf32> to vector<1x1x128xf32>
    %7 = vector.broadcast %6 : vector<1x1x128xf32> to vector<8x8x128xf32>
    %8 = arith.mulf %3, %7 : vector<8x8x128xf32>
    %9 = arith.addf %0, %8 : vector<8x8x128xf32>
    %c0_6 = arith.constant 0 : index
    %c0_7 = arith.constant 0 : index
    %c1 = arith.constant 1 : index
    %c0_8 = arith.constant 0 : index
    %10 = vector.load %arg1[%c0_6, %c0_7, %c1, %c0_8] : memref<1x10x10x128xbf16, #tpu.memory_space<vmem>>, vector<1x8x8x128xbf16>
    %11 = vector.shape_cast %10 : vector<1x8x8x128xbf16> to vector<8x8x128xbf16>
    %12 = arith.extf %11 : vector<8x8x128xbf16> to vector<8x8x128xf32>
    %c1_9 = arith.constant 1 : index
    %c0_10 = arith.constant 0 : index
    %c0_11 = arith.constant 0 : index
    %13 = vector.load %arg2[%c1_9, %c0_10, %c0_11] : memref<9x1x128xf32, #tpu.memory_space<vmem>>, vector<1x1x128xf32>
    %14 = vector.shape_cast %13 : vector<1x1x128xf32> to vector<1x128xf32>
    %15 = vector.shape_cast %14 : vector<1x128xf32> to vector<1x1x128xf32>
    %16 = vector.broadcast %15 : vector<1x1x128xf32> to vector<8x8x128xf32>
    %17 = arith.mulf %12, %16 : vector<8x8x128xf32>
    %18 = arith.addf %9, %17 : vector<8x8x128xf32>
    %c0_12 = arith.constant 0 : index
    %c0_13 = arith.constant 0 : index
    %c2 = arith.constant 2 : index
    %c0_14 = arith.constant 0 : index
    %19 = vector.load %arg1[%c0_12, %c0_13, %c2, %c0_14] : memref<1x10x10x128xbf16, #tpu.memory_space<vmem>>, vector<1x8x8x128xbf16>
    %20 = vector.shape_cast %19 : vector<1x8x8x128xbf16> to vector<8x8x128xbf16>
    %21 = arith.extf %20 : vector<8x8x128xbf16> to vector<8x8x128xf32>
    %c2_15 = arith.constant 2 : index
    %c0_16 = arith.constant 0 : index
    %c0_17 = arith.constant 0 : index
    %22 = vector.load %arg2[%c2_15, %c0_16, %c0_17] : memref<9x1x128xf32, #tpu.memory_space<vmem>>, vector<1x1x128xf32>
    %23 = vector.shape_cast %22 : vector<1x1x128xf32> to vector<1x128xf32>
    %24 = vector.shape_cast %23 : vector<1x128xf32> to vector<1x1x128xf32>
    %25 = vector.broadcast %24 : vector<1x1x128xf32> to vector<8x8x128xf32>
    %26 = arith.mulf %21, %25 : vector<8x8x128xf32>
    %27 = arith.addf %18, %26 : vector<8x8x128xf32>
    %c0_18 = arith.constant 0 : index
    %c1_19 = arith.constant 1 : index
    %c0_20 = arith.constant 0 : index
    %c0_21 = arith.constant 0 : index
    %28 = vector.load %arg1[%c0_18, %c1_19, %c0_20, %c0_21] : memref<1x10x10x128xbf16, #tpu.memory_space<vmem>>, vector<1x8x8x128xbf16>
    %29 = vector.shape_cast %28 : vector<1x8x8x128xbf16> to vector<8x8x128xbf16>
    %30 = arith.extf %29 : vector<8x8x128xbf16> to vector<8x8x128xf32>
    %c3 = arith.constant 3 : index
    %c0_22 = arith.constant 0 : index
    %c0_23 = arith.constant 0 : index
    %31 = vector.load %arg2[%c3, %c0_22, %c0_23] : memref<9x1x128xf32, #tpu.memory_space<vmem>>, vector<1x1x128xf32>
    %32 = vector.shape_cast %31 : vector<1x1x128xf32> to vector<1x128xf32>
    %33 = vector.shape_cast %32 : vector<1x128xf32> to vector<1x1x128xf32>
    %34 = vector.broadcast %33 : vector<1x1x128xf32> to vector<8x8x128xf32>
    %35 = arith.mulf %30, %34 : vector<8x8x128xf32>
    %36 = arith.addf %27, %35 : vector<8x8x128xf32>
    %c0_24 = arith.constant 0 : index
    %c1_25 = arith.constant 1 : index
    %c1_26 = arith.constant 1 : index
    %c0_27 = arith.constant 0 : index
    %37 = vector.load %arg1[%c0_24, %c1_25, %c1_26, %c0_27] : memref<1x10x10x128xbf16, #tpu.memory_space<vmem>>, vector<1x8x8x128xbf16>
    %38 = vector.shape_cast %37 : vector<1x8x8x128xbf16> to vector<8x8x128xbf16>
    %39 = arith.extf %38 : vector<8x8x128xbf16> to vector<8x8x128xf32>
    %c4 = arith.constant 4 : index
    %c0_28 = arith.constant 0 : index
    %c0_29 = arith.constant 0 : index
    %40 = vector.load %arg2[%c4, %c0_28, %c0_29] : memref<9x1x128xf32, #tpu.memory_space<vmem>>, vector<1x1x128xf32>
    %41 = vector.shape_cast %40 : vector<1x1x128xf32> to vector<1x128xf32>
    %42 = vector.shape_cast %41 : vector<1x128xf32> to vector<1x1x128xf32>
    %43 = vector.broadcast %42 : vector<1x1x128xf32> to vector<8x8x128xf32>
    %44 = arith.mulf %39, %43 : vector<8x8x128xf32>
    %45 = arith.addf %36, %44 : vector<8x8x128xf32>
    %c0_30 = arith.constant 0 : index
    %c1_31 = arith.constant 1 : index
    %c2_32 = arith.constant 2 : index
    %c0_33 = arith.constant 0 : index
    %46 = vector.load %arg1[%c0_30, %c1_31, %c2_32, %c0_33] : memref<1x10x10x128xbf16, #tpu.memory_space<vmem>>, vector<1x8x8x128xbf16>
    %47 = vector.shape_cast %46 : vector<1x8x8x128xbf16> to vector<8x8x128xbf16>
    %48 = arith.extf %47 : vector<8x8x128xbf16> to vector<8x8x128xf32>
    %c5 = arith.constant 5 : index
    %c0_34 = arith.constant 0 : index
    %c0_35 = arith.constant 0 : index
    %49 = vector.load %arg2[%c5, %c0_34, %c0_35] : memref<9x1x128xf32, #tpu.memory_space<vmem>>, vector<1x1x128xf32>
    %50 = vector.shape_cast %49 : vector<1x1x128xf32> to vector<1x128xf32>
    %51 = vector.shape_cast %50 : vector<1x128xf32> to vector<1x1x128xf32>
    %52 = vector.broadcast %51 : vector<1x1x128xf32> to vector<8x8x128xf32>
    %53 = arith.mulf %48, %52 : vector<8x8x128xf32>
    %54 = arith.addf %45, %53 : vector<8x8x128xf32>
    %c0_36 = arith.constant 0 : index
    %c2_37 = arith.constant 2 : index
    %c0_38 = arith.constant 0 : index
    %c0_39 = arith.constant 0 : index
    %55 = vector.load %arg1[%c0_36, %c2_37, %c0_38, %c0_39] : memref<1x10x10x128xbf16, #tpu.memory_space<vmem>>, vector<1x8x8x128xbf16>
    %56 = vector.shape_cast %55 : vector<1x8x8x128xbf16> to vector<8x8x128xbf16>
    %57 = arith.extf %56 : vector<8x8x128xbf16> to vector<8x8x128xf32>
    %c6 = arith.constant 6 : index
    %c0_40 = arith.constant 0 : index
    %c0_41 = arith.constant 0 : index
    %58 = vector.load %arg2[%c6, %c0_40, %c0_41] : memref<9x1x128xf32, #tpu.memory_space<vmem>>, vector<1x1x128xf32>
    %59 = vector.shape_cast %58 : vector<1x1x128xf32> to vector<1x128xf32>
    %60 = vector.shape_cast %59 : vector<1x128xf32> to vector<1x1x128xf32>
    %61 = vector.broadcast %60 : vector<1x1x128xf32> to vector<8x8x128xf32>
    %62 = arith.mulf %57, %61 : vector<8x8x128xf32>
    %63 = arith.addf %54, %62 : vector<8x8x128xf32>
    %c0_42 = arith.constant 0 : index
    %c2_43 = arith.constant 2 : index
    %c1_44 = arith.constant 1 : index
    %c0_45 = arith.constant 0 : index
    %64 = vector.load %arg1[%c0_42, %c2_43, %c1_44, %c0_45] : memref<1x10x10x128xbf16, #tpu.memory_space<vmem>>, vector<1x8x8x128xbf16>
    %65 = vector.shape_cast %64 : vector<1x8x8x128xbf16> to vector<8x8x128xbf16>
    %66 = arith.extf %65 : vector<8x8x128xbf16> to vector<8x8x128xf32>
    %c7 = arith.constant 7 : index
    %c0_46 = arith.constant 0 : index
    %c0_47 = arith.constant 0 : index
    %67 = vector.load %arg2[%c7, %c0_46, %c0_47] : memref<9x1x128xf32, #tpu.memory_space<vmem>>, vector<1x1x128xf32>
    %68 = vector.shape_cast %67 : vector<1x1x128xf32> to vector<1x128xf32>
    %69 = vector.shape_cast %68 : vector<1x128xf32> to vector<1x1x128xf32>
    %70 = vector.broadcast %69 : vector<1x1x128xf32> to vector<8x8x128xf32>
    %71 = arith.mulf %66, %70 : vector<8x8x128xf32>
    %72 = arith.addf %63, %71 : vector<8x8x128xf32>
    %c0_48 = arith.constant 0 : index
    %c2_49 = arith.constant 2 : index
    %c2_50 = arith.constant 2 : index
    %c0_51 = arith.constant 0 : index
    %73 = vector.load %arg1[%c0_48, %c2_49, %c2_50, %c0_51] : memref<1x10x10x128xbf16, #tpu.memory_space<vmem>>, vector<1x8x8x128xbf16>
    %74 = vector.shape_cast %73 : vector<1x8x8x128xbf16> to vector<8x8x128xbf16>
    %75 = arith.extf %74 : vector<8x8x128xbf16> to vector<8x8x128xf32>
    %c8 = arith.constant 8 : index
    %c0_52 = arith.constant 0 : index
    %c0_53 = arith.constant 0 : index
    %76 = vector.load %arg2[%c8, %c0_52, %c0_53] : memref<9x1x128xf32, #tpu.memory_space<vmem>>, vector<1x1x128xf32>
    %77 = vector.shape_cast %76 : vector<1x1x128xf32> to vector<1x128xf32>
    %78 = vector.shape_cast %77 : vector<1x128xf32> to vector<1x1x128xf32>
    %79 = vector.broadcast %78 : vector<1x1x128xf32> to vector<8x8x128xf32>
    %80 = arith.mulf %75, %79 : vector<8x8x128xf32>
    %81 = arith.addf %72, %80 : vector<8x8x128xf32>
    %c0_54 = arith.constant 0 : index
    %c0_55 = arith.constant 0 : index
    %82 = vector.load %arg3[%c0_54, %c0_55] : memref<1x128xf32, #tpu.memory_space<vmem>>, vector<1x128xf32>
    %83 = vector.shape_cast %82 : vector<1x128xf32> to vector<1x1x128xf32>
    %84 = vector.broadcast %83 : vector<1x1x128xf32> to vector<8x8x128xf32>
    %85 = arith.addf %81, %84 : vector<8x8x128xf32>
    %86 = arith.negf %85 : vector<8x8x128xf32>
    %87 = math.exp %86 : vector<8x8x128xf32>
    %cst_56 = arith.constant 1.000000e+00 : f32
    %88 = vector.broadcast %cst_56 : f32 to vector<8x8x128xf32>
    %89 = arith.addf %88, %87 : vector<8x8x128xf32>
    %90 = arith.divf %88, %89 : vector<8x8x128xf32>
    %91 = arith.mulf %85, %90 : vector<8x8x128xf32>
    %92 = vector.shape_cast %91 : vector<8x8x128xf32> to vector<64x128xf32>
    %cst_57 = arith.constant dense<0.000000e+00> : vector<128xf32>
    %93 = vector.multi_reduction <add>, %92, %cst_57 [0] : vector<64x128xf32> to vector<128xf32>
    %94 = vector.shape_cast %93 : vector<128xf32> to vector<1x128xf32>
    %cst_58 = arith.constant 1.562500e-02 : f32
    %95 = vector.broadcast %cst_58 : f32 to vector<1x128xf32>
    %96 = arith.mulf %94, %95 : vector<1x128xf32>
    %97 = arith.truncf %96 : vector<1x128xf32> to vector<1x128xbf16>
    %c0_59 = arith.constant 0 : index
    %c0_60 = arith.constant 0 : index
    %98 = vector.load %arg4[%c0_59, %c0_60] : memref<128x128xbf16, #tpu.memory_space<vmem>>, vector<128x128xbf16>
    %cst_61 = arith.constant dense<0.000000e+00> : vector<1x128xf32>
    %99 = tpu.matmul %97, %98, %cst_61 {dimension_numbers = #tpu.dot_dimension_numbers<[1], [0], [0], [1], [0, 0, 1, 1], [], []>} : vector<1x128xbf16>, vector<128x128xbf16>, vector<1x128xf32> -> vector<1x128xf32>
    %c0_62 = arith.constant 0 : index
    %c0_63 = arith.constant 0 : index
    %100 = vector.load %arg5[%c0_62, %c0_63] : memref<1x128xf32, #tpu.memory_space<vmem>>, vector<1x128xf32>
    %101 = arith.addf %99, %100 : vector<1x128xf32>
    %102 = arith.negf %101 : vector<1x128xf32>
    %103 = math.exp %102 : vector<1x128xf32>
    %cst_64 = arith.constant 1.000000e+00 : f32
    %104 = vector.broadcast %cst_64 : f32 to vector<1x128xf32>
    %105 = arith.addf %104, %103 : vector<1x128xf32>
    %106 = arith.divf %104, %105 : vector<1x128xf32>
    %107 = arith.mulf %101, %106 : vector<1x128xf32>
    %108 = arith.truncf %107 : vector<1x128xf32> to vector<1x128xbf16>
    %c0_65 = arith.constant 0 : index
    %c0_66 = arith.constant 0 : index
    %109 = vector.load %arg6[%c0_65, %c0_66] : memref<128x128xbf16, #tpu.memory_space<vmem>>, vector<128x128xbf16>
    %cst_67 = arith.constant dense<0.000000e+00> : vector<1x128xf32>
    %110 = tpu.matmul %108, %109, %cst_67 {dimension_numbers = #tpu.dot_dimension_numbers<[1], [0], [0], [1], [0, 0, 1, 1], [], []>} : vector<1x128xbf16>, vector<128x128xbf16>, vector<1x128xf32> -> vector<1x128xf32>
    %c0_68 = arith.constant 0 : index
    %c0_69 = arith.constant 0 : index
    %111 = vector.load %arg7[%c0_68, %c0_69] : memref<1x128xf32, #tpu.memory_space<vmem>>, vector<1x128xf32>
    %112 = arith.addf %110, %111 : vector<1x128xf32>
    %113 = arith.negf %112 : vector<1x128xf32>
    %114 = math.exp %113 : vector<1x128xf32>
    %cst_70 = arith.constant 1.000000e+00 : f32
    %115 = vector.broadcast %cst_70 : f32 to vector<1x128xf32>
    %116 = arith.addf %115, %114 : vector<1x128xf32>
    %117 = arith.divf %115, %116 : vector<1x128xf32>
    %118 = vector.broadcast %117 : vector<1x128xf32> to vector<64x128xf32>
    %119 = arith.mulf %92, %118 : vector<64x128xf32>
    %120 = arith.truncf %119 : vector<64x128xf32> to vector<64x128xbf16>
    %c0_71 = arith.constant 0 : index
    %c0_72 = arith.constant 0 : index
    %121 = vector.load %arg8[%c0_71, %c0_72] : memref<128x128xbf16, #tpu.memory_space<vmem>>, vector<128x128xbf16>
    %cst_73 = arith.constant dense<0.000000e+00> : vector<64x128xf32>
    %122 = tpu.matmul %120, %121, %cst_73 {dimension_numbers = #tpu.dot_dimension_numbers<[1], [0], [0], [1], [0, 0, 1, 1], [], []>} : vector<64x128xbf16>, vector<128x128xbf16>, vector<64x128xf32> -> vector<64x128xf32>
    %c0_74 = arith.constant 0 : index
    %c0_75 = arith.constant 0 : index
    %123 = vector.load %arg9[%c0_74, %c0_75] : memref<1x128xf32, #tpu.memory_space<vmem>>, vector<1x128xf32>
    %124 = vector.broadcast %123 : vector<1x128xf32> to vector<64x128xf32>
    %125 = arith.addf %122, %124 : vector<64x128xf32>
    %c0_76 = arith.constant 0 : index
    %c0_77 = arith.constant 0 : index
    %c0_78 = arith.constant 0 : index
    %126 = vector.load %arg10[%c0_76, %c0_77, %c0_78] : memref<1x64x128xbf16, #tpu.memory_space<vmem>>, vector<1x64x128xbf16>
    %127 = vector.shape_cast %126 : vector<1x64x128xbf16> to vector<64x128xbf16>
    %128 = arith.extf %127 : vector<64x128xbf16> to vector<64x128xf32>
    %129 = arith.addf %125, %128 : vector<64x128xf32>
    %130 = arith.truncf %129 : vector<64x128xf32> to vector<64x128xbf16>
    %c0_79 = arith.constant 0 : index
    %c0_80 = arith.constant 0 : index
    %c0_81 = arith.constant 0 : index
    %131 = vector.load %arg11[%c0_79, %c0_80, %c0_81] : memref<1x64x128xbf16, #tpu.memory_space<vmem>>, vector<1x64x128xbf16>
    %132 = vector.shape_cast %131 : vector<1x64x128xbf16> to vector<64x128xbf16>
    %133 = vector.shape_cast %130 : vector<64x128xbf16> to vector<1x64x128xbf16>
    tpu.vector_store %arg11[%c0_79, %c0_80, %c0_81], %133 {strides = array<i32>} : memref<1x64x128xbf16, #tpu.memory_space<vmem>>, vector<1x64x128xbf16>,
    return
  }
  func.func @transform_0(%arg0: i32) -> (i32, i32, i32, i32) {
    %c0_i32 = arith.constant 0 : i32
    %c0_i32_0 = arith.constant 0 : i32
    %c0_i32_1 = arith.constant 0 : i32
    %c0_i32_2 = arith.constant 0 : i32
    return %arg0, %c0_i32, %c0_i32_0, %c0_i32_1 : i32, i32, i32, i32
  }
  func.func @transform_1(%arg0: i32) -> (i32, i32, i32) {
    %c0_i32 = arith.constant 0 : i32
    %c0_i32_0 = arith.constant 0 : i32
    %c0_i32_1 = arith.constant 0 : i32
    %c0_i32_2 = arith.constant 0 : i32
    return %c0_i32, %c0_i32_0, %c0_i32_1 : i32, i32, i32
  }
  func.func @transform_2(%arg0: i32) -> (i32, i32) {
    %c0_i32 = arith.constant 0 : i32
    %c0_i32_0 = arith.constant 0 : i32
    %c0_i32_1 = arith.constant 0 : i32
    return %c0_i32, %c0_i32_0 : i32, i32
  }
  func.func @transform_3(%arg0: i32) -> (i32, i32) {
    %c0_i32 = arith.constant 0 : i32
    %c0_i32_0 = arith.constant 0 : i32
    %c0_i32_1 = arith.constant 0 : i32
    return %c0_i32, %c0_i32_0 : i32, i32
  }
  func.func @transform_4(%arg0: i32) -> (i32, i32) {
    %c0_i32 = arith.constant 0 : i32
    %c0_i32_0 = arith.constant 0 : i32
    %c0_i32_1 = arith.constant 0 : i32
    return %c0_i32, %c0_i32_0 : i32, i32
  }
  func.func @transform_5(%arg0: i32) -> (i32, i32) {
    %c0_i32 = arith.constant 0 : i32
    %c0_i32_0 = arith.constant 0 : i32
    %c0_i32_1 = arith.constant 0 : i32
    return %c0_i32, %c0_i32_0 : i32, i32
  }
  func.func @transform_6(%arg0: i32) -> (i32, i32) {
    %c0_i32 = arith.constant 0 : i32
    %c0_i32_0 = arith.constant 0 : i32
    %c0_i32_1 = arith.constant 0 : i32
    return %c0_i32, %c0_i32_0 : i32, i32
  }
  func.func @transform_7(%arg0: i32) -> (i32, i32) {
    %c0_i32 = arith.constant 0 : i32
    %c0_i32_0 = arith.constant 0 : i32
    %c0_i32_1 = arith.constant 0 : i32
    return %c0_i32, %c0_i32_0 : i32, i32
  }
  func.func @transform_8(%arg0: i32) -> (i32, i32) {
    %c0_i32 = arith.constant 0 : i32
    %c0_i32_0 = arith.constant 0 : i32
    %c0_i32_1 = arith.constant 0 : i32
    return %c0_i32, %c0_i32_0 : i32, i32
  }
  func.func @transform_9(%arg0: i32) -> (i32, i32, i32) {
    %c0_i32 = arith.constant 0 : i32
    %c0_i32_0 = arith.constant 0 : i32
    %c0_i32_1 = arith.constant 0 : i32
    return %arg0, %c0_i32, %c0_i32_0 : i32, i32, i32
  }
  func.func @transform_10(%arg0: i32) -> (i32, i32, i32) {
    %c0_i32 = arith.constant 0 : i32
    %c0_i32_0 = arith.constant 0 : i32
    %c0_i32_1 = arith.constant 0 : i32
    return %arg0, %c0_i32, %c0_i32_0 : i32, i32, i32
  }
}

module attributes {stable_mosaic.version = 11 : i64} {
  func.func @_mm_bias_act_kernel(%arg0: i32, %arg1: memref<128x128xbf16, #tpu.memory_space<vmem>>, %arg2: memref<128x128xbf16, #tpu.memory_space<vmem>>, %arg3: memref<1x128xf32, #tpu.memory_space<vmem>>, %arg4: memref<128x128xbf16, #tpu.memory_space<vmem>>) attributes {dimension_semantics = [#tpu.dimension_semantics<parallel>], iteration_bounds = array<i64: 1>, scalar_prefetch = 0 : i64, scratch_operands = 0 : i64, tpu.core_type = #tpu.core_type<tc>, window_params = [{transform_indices = @transform_0, window_bounds = array<i64: 128, 128>}, {pipeline_mode = #tpu.pipeline_mode<synchronous>, transform_indices = @transform_1, window_bounds = array<i64: 128, 128>}, {pipeline_mode = #tpu.pipeline_mode<synchronous>, transform_indices = @transform_2, window_bounds = array<i64: 1, 128>}, {transform_indices = @transform_3, window_bounds = array<i64: 128, 128>}]} {
    %c0 = arith.constant 0 : index
    %c0_0 = arith.constant 0 : index
    %0 = vector.load %arg1[%c0, %c0_0] : memref<128x128xbf16, #tpu.memory_space<vmem>>, vector<128x128xbf16>
    %c0_1 = arith.constant 0 : index
    %c0_2 = arith.constant 0 : index
    %1 = vector.load %arg2[%c0_1, %c0_2] : memref<128x128xbf16, #tpu.memory_space<vmem>>, vector<128x128xbf16>
    %cst = arith.constant dense<0.000000e+00> : vector<128x128xf32>
    %2 = tpu.matmul %0, %1, %cst {dimension_numbers = #tpu.dot_dimension_numbers<[1], [0], [0], [1], [0, 0, 1, 1], [], []>} : vector<128x128xbf16>, vector<128x128xbf16>, vector<128x128xf32> -> vector<128x128xf32>
    %c0_3 = arith.constant 0 : index
    %c0_4 = arith.constant 0 : index
    %3 = vector.load %arg3[%c0_3, %c0_4] : memref<1x128xf32, #tpu.memory_space<vmem>>, vector<1x128xf32>
    %4 = vector.broadcast %3 : vector<1x128xf32> to vector<128x128xf32>
    %5 = arith.addf %2, %4 : vector<128x128xf32>
    %6 = arith.negf %5 : vector<128x128xf32>
    %7 = math.exp %6 : vector<128x128xf32>
    %cst_5 = arith.constant 1.000000e+00 : f32
    %8 = vector.broadcast %cst_5 : f32 to vector<128x128xf32>
    %9 = arith.addf %8, %7 : vector<128x128xf32>
    %10 = arith.divf %8, %9 : vector<128x128xf32>
    %11 = arith.mulf %5, %10 : vector<128x128xf32>
    %12 = arith.truncf %11 : vector<128x128xf32> to vector<128x128xbf16>
    %c0_6 = arith.constant 0 : index
    %c0_7 = arith.constant 0 : index
    %13 = vector.load %arg4[%c0_6, %c0_7] : memref<128x128xbf16, #tpu.memory_space<vmem>>, vector<128x128xbf16>
    tpu.vector_store %arg4[%c0_6, %c0_7], %12 {strides = array<i32>} : memref<128x128xbf16, #tpu.memory_space<vmem>>, vector<128x128xbf16>,
    return
  }
  func.func @transform_0(%arg0: i32) -> (i32, i32) {
    %c0_i32 = arith.constant 0 : i32
    %c0_i32_0 = arith.constant 0 : i32
    return %arg0, %c0_i32 : i32, i32
  }
  func.func @transform_1(%arg0: i32) -> (i32, i32) {
    %c0_i32 = arith.constant 0 : i32
    %c0_i32_0 = arith.constant 0 : i32
    %c0_i32_1 = arith.constant 0 : i32
    return %c0_i32, %c0_i32_0 : i32, i32
  }
  func.func @transform_2(%arg0: i32) -> (i32, i32) {
    %c0_i32 = arith.constant 0 : i32
    %c0_i32_0 = arith.constant 0 : i32
    %c0_i32_1 = arith.constant 0 : i32
    return %c0_i32, %c0_i32_0 : i32, i32
  }
  func.func @transform_3(%arg0: i32) -> (i32, i32) {
    %c0_i32 = arith.constant 0 : i32
    %c0_i32_0 = arith.constant 0 : i32
    return %arg0, %c0_i32 : i32, i32
  }
}

module attributes {stable_mosaic.version = 11 : i64} {
  func.func @_lastconv_pool_kernel(%arg0: i32, %arg1: memref<1x16x128xbf16, #tpu.memory_space<vmem>>, %arg2: memref<128x128xbf16, #tpu.memory_space<vmem>>, %arg3: memref<1x128xf32, #tpu.memory_space<vmem>>, %arg4: memref<1x1x128xbf16, #tpu.memory_space<vmem>>) attributes {dimension_semantics = [#tpu.dimension_semantics<parallel>], iteration_bounds = array<i64: 2>, scalar_prefetch = 0 : i64, scratch_operands = 0 : i64, tpu.core_type = #tpu.core_type<tc>, window_params = [{transform_indices = @transform_0, window_bounds = array<i64: 1, 16, 128>}, {pipeline_mode = #tpu.pipeline_mode<synchronous>, transform_indices = @transform_1, window_bounds = array<i64: 128, 128>}, {pipeline_mode = #tpu.pipeline_mode<synchronous>, transform_indices = @transform_2, window_bounds = array<i64: 1, 128>}, {transform_indices = @transform_3, window_bounds = array<i64: 1, 1, 128>}]} {
    %c0 = arith.constant 0 : index
    %c0_0 = arith.constant 0 : index
    %c0_1 = arith.constant 0 : index
    %0 = vector.load %arg1[%c0, %c0_0, %c0_1] : memref<1x16x128xbf16, #tpu.memory_space<vmem>>, vector<1x16x128xbf16>
    %1 = vector.shape_cast %0 : vector<1x16x128xbf16> to vector<16x128xbf16>
    %c0_2 = arith.constant 0 : index
    %c0_3 = arith.constant 0 : index
    %2 = vector.load %arg2[%c0_2, %c0_3] : memref<128x128xbf16, #tpu.memory_space<vmem>>, vector<128x128xbf16>
    %cst = arith.constant dense<0.000000e+00> : vector<16x128xf32>
    %3 = tpu.matmul %1, %2, %cst {dimension_numbers = #tpu.dot_dimension_numbers<[1], [0], [0], [1], [0, 0, 1, 1], [], []>} : vector<16x128xbf16>, vector<128x128xbf16>, vector<16x128xf32> -> vector<16x128xf32>
    %c0_4 = arith.constant 0 : index
    %c0_5 = arith.constant 0 : index
    %4 = vector.load %arg3[%c0_4, %c0_5] : memref<1x128xf32, #tpu.memory_space<vmem>>, vector<1x128xf32>
    %5 = vector.broadcast %4 : vector<1x128xf32> to vector<16x128xf32>
    %6 = arith.addf %3, %5 : vector<16x128xf32>
    %7 = arith.negf %6 : vector<16x128xf32>
    %8 = math.exp %7 : vector<16x128xf32>
    %cst_6 = arith.constant 1.000000e+00 : f32
    %9 = vector.broadcast %cst_6 : f32 to vector<16x128xf32>
    %10 = arith.addf %9, %8 : vector<16x128xf32>
    %11 = arith.divf %9, %10 : vector<16x128xf32>
    %12 = arith.mulf %6, %11 : vector<16x128xf32>
    %cst_7 = arith.constant dense<0.000000e+00> : vector<128xf32>
    %13 = vector.multi_reduction <add>, %12, %cst_7 [0] : vector<16x128xf32> to vector<128xf32>
    %14 = vector.shape_cast %13 : vector<128xf32> to vector<1x128xf32>
    %cst_8 = arith.constant 6.250000e-02 : f32
    %15 = vector.broadcast %cst_8 : f32 to vector<1x128xf32>
    %16 = arith.mulf %14, %15 : vector<1x128xf32>
    %17 = arith.truncf %16 : vector<1x128xf32> to vector<1x128xbf16>
    %c0_9 = arith.constant 0 : index
    %c0_10 = arith.constant 0 : index
    %c0_11 = arith.constant 0 : index
    %18 = vector.load %arg4[%c0_9, %c0_10, %c0_11] : memref<1x1x128xbf16, #tpu.memory_space<vmem>>, vector<1x1x128xbf16>
    %19 = vector.shape_cast %18 : vector<1x1x128xbf16> to vector<1x128xbf16>
    %20 = vector.shape_cast %17 : vector<1x128xbf16> to vector<1x1x128xbf16>
    tpu.vector_store %arg4[%c0_9, %c0_10, %c0_11], %20 {strides = array<i32>} : memref<1x1x128xbf16, #tpu.memory_space<vmem>>, vector<1x1x128xbf16>,
    return
  }
  func.func @transform_0(%arg0: i32) -> (i32, i32, i32) {
    %c0_i32 = arith.constant 0 : i32
    %c0_i32_0 = arith.constant 0 : i32
    %c0_i32_1 = arith.constant 0 : i32
    return %arg0, %c0_i32, %c0_i32_0 : i32, i32, i32
  }
  func.func @transform_1(%arg0: i32) -> (i32, i32) {
    %c0_i32 = arith.constant 0 : i32
    %c0_i32_0 = arith.constant 0 : i32
    %c0_i32_1 = arith.constant 0 : i32
    return %c0_i32, %c0_i32_0 : i32, i32
  }
  func.func @transform_2(%arg0: i32) -> (i32, i32) {
    %c0_i32 = arith.constant 0 : i32
    %c0_i32_0 = arith.constant 0 : i32
    %c0_i32_1 = arith.constant 0 : i32
    return %c0_i32, %c0_i32_0 : i32, i32
  }
  func.func @transform_3(%arg0: i32) -> (i32, i32, i32) {
    %c0_i32 = arith.constant 0 : i32
    %c0_i32_0 = arith.constant 0 : i32
    %c0_i32_1 = arith.constant 0 : i32
    return %arg0, %c0_i32, %c0_i32_0 : i32, i32, i32
  }
}

module attributes {stable_mosaic.version = 11 : i64} {
  func.func @_mbconv_tail_kernel(%arg0: i32, %arg1: memref<1x20x5x128xbf16, #tpu.memory_space<vmem>>, %arg2: memref<9x1x128xf32, #tpu.memory_space<vmem>>, %arg3: memref<1x128xf32, #tpu.memory_space<vmem>>, %arg4: memref<128x128xbf16, #tpu.memory_space<vmem>>, %arg5: memref<1x128xf32, #tpu.memory_space<vmem>>, %arg6: memref<128x128xbf16, #tpu.memory_space<vmem>>, %arg7: memref<1x128xf32, #tpu.memory_space<vmem>>, %arg8: memref<128x128xbf16, #tpu.memory_space<vmem>>, %arg9: memref<1x128xf32, #tpu.memory_space<vmem>>, %arg10: memref<1x16x128xbf16, #tpu.memory_space<vmem>>) attributes {dimension_semantics = [#tpu.dimension_semantics<parallel>], iteration_bounds = array<i64: 2>, scalar_prefetch = 0 : i64, scratch_operands = 0 : i64, tpu.core_type = #tpu.core_type<tc>, window_params = [{transform_indices = @transform_0, window_bounds = array<i64: 1, 20, 5, 128>}, {pipeline_mode = #tpu.pipeline_mode<synchronous>, transform_indices = @transform_1, window_bounds = array<i64: 9, 1, 128>}, {pipeline_mode = #tpu.pipeline_mode<synchronous>, transform_indices = @transform_2, window_bounds = array<i64: 1, 128>}, {pipeline_mode = #tpu.pipeline_mode<synchronous>, transform_indices = @transform_3, window_bounds = array<i64: 128, 128>}, {pipeline_mode = #tpu.pipeline_mode<synchronous>, transform_indices = @transform_4, window_bounds = array<i64: 1, 128>}, {pipeline_mode = #tpu.pipeline_mode<synchronous>, transform_indices = @transform_5, window_bounds = array<i64: 128, 128>}, {pipeline_mode = #tpu.pipeline_mode<synchronous>, transform_indices = @transform_6, window_bounds = array<i64: 1, 128>}, {pipeline_mode = #tpu.pipeline_mode<synchronous>, transform_indices = @transform_7, window_bounds = array<i64: 128, 128>}, {pipeline_mode = #tpu.pipeline_mode<synchronous>, transform_indices = @transform_8, window_bounds = array<i64: 1, 128>}, {transform_indices = @transform_9, window_bounds = array<i64: 1, 16, 128>}]} {
    %cst = arith.constant 0.000000e+00 : f32
    %0 = vector.broadcast %cst : f32 to vector<4x4x128xf32>
    %c0 = arith.constant 0 : index
    %c0_0 = arith.constant 0 : index
    %c0_1 = arith.constant 0 : index
    %c0_2 = arith.constant 0 : index
    %1 = vector.load %arg1[%c0, %c0_0, %c0_1, %c0_2] : memref<1x20x5x128xbf16, #tpu.memory_space<vmem>>, vector<1x4x4x128xbf16>
    %2 = vector.shape_cast %1 : vector<1x4x4x128xbf16> to vector<4x4x128xbf16>
    %3 = arith.extf %2 : vector<4x4x128xbf16> to vector<4x4x128xf32>
    %c0_3 = arith.constant 0 : index
    %c0_4 = arith.constant 0 : index
    %c0_5 = arith.constant 0 : index
    %4 = vector.load %arg2[%c0_3, %c0_4, %c0_5] : memref<9x1x128xf32, #tpu.memory_space<vmem>>, vector<1x1x128xf32>
    %5 = vector.shape_cast %4 : vector<1x1x128xf32> to vector<1x128xf32>
    %6 = vector.shape_cast %5 : vector<1x128xf32> to vector<1x1x128xf32>
    %7 = vector.broadcast %6 : vector<1x1x128xf32> to vector<4x4x128xf32>
    %8 = arith.mulf %3, %7 : vector<4x4x128xf32>
    %9 = arith.addf %0, %8 : vector<4x4x128xf32>
    %c0_6 = arith.constant 0 : index
    %c5 = arith.constant 5 : index
    %c0_7 = arith.constant 0 : index
    %c0_8 = arith.constant 0 : index
    %10 = vector.load %arg1[%c0_6, %c5, %c0_7, %c0_8] : memref<1x20x5x128xbf16, #tpu.memory_space<vmem>>, vector<1x4x4x128xbf16>
    %11 = vector.shape_cast %10 : vector<1x4x4x128xbf16> to vector<4x4x128xbf16>
    %12 = arith.extf %11 : vector<4x4x128xbf16> to vector<4x4x128xf32>
    %c1 = arith.constant 1 : index
    %c0_9 = arith.constant 0 : index
    %c0_10 = arith.constant 0 : index
    %13 = vector.load %arg2[%c1, %c0_9, %c0_10] : memref<9x1x128xf32, #tpu.memory_space<vmem>>, vector<1x1x128xf32>
    %14 = vector.shape_cast %13 : vector<1x1x128xf32> to vector<1x128xf32>
    %15 = vector.shape_cast %14 : vector<1x128xf32> to vector<1x1x128xf32>
    %16 = vector.broadcast %15 : vector<1x1x128xf32> to vector<4x4x128xf32>
    %17 = arith.mulf %12, %16 : vector<4x4x128xf32>
    %18 = arith.addf %9, %17 : vector<4x4x128xf32>
    %c0_11 = arith.constant 0 : index
    %c0_12 = arith.constant 0 : index
    %c1_13 = arith.constant 1 : index
    %c0_14 = arith.constant 0 : index
    %19 = vector.load %arg1[%c0_11, %c0_12, %c1_13, %c0_14] : memref<1x20x5x128xbf16, #tpu.memory_space<vmem>>, vector<1x4x4x128xbf16>
    %20 = vector.shape_cast %19 : vector<1x4x4x128xbf16> to vector<4x4x128xbf16>
    %21 = arith.extf %20 : vector<4x4x128xbf16> to vector<4x4x128xf32>
    %c2 = arith.constant 2 : index
    %c0_15 = arith.constant 0 : index
    %c0_16 = arith.constant 0 : index
    %22 = vector.load %arg2[%c2, %c0_15, %c0_16] : memref<9x1x128xf32, #tpu.memory_space<vmem>>, vector<1x1x128xf32>
    %23 = vector.shape_cast %22 : vector<1x1x128xf32> to vector<1x128xf32>
    %24 = vector.shape_cast %23 : vector<1x128xf32> to vector<1x1x128xf32>
    %25 = vector.broadcast %24 : vector<1x1x128xf32> to vector<4x4x128xf32>
    %26 = arith.mulf %21, %25 : vector<4x4x128xf32>
    %27 = arith.addf %18, %26 : vector<4x4x128xf32>
    %c0_17 = arith.constant 0 : index
    %c10 = arith.constant 10 : index
    %c0_18 = arith.constant 0 : index
    %c0_19 = arith.constant 0 : index
    %28 = vector.load %arg1[%c0_17, %c10, %c0_18, %c0_19] : memref<1x20x5x128xbf16, #tpu.memory_space<vmem>>, vector<1x4x4x128xbf16>
    %29 = vector.shape_cast %28 : vector<1x4x4x128xbf16> to vector<4x4x128xbf16>
    %30 = arith.extf %29 : vector<4x4x128xbf16> to vector<4x4x128xf32>
    %c3 = arith.constant 3 : index
    %c0_20 = arith.constant 0 : index
    %c0_21 = arith.constant 0 : index
    %31 = vector.load %arg2[%c3, %c0_20, %c0_21] : memref<9x1x128xf32, #tpu.memory_space<vmem>>, vector<1x1x128xf32>
    %32 = vector.shape_cast %31 : vector<1x1x128xf32> to vector<1x128xf32>
    %33 = vector.shape_cast %32 : vector<1x128xf32> to vector<1x1x128xf32>
    %34 = vector.broadcast %33 : vector<1x1x128xf32> to vector<4x4x128xf32>
    %35 = arith.mulf %30, %34 : vector<4x4x128xf32>
    %36 = arith.addf %27, %35 : vector<4x4x128xf32>
    %c0_22 = arith.constant 0 : index
    %c15 = arith.constant 15 : index
    %c0_23 = arith.constant 0 : index
    %c0_24 = arith.constant 0 : index
    %37 = vector.load %arg1[%c0_22, %c15, %c0_23, %c0_24] : memref<1x20x5x128xbf16, #tpu.memory_space<vmem>>, vector<1x4x4x128xbf16>
    %38 = vector.shape_cast %37 : vector<1x4x4x128xbf16> to vector<4x4x128xbf16>
    %39 = arith.extf %38 : vector<4x4x128xbf16> to vector<4x4x128xf32>
    %c4 = arith.constant 4 : index
    %c0_25 = arith.constant 0 : index
    %c0_26 = arith.constant 0 : index
    %40 = vector.load %arg2[%c4, %c0_25, %c0_26] : memref<9x1x128xf32, #tpu.memory_space<vmem>>, vector<1x1x128xf32>
    %41 = vector.shape_cast %40 : vector<1x1x128xf32> to vector<1x128xf32>
    %42 = vector.shape_cast %41 : vector<1x128xf32> to vector<1x1x128xf32>
    %43 = vector.broadcast %42 : vector<1x1x128xf32> to vector<4x4x128xf32>
    %44 = arith.mulf %39, %43 : vector<4x4x128xf32>
    %45 = arith.addf %36, %44 : vector<4x4x128xf32>
    %c0_27 = arith.constant 0 : index
    %c10_28 = arith.constant 10 : index
    %c1_29 = arith.constant 1 : index
    %c0_30 = arith.constant 0 : index
    %46 = vector.load %arg1[%c0_27, %c10_28, %c1_29, %c0_30] : memref<1x20x5x128xbf16, #tpu.memory_space<vmem>>, vector<1x4x4x128xbf16>
    %47 = vector.shape_cast %46 : vector<1x4x4x128xbf16> to vector<4x4x128xbf16>
    %48 = arith.extf %47 : vector<4x4x128xbf16> to vector<4x4x128xf32>
    %c5_31 = arith.constant 5 : index
    %c0_32 = arith.constant 0 : index
    %c0_33 = arith.constant 0 : index
    %49 = vector.load %arg2[%c5_31, %c0_32, %c0_33] : memref<9x1x128xf32, #tpu.memory_space<vmem>>, vector<1x1x128xf32>
    %50 = vector.shape_cast %49 : vector<1x1x128xf32> to vector<1x128xf32>
    %51 = vector.shape_cast %50 : vector<1x128xf32> to vector<1x1x128xf32>
    %52 = vector.broadcast %51 : vector<1x1x128xf32> to vector<4x4x128xf32>
    %53 = arith.mulf %48, %52 : vector<4x4x128xf32>
    %54 = arith.addf %45, %53 : vector<4x4x128xf32>
    %c0_34 = arith.constant 0 : index
    %c1_35 = arith.constant 1 : index
    %c0_36 = arith.constant 0 : index
    %c0_37 = arith.constant 0 : index
    %55 = vector.load %arg1[%c0_34, %c1_35, %c0_36, %c0_37] : memref<1x20x5x128xbf16, #tpu.memory_space<vmem>>, vector<1x4x4x128xbf16>
    %56 = vector.shape_cast %55 : vector<1x4x4x128xbf16> to vector<4x4x128xbf16>
    %57 = arith.extf %56 : vector<4x4x128xbf16> to vector<4x4x128xf32>
    %c6 = arith.constant 6 : index
    %c0_38 = arith.constant 0 : index
    %c0_39 = arith.constant 0 : index
    %58 = vector.load %arg2[%c6, %c0_38, %c0_39] : memref<9x1x128xf32, #tpu.memory_space<vmem>>, vector<1x1x128xf32>
    %59 = vector.shape_cast %58 : vector<1x1x128xf32> to vector<1x128xf32>
    %60 = vector.shape_cast %59 : vector<1x128xf32> to vector<1x1x128xf32>
    %61 = vector.broadcast %60 : vector<1x1x128xf32> to vector<4x4x128xf32>
    %62 = arith.mulf %57, %61 : vector<4x4x128xf32>
    %63 = arith.addf %54, %62 : vector<4x4x128xf32>
    %c0_40 = arith.constant 0 : index
    %c6_41 = arith.constant 6 : index
    %c0_42 = arith.constant 0 : index
    %c0_43 = arith.constant 0 : index
    %64 = vector.load %arg1[%c0_40, %c6_41, %c0_42, %c0_43] : memref<1x20x5x128xbf16, #tpu.memory_space<vmem>>, vector<1x4x4x128xbf16>
    %65 = vector.shape_cast %64 : vector<1x4x4x128xbf16> to vector<4x4x128xbf16>
    %66 = arith.extf %65 : vector<4x4x128xbf16> to vector<4x4x128xf32>
    %c7 = arith.constant 7 : index
    %c0_44 = arith.constant 0 : index
    %c0_45 = arith.constant 0 : index
    %67 = vector.load %arg2[%c7, %c0_44, %c0_45] : memref<9x1x128xf32, #tpu.memory_space<vmem>>, vector<1x1x128xf32>
    %68 = vector.shape_cast %67 : vector<1x1x128xf32> to vector<1x128xf32>
    %69 = vector.shape_cast %68 : vector<1x128xf32> to vector<1x1x128xf32>
    %70 = vector.broadcast %69 : vector<1x1x128xf32> to vector<4x4x128xf32>
    %71 = arith.mulf %66, %70 : vector<4x4x128xf32>
    %72 = arith.addf %63, %71 : vector<4x4x128xf32>
    %c0_46 = arith.constant 0 : index
    %c1_47 = arith.constant 1 : index
    %c1_48 = arith.constant 1 : index
    %c0_49 = arith.constant 0 : index
    %73 = vector.load %arg1[%c0_46, %c1_47, %c1_48, %c0_49] : memref<1x20x5x128xbf16, #tpu.memory_space<vmem>>, vector<1x4x4x128xbf16>
    %74 = vector.shape_cast %73 : vector<1x4x4x128xbf16> to vector<4x4x128xbf16>
    %75 = arith.extf %74 : vector<4x4x128xbf16> to vector<4x4x128xf32>
    %c8 = arith.constant 8 : index
    %c0_50 = arith.constant 0 : index
    %c0_51 = arith.constant 0 : index
    %76 = vector.load %arg2[%c8, %c0_50, %c0_51] : memref<9x1x128xf32, #tpu.memory_space<vmem>>, vector<1x1x128xf32>
    %77 = vector.shape_cast %76 : vector<1x1x128xf32> to vector<1x128xf32>
    %78 = vector.shape_cast %77 : vector<1x128xf32> to vector<1x1x128xf32>
    %79 = vector.broadcast %78 : vector<1x1x128xf32> to vector<4x4x128xf32>
    %80 = arith.mulf %75, %79 : vector<4x4x128xf32>
    %81 = arith.addf %72, %80 : vector<4x4x128xf32>
    %c0_52 = arith.constant 0 : index
    %c0_53 = arith.constant 0 : index
    %82 = vector.load %arg3[%c0_52, %c0_53] : memref<1x128xf32, #tpu.memory_space<vmem>>, vector<1x128xf32>
    %83 = vector.shape_cast %82 : vector<1x128xf32> to vector<1x1x128xf32>
    %84 = vector.broadcast %83 : vector<1x1x128xf32> to vector<4x4x128xf32>
    %85 = arith.addf %81, %84 : vector<4x4x128xf32>
    %86 = arith.negf %85 : vector<4x4x128xf32>
    %87 = math.exp %86 : vector<4x4x128xf32>
    %cst_54 = arith.constant 1.000000e+00 : f32
    %88 = vector.broadcast %cst_54 : f32 to vector<4x4x128xf32>
    %89 = arith.addf %88, %87 : vector<4x4x128xf32>
    %90 = arith.divf %88, %89 : vector<4x4x128xf32>
    %91 = arith.mulf %85, %90 : vector<4x4x128xf32>
    %92 = vector.shape_cast %91 : vector<4x4x128xf32> to vector<16x128xf32>
    %cst_55 = arith.constant dense<0.000000e+00> : vector<128xf32>
    %93 = vector.multi_reduction <add>, %92, %cst_55 [0] : vector<16x128xf32> to vector<128xf32>
    %94 = vector.shape_cast %93 : vector<128xf32> to vector<1x128xf32>
    %cst_56 = arith.constant 6.250000e-02 : f32
    %95 = vector.broadcast %cst_56 : f32 to vector<1x128xf32>
    %96 = arith.mulf %94, %95 : vector<1x128xf32>
    %97 = arith.truncf %96 : vector<1x128xf32> to vector<1x128xbf16>
    %c0_57 = arith.constant 0 : index
    %c0_58 = arith.constant 0 : index
    %98 = vector.load %arg4[%c0_57, %c0_58] : memref<128x128xbf16, #tpu.memory_space<vmem>>, vector<128x128xbf16>
    %cst_59 = arith.constant dense<0.000000e+00> : vector<1x128xf32>
    %99 = tpu.matmul %97, %98, %cst_59 {dimension_numbers = #tpu.dot_dimension_numbers<[1], [0], [0], [1], [0, 0, 1, 1], [], []>} : vector<1x128xbf16>, vector<128x128xbf16>, vector<1x128xf32> -> vector<1x128xf32>
    %c0_60 = arith.constant 0 : index
    %c0_61 = arith.constant 0 : index
    %100 = vector.load %arg5[%c0_60, %c0_61] : memref<1x128xf32, #tpu.memory_space<vmem>>, vector<1x128xf32>
    %101 = arith.addf %99, %100 : vector<1x128xf32>
    %102 = arith.negf %101 : vector<1x128xf32>
    %103 = math.exp %102 : vector<1x128xf32>
    %cst_62 = arith.constant 1.000000e+00 : f32
    %104 = vector.broadcast %cst_62 : f32 to vector<1x128xf32>
    %105 = arith.addf %104, %103 : vector<1x128xf32>
    %106 = arith.divf %104, %105 : vector<1x128xf32>
    %107 = arith.mulf %101, %106 : vector<1x128xf32>
    %108 = arith.truncf %107 : vector<1x128xf32> to vector<1x128xbf16>
    %c0_63 = arith.constant 0 : index
    %c0_64 = arith.constant 0 : index
    %109 = vector.load %arg6[%c0_63, %c0_64] : memref<128x128xbf16, #tpu.memory_space<vmem>>, vector<128x128xbf16>
    %cst_65 = arith.constant dense<0.000000e+00> : vector<1x128xf32>
    %110 = tpu.matmul %108, %109, %cst_65 {dimension_numbers = #tpu.dot_dimension_numbers<[1], [0], [0], [1], [0, 0, 1, 1], [], []>} : vector<1x128xbf16>, vector<128x128xbf16>, vector<1x128xf32> -> vector<1x128xf32>
    %c0_66 = arith.constant 0 : index
    %c0_67 = arith.constant 0 : index
    %111 = vector.load %arg7[%c0_66, %c0_67] : memref<1x128xf32, #tpu.memory_space<vmem>>, vector<1x128xf32>
    %112 = arith.addf %110, %111 : vector<1x128xf32>
    %113 = arith.negf %112 : vector<1x128xf32>
    %114 = math.exp %113 : vector<1x128xf32>
    %cst_68 = arith.constant 1.000000e+00 : f32
    %115 = vector.broadcast %cst_68 : f32 to vector<1x128xf32>
    %116 = arith.addf %115, %114 : vector<1x128xf32>
    %117 = arith.divf %115, %116 : vector<1x128xf32>
    %118 = vector.broadcast %117 : vector<1x128xf32> to vector<16x128xf32>
    %119 = arith.mulf %92, %118 : vector<16x128xf32>
    %120 = arith.truncf %119 : vector<16x128xf32> to vector<16x128xbf16>
    %c0_69 = arith.constant 0 : index
    %c0_70 = arith.constant 0 : index
    %121 = vector.load %arg8[%c0_69, %c0_70] : memref<128x128xbf16, #tpu.memory_space<vmem>>, vector<128x128xbf16>
    %cst_71 = arith.constant dense<0.000000e+00> : vector<16x128xf32>
    %122 = tpu.matmul %120, %121, %cst_71 {dimension_numbers = #tpu.dot_dimension_numbers<[1], [0], [0], [1], [0, 0, 1, 1], [], []>} : vector<16x128xbf16>, vector<128x128xbf16>, vector<16x128xf32> -> vector<16x128xf32>
    %c0_72 = arith.constant 0 : index
    %c0_73 = arith.constant 0 : index
    %123 = vector.load %arg9[%c0_72, %c0_73] : memref<1x128xf32, #tpu.memory_space<vmem>>, vector<1x128xf32>
    %124 = vector.broadcast %123 : vector<1x128xf32> to vector<16x128xf32>
    %125 = arith.addf %122, %124 : vector<16x128xf32>
    %126 = arith.truncf %125 : vector<16x128xf32> to vector<16x128xbf16>
    %c0_74 = arith.constant 0 : index
    %c0_75 = arith.constant 0 : index
    %c0_76 = arith.constant 0 : index
    %127 = vector.load %arg10[%c0_74, %c0_75, %c0_76] : memref<1x16x128xbf16, #tpu.memory_space<vmem>>, vector<1x16x128xbf16>
    %128 = vector.shape_cast %127 : vector<1x16x128xbf16> to vector<16x128xbf16>
    %129 = vector.shape_cast %126 : vector<16x128xbf16> to vector<1x16x128xbf16>
    tpu.vector_store %arg10[%c0_74, %c0_75, %c0_76], %129 {strides = array<i32>} : memref<1x16x128xbf16, #tpu.memory_space<vmem>>, vector<1x16x128xbf16>,
    return
  }
  func.func @transform_0(%arg0: i32) -> (i32, i32, i32, i32) {
    %c0_i32 = arith.constant 0 : i32
    %c0_i32_0 = arith.constant 0 : i32
    %c0_i32_1 = arith.constant 0 : i32
    %c0_i32_2 = arith.constant 0 : i32
    return %arg0, %c0_i32, %c0_i32_0, %c0_i32_1 : i32, i32, i32, i32
  }
  func.func @transform_1(%arg0: i32) -> (i32, i32, i32) {
    %c0_i32 = arith.constant 0 : i32
    %c0_i32_0 = arith.constant 0 : i32
    %c0_i32_1 = arith.constant 0 : i32
    %c0_i32_2 = arith.constant 0 : i32
    return %c0_i32, %c0_i32_0, %c0_i32_1 : i32, i32, i32
  }
  func.func @transform_2(%arg0: i32) -> (i32, i32) {
    %c0_i32 = arith.constant 0 : i32
    %c0_i32_0 = arith.constant 0 : i32
    %c0_i32_1 = arith.constant 0 : i32
    return %c0_i32, %c0_i32_0 : i32, i32
  }
  func.func @transform_3(%arg0: i32) -> (i32, i32) {
    %c0_i32 = arith.constant 0 : i32
    %c0_i32_0 = arith.constant 0 : i32
    %c0_i32_1 = arith.constant 0 : i32
    return %c0_i32, %c0_i32_0 : i32, i32
  }
  func.func @transform_4(%arg0: i32) -> (i32, i32) {
    %c0_i32 = arith.constant 0 : i32
    %c0_i32_0 = arith.constant 0 : i32
    %c0_i32_1 = arith.constant 0 : i32
    return %c0_i32, %c0_i32_0 : i32, i32
  }
  func.func @transform_5(%arg0: i32) -> (i32, i32) {
    %c0_i32 = arith.constant 0 : i32
    %c0_i32_0 = arith.constant 0 : i32
    %c0_i32_1 = arith.constant 0 : i32
    return %c0_i32, %c0_i32_0 : i32, i32
  }
  func.func @transform_6(%arg0: i32) -> (i32, i32) {
    %c0_i32 = arith.constant 0 : i32
    %c0_i32_0 = arith.constant 0 : i32
    %c0_i32_1 = arith.constant 0 : i32
    return %c0_i32, %c0_i32_0 : i32, i32
  }
  func.func @transform_7(%arg0: i32) -> (i32, i32) {
    %c0_i32 = arith.constant 0 : i32
    %c0_i32_0 = arith.constant 0 : i32
    %c0_i32_1 = arith.constant 0 : i32
    return %c0_i32, %c0_i32_0 : i32, i32
  }
  func.func @transform_8(%arg0: i32) -> (i32, i32) {
    %c0_i32 = arith.constant 0 : i32
    %c0_i32_0 = arith.constant 0 : i32
    %c0_i32_1 = arith.constant 0 : i32
    return %c0_i32, %c0_i32_0 : i32, i32
  }
  func.func @transform_9(%arg0: i32) -> (i32, i32, i32) {
    %c0_i32 = arith.constant 0 : i32
    %c0_i32_0 = arith.constant 0 : i32
    %c0_i32_1 = arith.constant 0 : i32
    return %arg0, %c0_i32, %c0_i32_0 : i32, i32, i32
  }
}

module attributes {stable_mosaic.version = 11 : i64} {
  func.func @_fc_kernel(%arg0: memref<2x128xbf16, #tpu.memory_space<vmem>>, %arg1: memref<128x128xbf16, #tpu.memory_space<vmem>>, %arg2: memref<1x128xf32, #tpu.memory_space<vmem>>, %arg3: memref<2x128xf32, #tpu.memory_space<vmem>>) attributes {dimension_semantics = [], scalar_prefetch = 0 : i64, scratch_operands = 0 : i64, tpu.core_type = #tpu.core_type<tc>} {
    %c0 = arith.constant 0 : index
    %c0_0 = arith.constant 0 : index
    %0 = vector.load %arg0[%c0, %c0_0] : memref<2x128xbf16, #tpu.memory_space<vmem>>, vector<2x128xbf16>
    %c0_1 = arith.constant 0 : index
    %c0_2 = arith.constant 0 : index
    %1 = vector.load %arg1[%c0_1, %c0_2] : memref<128x128xbf16, #tpu.memory_space<vmem>>, vector<128x128xbf16>
    %cst = arith.constant dense<0.000000e+00> : vector<2x128xf32>
    %2 = tpu.matmul %0, %1, %cst {dimension_numbers = #tpu.dot_dimension_numbers<[1], [0], [0], [1], [0, 0, 1, 1], [], []>} : vector<2x128xbf16>, vector<128x128xbf16>, vector<2x128xf32> -> vector<2x128xf32>
    %c0_3 = arith.constant 0 : index
    %c0_4 = arith.constant 0 : index
    %3 = vector.load %arg2[%c0_3, %c0_4] : memref<1x128xf32, #tpu.memory_space<vmem>>, vector<1x128xf32>
    %4 = vector.broadcast %3 : vector<1x128xf32> to vector<2x128xf32>
    %5 = arith.addf %2, %4 : vector<2x128xf32>
    %c0_5 = arith.constant 0 : index
    %c0_6 = arith.constant 0 : index
    %6 = vector.load %arg3[%c0_5, %c0_6] : memref<2x128xf32, #tpu.memory_space<vmem>>, vector<2x128xf32>
    tpu.vector_store %arg3[%c0_5, %c0_6], %5 {strides = array<i32>} : memref<2x128xf32, #tpu.memory_space<vmem>>, vector<2x128xf32>,
    return
  }
}

</mosaic_0001>

<bundles_post_ra>
// kernel: _lambda_.8
= control target key start
LH: loop header
LB: loop body
LE: loop exit
PB: predicated region body
PF: predicated region fallthrough
CT: control target
= control target key end

     0   :  { %8 = vsyncpa [#allocation3], 0  ;;  %s1025_s0 = inlined_call_operand.hbm [shape: bf16[128,128], index: 0, kind: input, shape index: {}]   ;;  %s1026_s1 = inlined_call_operand.hbm [shape: bf16[128,128], index: 1, kind: input, shape index: {}]   ;;  %s1027_s2 = inlined_call_operand.hbm [shape: f32[1,128], index: 2, kind: input, shape index: {}]   ;;  %s1028_s3 = inlined_call_operand.hbm [shape: bf16[128,128], index: 3, kind: output, shape index: {}]  }
   0x1   :  { %9 = vsyncpa [#allocation6], 0 }
   0x2   :  { %10 = vsyncpa [#allocation4], 0  ;;  %s853_s12 = smov [#allocation5]   ;;  %s854_s14 = smov [#allocation2]  }
   0x3   :  { %s28_s13 = sshll.u32 %s853_s12, 4  ;;  %s16_s15 = sshll.u32 %s854_s14, 4  ;;  %s29_s13 = int_to_ptr.vmem [resolvable:$true] %s28_s13  ;;  %s879_s15 = int_to_ptr.vmem [resolvable:$true] %s16_s15 }
   0x4   :  { %s759_s18 = scalar_lea.hbm %s1026_s1, 1024 }
   0x5   :  { %p760_p0 = scmp.ne.s32.totalorder %s1026_s1, %s759_s18  ;;  %p763_p1 = scmp.lt.u32.totalorder %s759_s18, %s1026_s1 }
   0x7   :  { %p765_p2 = pnand %p763_p1, %p760_p0 }
   0x9   :  { %768 = shalt.err (!%p765_p2)
}
   0xa   :  { %s769_s23 = scalar_lea.vmem %s29_s13, 1024  ;;  %p774_p4 = scmp.lt.s32.totalorder %s29_s13, %s29_s13 }
   0xb   :  { %p770_p3 = scmp.ne.s32.totalorder %s29_s13, %s769_s23  ;;  %p775_p5 = scmp.lt.s32.totalorder %s769_s23, %s769_s23 }
   0xd   :  { %p776_p6 = por %p775_p5, %p774_p4 }
   0xf   :  { %p777_p7 = pnand %p776_p6, %p770_p3 }
  0x11   :  { %780 = shalt.err (!%p777_p7)
}
  0x12   :  { %s855_s24 = smov 64   ;;  %s856_s25 = smov 4  }
  0x13   :  { %34 = dma.hbm_to_vmem [thread:$0]  %s1026_s1, 1024, %s29_s13, [#allocation6], %s855_s24, %s855_s24, %s856_s25  }
  0x14   :  { %s781_s30 = scalar_lea.hbm %s1025_s0, 1024 }
  0x15   :  { %p782_p8 = scmp.ne.s32.totalorder %s1025_s0, %s781_s30  ;;  %p785_p9 = scmp.lt.u32.totalorder %s781_s30, %s1025_s0 }
  0x17   :  { %p787_p10 = pnand %p785_p9, %p782_p8 }
  0x19   :  { %790 = shalt.err (!%p787_p10)
}
  0x1a   :  { %s791_s8 = scalar_lea.vmem %s879_s15, 1024  ;;  %p796_p12 = scmp.lt.s32.totalorder %s879_s15, %s879_s15 }
  0x1b   :  { %p792_p11 = scmp.ne.s32.totalorder %s879_s15, %s791_s8  ;;  %p797_p13 = scmp.lt.s32.totalorder %s791_s8, %s791_s8 }
  0x1d   :  { %p798_p0 = por %p797_p13, %p796_p12 }
  0x1f   :  { %p799_p1 = pnand %p798_p0, %p792_p11 }
  0x21   :  { %802 = shalt.err (!%p799_p1)
}
  0x22   :  { %22 = dma.hbm_to_vmem [thread:$0]  %s1025_s0, 1024, %s879_s15, [#allocation3], %s855_s24, %s855_s24, %s856_s25  }
  0x23   :  { %s857_s10 = smov [#allocation7]   ;;  %s803_s14 = scalar_lea.hbm %s1027_s2, 16 }
  0x24   :  { %s41_s11 = sshll.u32 %s857_s10, 4  ;;  %p804_p2 = scmp.ne.s32.totalorder %s1027_s2, %s803_s14  ;;  %s42_s11 = int_to_ptr.vmem [resolvable:$true] %s41_s11 }
  0x25   :  { %p807_p3 = scmp.lt.u32.totalorder %s803_s14, %s1027_s2 }
  0x27   :  { %p809_p4 = pnand %p807_p3, %p804_p2 }
  0x29   :  { %812 = shalt.err (!%p809_p4)
}
  0x2a   :  { %s813_s20 = scalar_lea.vmem %s42_s11, 16  ;;  %s817_s0 = scalar_lea.vmem %s42_s11, 32 }
  0x2b   :  { %p814_p5 = scmp.ne.s32.totalorder %s42_s11, %s813_s20  ;;  %p818_p6 = scmp.lt.s32.totalorder %s42_s11, %s42_s11 }
  0x2c   :  { %p819_p7 = scmp.lt.s32.totalorder %s817_s0, %s813_s20 }
  0x2e   :  { %p820_p8 = por %p819_p7, %p818_p6 }
  0x30   :  { %p821_p9 = pnand %p820_p8, %p814_p5 }
  0x32   :  { %824 = shalt.err (!%p821_p9)
}
  0x33   :  { %44 = dma.hbm_to_vmem [thread:$0]  %s1027_s2, 16, %s42_s11, [#allocation6]  }
  0x34   :  { %847 = dma.done.wait [#allocation3], 1024  }
  0x35   :  { %848 = vsyncadd [#allocation3], 4294966272 }
  0x36   :  { %849 = dma.done.wait [#allocation6], 1040  }
  0x37   :  { %850 = vsyncadd [#allocation6], 4294966256  ;;  %v679_v0 = vld [vmem:[#allocation5] sm:$0xff]   ;;  %v680_v1 = vld [vmem:[#allocation5 + $0x8] sm:$0xff]   ;;  %s858_s2 = smov [#allocation8]  }
  0x38   :  { %625 = vmatprep.subr.bf16.mxu0 %v679_v0  ;;  %657 = vmatprep.subr.bf16.mxu1 %v679_v0  ;;  %v681_v2 = vld [vmem:[#allocation5 + $0x10] sm:$0xff]   ;;  %v682_v3 = vld [vmem:[#allocation5 + $0x18] sm:$0xff]   ;;  %v687_v4 = vld [vmem:[#allocation2] sm:$0xff]   ;;  %s484_s22 = sshll.u32 %s858_s2, 4  ;;  %s485_s22 = int_to_ptr.vmem [resolvable:$true] %s484_s22 }
  0x39   :  { %626 = vmatpush3.bf16.msra.mxu0 %v679_v0  ;;  %665 = vmatpush3.bf16.msra.mxu1 %v679_v0  ;;  %v688_v5 = vld [vmem:[#allocation2 + $0x20] sm:$0xff]   ;;  %v684_v7 = vld [vmem:[#allocation5 + $0x28] sm:$0xff]   ;;  %v685_v8 = vld [vmem:[#allocation5 + $0x30] sm:$0xff]   ;;  %s825_s23 = scalar_lea.vmem %s485_s22, 1024  ;;  %p830_p11 = scmp.lt.s32.totalorder %s485_s22, %s485_s22 }
  0x3a   :  { %627 = vmatprep.subr.bf16.mxu0 %v680_v1  ;;  %658 = vmatprep.subr.bf16.mxu1 %v680_v1  ;;  %v683_v6 = vld [vmem:[#allocation5 + $0x20] sm:$0xff]   ;;  %v686_v9 = vld [vmem:[#allocation5 + $0x38] sm:$0xff]   ;;  %v689_v10 = vld [vmem:[#allocation2 + $0x8] sm:$0xff]   ;;  %p826_p10 = scmp.ne.s32.totalorder %s485_s22, %s825_s23  ;;  %p831_p12 = scmp.lt.s32.totalorder %s825_s23, %s825_s23 }
  0x3b   :  { %641 = vmatprep.mubr.bf16.mxu0 %v687_v4  ;;  %649 = vmatprep.mubr.bf16.mxu1 %v688_v5  ;;  %v690_v11 = vld [vmem:[#allocation2 + $0x28] sm:$0xff]   ;;  %v691_v12 = vld [vmem:[#allocation2 + $0x10] sm:$0xff]   ;;  %v693_v14 = vld [vmem:[#allocation2 + $0x18] sm:$0xff]  }
  0x3c   :  { %v692_v13 = vld [vmem:[#allocation2 + $0x30] sm:$0xff]   ;;  %v694_v15 = vld [vmem:[#allocation2 + $0x38] sm:$0xff]   ;;  %v928_v16 = vld [vmem:[#allocation7] ss:$0 sm:$0xff]  ;;  %p832_p13 = por %p831_p12, %p830_p11 }
  0x3d   :  { %628 = vmatpush3.bf16.msra.mxu0 %v680_v1  ;;  %666 = vmatpush3.bf16.msra.mxu1 %v680_v1 }
  0x3e   :  { %629 = vmatprep.subr.bf16.mxu0 %v681_v2  ;;  %659 = vmatprep.subr.bf16.mxu1 %v681_v2  ;;  %p833_p0 = pnand %p832_p13, %p826_p10 }
  0x41   :  { %630 = vmatpush3.bf16.msra.mxu0 %v681_v2  ;;  %667 = vmatpush3.bf16.msra.mxu1 %v681_v2 }
  0x42   :  { %631 = vmatprep.subr.bf16.mxu0 %v682_v3  ;;  %660 = vmatprep.subr.bf16.mxu1 %v682_v3 }
  0x45   :  { %632 = vmatpush3.bf16.msra.mxu0 %v682_v3  ;;  %668 = vmatpush3.bf16.msra.mxu1 %v682_v3 }
  0x46   :  { %633 = vmatprep.subr.bf16.mxu0 %v683_v6  ;;  %661 = vmatprep.subr.bf16.mxu1 %v683_v6 }
  0x49   :  { %634 = vmatpush3.bf16.msra.mxu0 %v683_v6  ;;  %669 = vmatpush3.bf16.msra.mxu1 %v683_v6 }
  0x4a   :  { %635 = vmatprep.subr.bf16.mxu0 %v684_v7  ;;  %662 = vmatprep.subr.bf16.mxu1 %v684_v7 }
  0x4d   :  { %636 = vmatpush3.bf16.msra.mxu0 %v684_v7  ;;  %670 = vmatpush3.bf16.msra.mxu1 %v684_v7 }
  0x4e   :  { %637 = vmatprep.subr.bf16.mxu0 %v685_v8  ;;  %663 = vmatprep.subr.bf16.mxu1 %v685_v8 }
  0x51   :  { %638 = vmatpush3.bf16.msra.mxu0 %v685_v8  ;;  %671 = vmatpush3.bf16.msra.mxu1 %v685_v8 }
  0x52   :  { %639 = vmatprep.subr.bf16.mxu0 %v686_v9  ;;  %664 = vmatprep.subr.bf16.mxu1 %v686_v9 }
  0x55   :  { %640 = vmatpush3.bf16.msra.mxu0 %v686_v9  ;;  %672 = vmatpush3.bf16.msra.mxu1 %v686_v9 }
  0x58   :  { %642 = vmatmul.mubr.bf16.vlgmr.msra.gmra.mrb[0].mxu0 %v689_v10  ;;  %650 = vmatmul.mubr.bf16.vlgmr.msra.gmra.mrb[0].mxu1 %v690_v11 }
  0x59   :  { %645 = vmatprep.mubr.bf16.mxu0 %v691_v12  ;;  %653 = vmatprep.mubr.bf16.mxu1 %v692_v13 }
  0x60   :  { %646 = vmatmul.mubr.bf16.gmra.mrb[4].mxu0 %v693_v14  ;;  %654 = vmatmul.mubr.bf16.gmra.mrb[4].mxu1 %v694_v15 }
 0x12b   :  { %v643_v17 = vpop.f32.mrb[0].mxu0  ;;  %v651_v18 = vpop.f32.mrb[0].mxu1 }
 0x12c   :  { %v931_v19 = vadd.f32 %v643_v17, %v928_v16  ;;  %v934_v20 = vadd.f32 %v651_v18, %v928_v16  ;;  %v224_v21 = vpop.f32.mrb[1].mxu0  ;;  %v256_v22 = vpop.f32.mrb[1].mxu1 }
 0x12d   :  { %v937_v23 = vadd.f32 %v928_v16, %v224_v21  ;;  %v940_v24 = vadd.f32 %v928_v16, %v256_v22  ;;  %v644_v25 = vpop.f32.mrb[2].mxu0  ;;  %v652_v26 = vpop.f32.mrb[2].mxu1 }
 0x12e   :  { %v516_v27 = vmul.f32 -1.442695, %v931_v19  ;;  %v524_v28 = vmul.f32 -1.442695, %v934_v20  ;;  %v945_v29 = vadd.f32 %v644_v25, %v928_v16  ;;  %v948_v30 = vadd.f32 %v652_v26, %v928_v16  ;;  %v227_v31 = vpop.f32.mrb[3].mxu0  ;;  %v259_v32 = vpop.f32.mrb[3].mxu1 }
 0x12f   :  { %v514_v33 = vmul.f32 -1.442695, %v937_v23  ;;  %v522_v34 = vmul.f32 -1.442695, %v940_v24  ;;  %v953_v35 = vadd.f32 %v928_v16, %v227_v31  ;;  %v956_v36 = vadd.f32 %v928_v16, %v259_v32 }
 0x130   :  { %695 = vpow2.f32 %v516_v27  ;;  %v517_v37 = vmul.f32 -1.442695, %v945_v29  ;;  %v525_v38 = vmul.f32 -1.442695, %v948_v30 }
 0x131   :  { %697 = vpow2.f32 %v524_v28  ;;  %v515_v39 = vmul.f32 -1.442695, %v953_v35  ;;  %v523_v40 = vmul.f32 -1.442695, %v956_v36 }
 0x132   :  { %699 = vpow2.f32 %v514_v33 }
 0x133   :  { %701 = vpow2.f32 %v522_v34  ;;  %v647_v41 = vpop.f32.mrb[4].mxu0  ;;  %v655_v42 = vpop.f32.mrb[4].mxu1 }
 0x134   :  { %703 = vpow2.f32 %v517_v37  ;;  %v963_v43 = vadd.f32 %v647_v41, %v928_v16  ;;  %v966_v44 = vadd.f32 %v655_v42, %v928_v16  ;;  %v240_v45 = vpop.f32.mrb[5].mxu0  ;;  %v272_v46 = vpop.f32.mrb[5].mxu1 }
 0x135   :  { %705 = vpow2.f32 %v525_v38  ;;  %v969_v47 = vadd.f32 %v928_v16, %v240_v45  ;;  %v648_v48 = vpop.f32.mrb[6].mxu0  ;;  %v656_v49 = vpop.f32.mrb[6].mxu1  ;;  %v979_v0 = vadd.f32 %v928_v16, %v272_v46 }
 0x136   :  { %707 = vpow2.f32 %v515_v39  ;;  %v520_v50 = vmul.f32 -1.442695, %v963_v43  ;;  %v528_v51 = vmul.f32 -1.442695, %v966_v44  ;;  %v974_v52 = vadd.f32 %v648_v48, %v928_v16  ;;  %v243_v53 = vpop.f32.mrb[7].mxu0  ;;  %v275_v54 = vpop.f32.mrb[7].mxu1 }
 0x137   :  { %709 = vpow2.f32 %v523_v40  ;;  %v518_v55 = vmul.f32 -1.442695, %v969_v47  ;;  %v526_v9 = vmul.f32 -1.442695, %v979_v0  ;;  %v983_v12 = vadd.f32 %v656_v49, %v928_v16 }
 0x138   :  { %711 = vpow2.f32 %v520_v50  ;;  %v521_v56 = vmul.f32 -1.442695, %v974_v52  ;;  %v986_v14 = vadd.f32 %v928_v16, %v243_v53  ;;  %v989_v17 = vadd.f32 %v928_v16, %v275_v54 }
 0x139   :  { %713 = vpow2.f32 %v528_v51  ;;  %v529_v22 = vmul.f32 -1.442695, %v983_v12 }
 0x13a   :  { %v696_v57 = vpop.eup %695  ;;  %715 = vpow2.f32 %v518_v55  ;;  %v519_v27 = vmul.f32 -1.442695, %v986_v14  ;;  %v527_v31 = vmul.f32 -1.442695, %v989_v17 }
 0x13b   :  { %v698_v58 = vpop.eup %697  ;;  %v337_v59 = vadd.f32 1.0, %v696_v57  ;;  %717 = vpow2.f32 %v521_v56 }
 0x13c   :  { %v700_v60 = vpop.eup %699  ;;  %v345_v61 = vadd.f32 1.0, %v698_v58 }
 0x13d   :  { %v702_v62 = vpop.eup %701  ;;  %719 = vrcp.f32 %v337_v59  ;;  %v335_v63 = vadd.f32 1.0, %v700_v60 }
 0x13e   :  { %v704_v1 = vpop.eup %703  ;;  %721 = vrcp.f32 %v345_v61  ;;  %v343_v2 = vadd.f32 1.0, %v702_v62 }
 0x13f   :  { %v706_v3 = vpop.eup %705  ;;  %723 = vrcp.f32 %v335_v63  ;;  %v338_v4 = vadd.f32 1.0, %v704_v1 }
 0x140   :  { %v708_v5 = vpop.eup %707  ;;  %725 = vrcp.f32 %v343_v2  ;;  %v346_v6 = vadd.f32 1.0, %v706_v3 }
 0x141   :  { %v710_v7 = vpop.eup %709  ;;  %727 = vrcp.f32 %v338_v4  ;;  %v336_v8 = vadd.f32 1.0, %v708_v5 }
 0x142   :  { %v712_v10 = vpop.eup %711  ;;  %729 = vrcp.f32 %v346_v6  ;;  %v344_v11 = vadd.f32 1.0, %v710_v7 }
 0x143   :  { %731 = vrcp.f32 %v336_v8  ;;  %v341_v13 = vadd.f32 1.0, %v712_v10  ;;  %v714_v15 = vpop.eup %713 }
 0x144   :  { %733 = vrcp.f32 %v344_v11  ;;  %v716_v18 = vpop.eup %715  ;;  %v349_v53 = vadd.f32 1.0, %v714_v15 }
 0x145   :  { %735 = vpow2.f32 %v526_v9  ;;  %v718_v21 = vpop.eup %717  ;;  %v339_v55 = vadd.f32 1.0, %v716_v18 }
 0x146   :  { %737 = vrcp.f32 %v341_v13  ;;  %v342_v26 = vadd.f32 1.0, %v718_v21 }
 0x147   :  { %v720_v25 = vpop.eup %719 }
 0x148   :  { %v722_v28 = vpop.eup %721  ;;  %739 = vrcp.f32 %v342_v26  ;;  %v385_v37 = vmul.f32 %v720_v25, %v931_v19 }
 0x149   :  { %v724_v32 = vpop.eup %723  ;;  %741 = vpow2.f32 %v529_v22  ;;  %v393_v40 = vmul.f32 %v722_v28, %v934_v20 }
 0x14a   :  { %v726_v33 = vpop.eup %725  ;;  %743 = vpow2.f32 %v519_v27  ;;  %v383_v45 = vmul.f32 %v724_v32, %v937_v23 }
 0x14b   :  { %v728_v34 = vpop.eup %727  ;;  %745 = vpow2.f32 %v527_v31  ;;  %v391_v50 = vmul.f32 %v726_v33, %v940_v24 }
 0x14c   :  { %v730_v16 = vpop.eup %729  ;;  %v386_v38 = vmul.f32 %v728_v34, %v945_v29  ;;  %747 = vrcp.f32 %v349_v53 }
 0x14d   :  { %v732_v39 = vpop.eup %731  ;;  %v394_v41 = vmul.f32 %v730_v16, %v948_v30  ;;  %749 = vrcp.f32 %v339_v55 }
 0x14e   :  { %v734_v42 = vpop.eup %733  ;;  %v570_v46 = vpack.c.bf16 %v386_v38, %v385_v37  ;;  %v384_v48 = vmul.f32 %v732_v39, %v953_v35 }
 0x14f   :  { %v736_v49 = vpop.eup %735  ;;  %v590_v51 = vpack.c.bf16 %v394_v41, %v393_v40  ;;  %v392_v19 = vmul.f32 %v734_v42, %v956_v36 }
 0x150   :  { %602 = vst [vmem:[#allocation8 + $0x8] sm:$0xff] %v570_v46   ;;  %v565_v29 = vpack.c.bf16 %v384_v48, %v383_v45  ;;  %v738_v54 = vpop.eup %737  ;;  %v347_v30 = vadd.f32 1.0, %v736_v49 }
 0x151   :  { %606 = vst [vmem:[#allocation8 + $0x28] sm:$0xff] %v590_v51   ;;  %v585_v20 = vpack.c.bf16 %v392_v19, %v391_v50  ;;  %v389_v35 = vmul.f32 %v738_v54, %v963_v43 }
 0x152   :  { %566 = vst [vmem:[#allocation8] sm:$0xff] %v565_v29   ;;  %v740_v56 = vpop.eup %739  ;;  %751 = vrcp.f32 %v347_v30 }
 0x153   :  { %605 = vst [vmem:[#allocation8 + $0x20] sm:$0xff] %v585_v20   ;;  %v742_v23 = vpop.eup %741  ;;  %v390_v24 = vmul.f32 %v740_v56, %v974_v52 }
 0x154   :  { %v744_v57 = vpop.eup %743  ;;  %v350_v36 = vadd.f32 1.0, %v742_v23 }
 0x155   :  { %v746_v58 = vpop.eup %745  ;;  %v580_v59 = vpack.c.bf16 %v390_v24, %v389_v35  ;;  %v340_v60 = vadd.f32 1.0, %v744_v57 }
 0x156   :  { %753 = vrcp.f32 %v350_v36  ;;  %v348_v61 = vadd.f32 1.0, %v746_v58  ;;  %v748_v62 = vpop.eup %747 }
 0x157   :  { %604 = vst [vmem:[#allocation8 + $0x18] sm:$0xff] %v580_v59   ;;  %755 = vrcp.f32 %v340_v60  ;;  %v750_v63 = vpop.eup %749  ;;  %v397_v3 = vmul.f32 %v748_v62, %v966_v44 }
 0x158   :  { %757 = vrcp.f32 %v348_v61  ;;  %v387_v5 = vmul.f32 %v750_v63, %v969_v47 }
 0x15c   :  { %v752_v1 = vpop.eup %751 }
 0x15d   :  { %v395_v7 = vmul.f32 %v752_v1, %v979_v0 }
 0x160   :  { %v754_v2 = vpop.eup %753 }
 0x161   :  { %v756_v43 = vpop.eup %755  ;;  %v398_v52 = vmul.f32 %v754_v2, %v983_v12 }
 0x162   :  { %v758_v4 = vpop.eup %757  ;;  %v388_v6 = vmul.f32 %v756_v43, %v986_v14 }
 0x163   :  { %v600_v8 = vpack.c.bf16 %v398_v52, %v397_v3  ;;  %v396_v9 = vmul.f32 %v758_v4, %v989_v17 }
 0x164   :  { %v575_v10 = vpack.c.bf16 %v388_v6, %v387_v5 }
 0x165   :  { %608 = vst [vmem:[#allocation8 + $0x38] sm:$0xff] %v600_v8   ;;  %v595_v11 = vpack.c.bf16 %v396_v9, %v395_v7 }
 0x166   :  { %603 = vst [vmem:[#allocation8 + $0x10] sm:$0xff] %v575_v10  }
 0x167   :  { %607 = vst [vmem:[#allocation8 + $0x30] sm:$0xff] %v595_v11  }
 0x168   :  { %836 = shalt.err (!%p833_p0)
}
 0x169   :  { %s837_s28 = scalar_lea.hbm %s1028_s3, 1024 }
 0x16a   :  { %p838_p1 = scmp.ne.s32.totalorder %s1028_s3, %s837_s28  ;;  %p841_p2 = scmp.lt.u32.totalorder %s837_s28, %s1028_s3 }
 0x16c   :  { %p843_p3 = pnand %p841_p2, %p838_p1 }
 0x16e   :  { %846 = shalt.err (!%p843_p3)
}
 0x16f   :  { %490 = dma.vmem_to_hbm [thread:$0]  %s485_s22, 1024, %s1028_s3, [#allocation4], %s855_s24, %s855_s24, %s856_s25  }
 0x170   :  { %851 = dma.done.wait [#allocation4], 1024  }
 0x171   :  { %852 = vsyncadd [#allocation4], 4294966272 }
 0x172   :  { %494 = vsyncpa [#allocation3], 1 }
 0x173   :  { %495 = vsyncpa [#allocation6], 1 }
 0x174   :  { %496 = vsyncpa [#allocation4], 1 }

// kernel: _lambda_.6
= control target key start
LH: loop header
LB: loop body
LE: loop exit
PB: predicated region body
PF: predicated region fallthrough
CT: control target
= control target key end

     0   :  { %8 = vsyncpa [#allocation3], 0  ;;  %s976_s0 = inlined_call_operand.hbm [shape: bf16[128,27], index: 0, kind: input, shape index: {}]   ;;  %s977_s1 = inlined_call_operand.hbm [shape: bf16[27,128], index: 1, kind: input, shape index: {}]   ;;  %s978_s2 = inlined_call_operand.hbm [shape: f32[1,128], index: 2, kind: input, shape index: {}]   ;;  %s979_s3 = inlined_call_operand.hbm [shape: bf16[128,128], index: 3, kind: output, shape index: {}]  }
   0x1   :  { %9 = vsyncpa [#allocation6], 0 }
   0x2   :  { %10 = vsyncpa [#allocation4], 0  ;;  %s795_s12 = smov [#allocation5]   ;;  %s796_s14 = smov [#allocation2]  }
   0x3   :  { %s28_s13 = sshll.u32 %s795_s12, 4  ;;  %s16_s15 = sshll.u32 %s796_s14, 4  ;;  %s29_s13 = int_to_ptr.vmem [resolvable:$true] %s28_s13  ;;  %s822_s15 = int_to_ptr.vmem [resolvable:$true] %s16_s15 }
   0x4   :  { %s701_s18 = scalar_lea.hbm %s977_s1, 256 }
   0x5   :  { %p702_p0 = scmp.ne.s32.totalorder %s977_s1, %s701_s18  ;;  %p705_p1 = scmp.lt.u32.totalorder %s701_s18, %s977_s1 }
   0x7   :  { %p707_p2 = pnand %p705_p1, %p702_p0 }
   0x9   :  { %710 = shalt.err (!%p707_p2)
}
   0xa   :  { %s711_s23 = scalar_lea.vmem %s29_s13, 256  ;;  %p716_p4 = scmp.lt.s32.totalorder %s29_s13, %s29_s13 }
   0xb   :  { %p712_p3 = scmp.ne.s32.totalorder %s29_s13, %s711_s23  ;;  %p717_p5 = scmp.lt.s32.totalorder %s711_s23, %s711_s23 }
   0xd   :  { %p718_p6 = por %p717_p5, %p716_p4 }
   0xf   :  { %p719_p7 = pnand %p718_p6, %p712_p3 }
  0x11   :  { %722 = shalt.err (!%p719_p7)
}
  0x12   :  { %s797_s24 = smov 64   ;;  %s798_s25 = smov 4  }
  0x13   :  { %34 = dma.hbm_to_vmem [thread:$0]  %s977_s1, 256, %s29_s13, [#allocation6], %s797_s24, %s797_s24, %s798_s25  }
  0x14   :  { %s723_s30 = scalar_lea.hbm %s976_s0, 1024 }
  0x15   :  { %p724_p8 = scmp.ne.s32.totalorder %s976_s0, %s723_s30  ;;  %p727_p9 = scmp.lt.u32.totalorder %s723_s30, %s976_s0 }
  0x17   :  { %p729_p10 = pnand %p727_p9, %p724_p8 }
  0x19   :  { %732 = shalt.err (!%p729_p10)
}
  0x1a   :  { %s733_s8 = scalar_lea.vmem %s822_s15, 1024  ;;  %p738_p12 = scmp.lt.s32.totalorder %s822_s15, %s822_s15 }
  0x1b   :  { %p734_p11 = scmp.ne.s32.totalorder %s822_s15, %s733_s8  ;;  %p739_p13 = scmp.lt.s32.totalorder %s733_s8, %s733_s8 }
  0x1d   :  { %p740_p0 = por %p739_p13, %p738_p12 }
  0x1f   :  { %p741_p1 = pnand %p740_p0, %p734_p11 }
  0x21   :  { %744 = shalt.err (!%p741_p1)
}
  0x22   :  { %22 = dma.hbm_to_vmem [thread:$0]  %s976_s0, 1024, %s822_s15, [#allocation3], %s797_s24, %s797_s24, %s798_s25  }
  0x23   :  { %s799_s10 = smov [#allocation7]   ;;  %s745_s14 = scalar_lea.hbm %s978_s2, 16 }
  0x24   :  { %s41_s11 = sshll.u32 %s799_s10, 4  ;;  %p746_p2 = scmp.ne.s32.totalorder %s978_s2, %s745_s14  ;;  %s42_s11 = int_to_ptr.vmem [resolvable:$true] %s41_s11 }
  0x25   :  { %p749_p3 = scmp.lt.u32.totalorder %s745_s14, %s978_s2 }
  0x27   :  { %p751_p4 = pnand %p749_p3, %p746_p2 }
  0x29   :  { %754 = shalt.err (!%p751_p4)
}
  0x2a   :  { %s755_s20 = scalar_lea.vmem %s42_s11, 16  ;;  %s759_s0 = scalar_lea.vmem %s42_s11, 32 }
  0x2b   :  { %p756_p5 = scmp.ne.s32.totalorder %s42_s11, %s755_s20  ;;  %p760_p6 = scmp.lt.s32.totalorder %s42_s11, %s42_s11 }
  0x2c   :  { %p761_p7 = scmp.lt.s32.totalorder %s759_s0, %s755_s20 }
  0x2e   :  { %p762_p8 = por %p761_p7, %p760_p6 }
  0x30   :  { %p763_p9 = pnand %p762_p8, %p756_p5 }
  0x32   :  { %766 = shalt.err (!%p763_p9)
}
  0x33   :  { %44 = dma.hbm_to_vmem [thread:$0]  %s978_s2, 16, %s42_s11, [#allocation6]  }
  0x34   :  { %789 = dma.done.wait [#allocation3], 1024  }
  0x35   :  { %790 = vsyncadd [#allocation3], 4294966272 }
  0x36   :  { %791 = dma.done.wait [#allocation6], 272  }
  0x37   :  { %792 = vsyncadd [#allocation6], 4294967024  ;;  %vm158_vm0 = vcmask 1044480   ;;  %vm159_vm1 = vcmask 1045504   ;;  %v800_v0 = vmov 65535   ;;  %vm133_vm2 = vcmask 220160  }
  0x38   :  { %v160_v1 = vsel %vm158_vm0, 4294967295, %v800_v0  ;;  %v627_v2 = vld [vmem:[#allocation5] sm:$0xff]   ;;  %v628_v4 = vld [vmem:[#allocation5 + $0x8] sm:$0x3f]   ;;  %v633_v10 = vld [vmem:[#allocation2 + $0x10] sm:$0xff]   ;;  %s801_s2 = smov [#allocation8]  }
  0x39   :  { %v161_v3 = vsel %vm159_vm1, %v160_v1, 0  ;;  %596 = vmatprep.subr.bf16.mxu0 %v627_v2  ;;  %616 = vmatprep.subr.bf16.mxu1 %v627_v2  ;;  %v629_v5 = vld [vmem:[#allocation2] sm:$0xff]   ;;  %v631_v8 = vld [vmem:[#allocation2 + $0x8] sm:$0xff]   ;;  %v634_v11 = vld [vmem:[#allocation2 + $0x30] sm:$0xff]   ;;  %s459_s22 = sshll.u32 %s801_s2, 4  ;;  %s460_s22 = int_to_ptr.vmem [resolvable:$true] %s459_s22 }
  0x3a   :  { %597 = vmatpush3.bf16.msra.mxu0 %v627_v2  ;;  %618 = vmatpush3.bf16.msra.mxu1 %v627_v2  ;;  %v163_v6 = vand.u32 %v628_v4, %v161_v3  ;;  %v630_v7 = vld [vmem:[#allocation2 + $0x20] sm:$0xff]   ;;  %v632_v9 = vld [vmem:[#allocation2 + $0x28] sm:$0xff]   ;;  %v635_v12 = vld [vmem:[#allocation2 + $0x18] sm:$0xff]   ;;  %s767_s23 = scalar_lea.vmem %s460_s22, 1024  ;;  %p772_p11 = scmp.lt.s32.totalorder %s460_s22, %s460_s22 }
  0x3b   :  { %600 = vmatprep.mubr.msk.bf16.mxu0 %vm133_vm2, %v629_v5  ;;  %608 = vmatprep.mubr.msk.bf16.mxu1 %vm133_vm2, %v630_v7  ;;  %v636_v13 = vld [vmem:[#allocation2 + $0x38] sm:$0xff]   ;;  %v879_v14 = vld [vmem:[#allocation7] ss:$0 sm:$0xff]  ;;  %p768_p10 = scmp.ne.s32.totalorder %s460_s22, %s767_s23  ;;  %p773_p12 = scmp.lt.s32.totalorder %s767_s23, %s767_s23 }
  0x3c   :  { %598 = vmatprep.subr.bf16.mxu0 %v163_v6  ;;  %617 = vmatprep.subr.bf16.mxu1 %v163_v6 }
  0x3d   :  { %p774_p13 = por %p773_p12, %p772_p11 }
  0x3e   :  { %599 = vmatpush3.bf16.msra.mxu0 %v163_v6  ;;  %619 = vmatpush3.bf16.msra.mxu1 %v163_v6 }
  0x3f   :  { %p775_p0 = pnand %p774_p13, %p768_p10 }
  0x41   :  { %601 = vmatmul.mubr.msk.bf16.vlgmr.msra.gmra.mrb[0].mxu0 %vm133_vm2, %v631_v8  ;;  %609 = vmatmul.mubr.msk.bf16.vlgmr.msra.gmra.mrb[0].mxu1 %vm133_vm2, %v632_v9 }
  0x42   :  { %604 = vmatprep.mubr.msk.bf16.mxu0 %vm133_vm2, %v633_v10  ;;  %612 = vmatprep.mubr.msk.bf16.mxu1 %vm133_vm2, %v634_v11 }
  0x49   :  { %605 = vmatmul.mubr.msk.bf16.gmra.mrb[4].mxu0 %vm133_vm2, %v635_v12  ;;  %613 = vmatmul.mubr.msk.bf16.gmra.mrb[4].mxu1 %vm133_vm2, %v636_v13 }
 0x114   :  { %v602_v15 = vpop.f32.mrb[0].mxu0  ;;  %v610_v16 = vpop.f32.mrb[0].mxu1 }
 0x115   :  { %v882_v17 = vadd.f32 %v602_v15, %v879_v14  ;;  %v885_v18 = vadd.f32 %v610_v16, %v879_v14  ;;  %v199_v19 = vpop.f32.mrb[1].mxu0  ;;  %v231_v20 = vpop.f32.mrb[1].mxu1 }
 0x116   :  { %v888_v21 = vadd.f32 %v879_v14, %v199_v19  ;;  %v891_v22 = vadd.f32 %v879_v14, %v231_v20  ;;  %v603_v23 = vpop.f32.mrb[2].mxu0  ;;  %v611_v24 = vpop.f32.mrb[2].mxu1 }
 0x117   :  { %v493_v25 = vmul.f32 -1.442695, %v882_v17  ;;  %v501_v26 = vmul.f32 -1.442695, %v885_v18  ;;  %v896_v27 = vadd.f32 %v603_v23, %v879_v14  ;;  %v899_v28 = vadd.f32 %v611_v24, %v879_v14  ;;  %v202_v29 = vpop.f32.mrb[3].mxu0  ;;  %v234_v30 = vpop.f32.mrb[3].mxu1 }
 0x118   :  { %v491_v31 = vmul.f32 -1.442695, %v888_v21  ;;  %v499_v32 = vmul.f32 -1.442695, %v891_v22  ;;  %v904_v33 = vadd.f32 %v879_v14, %v202_v29  ;;  %v907_v34 = vadd.f32 %v879_v14, %v234_v30 }
 0x119   :  { %637 = vpow2.f32 %v493_v25  ;;  %v494_v35 = vmul.f32 -1.442695, %v896_v27  ;;  %v502_v36 = vmul.f32 -1.442695, %v899_v28 }
 0x11a   :  { %639 = vpow2.f32 %v501_v26  ;;  %v492_v37 = vmul.f32 -1.442695, %v904_v33  ;;  %v500_v38 = vmul.f32 -1.442695, %v907_v34 }
 0x11b   :  { %641 = vpow2.f32 %v491_v31 }
 0x11c   :  { %643 = vpow2.f32 %v499_v32  ;;  %v606_v39 = vpop.f32.mrb[4].mxu0  ;;  %v614_v40 = vpop.f32.mrb[4].mxu1 }
 0x11d   :  { %645 = vpow2.f32 %v494_v35  ;;  %v914_v41 = vadd.f32 %v606_v39, %v879_v14  ;;  %v917_v42 = vadd.f32 %v614_v40, %v879_v14  ;;  %v215_v43 = vpop.f32.mrb[5].mxu0  ;;  %v247_v44 = vpop.f32.mrb[5].mxu1 }
 0x11e   :  { %647 = vpow2.f32 %v502_v36  ;;  %v920_v45 = vadd.f32 %v879_v14, %v215_v43  ;;  %v607_v46 = vpop.f32.mrb[6].mxu0  ;;  %v615_v47 = vpop.f32.mrb[6].mxu1  ;;  %v930_v62 = vadd.f32 %v879_v14, %v247_v44 }
 0x11f   :  { %649 = vpow2.f32 %v492_v37  ;;  %v497_v48 = vmul.f32 -1.442695, %v914_v41  ;;  %v505_v49 = vmul.f32 -1.442695, %v917_v42  ;;  %v925_v50 = vadd.f32 %v607_v46, %v879_v14  ;;  %v218_v51 = vpop.f32.mrb[7].mxu0  ;;  %v250_v52 = vpop.f32.mrb[7].mxu1 }
 0x120   :  { %651 = vpow2.f32 %v500_v38  ;;  %v495_v53 = vmul.f32 -1.442695, %v920_v45  ;;  %v503_v7 = vmul.f32 -1.442695, %v930_v62  ;;  %v934_v10 = vadd.f32 %v615_v47, %v879_v14 }
 0x121   :  { %653 = vpow2.f32 %v497_v48  ;;  %v498_v54 = vmul.f32 -1.442695, %v925_v50  ;;  %v937_v12 = vadd.f32 %v879_v14, %v218_v51  ;;  %v940_v15 = vadd.f32 %v879_v14, %v250_v52 }
 0x122   :  { %655 = vpow2.f32 %v505_v49  ;;  %v506_v20 = vmul.f32 -1.442695, %v934_v10 }
 0x123   :  { %v638_v55 = vpop.eup %637  ;;  %657 = vpow2.f32 %v495_v53  ;;  %v496_v25 = vmul.f32 -1.442695, %v937_v12  ;;  %v504_v29 = vmul.f32 -1.442695, %v940_v15 }
 0x124   :  { %v640_v56 = vpop.eup %639  ;;  %v312_v57 = vadd.f32 1.0, %v638_v55  ;;  %659 = vpow2.f32 %v498_v54 }
 0x125   :  { %v642_v58 = vpop.eup %641  ;;  %v320_v59 = vadd.f32 1.0, %v640_v56 }
 0x126   :  { %v644_v60 = vpop.eup %643  ;;  %661 = vrcp.f32 %v312_v57  ;;  %v310_v61 = vadd.f32 1.0, %v642_v58 }
 0x127   :  { %v646_v63 = vpop.eup %645  ;;  %663 = vrcp.f32 %v320_v59  ;;  %v318_v0 = vadd.f32 1.0, %v644_v60 }
 0x128   :  { %v648_v1 = vpop.eup %647  ;;  %665 = vrcp.f32 %v310_v61  ;;  %v313_v2 = vadd.f32 1.0, %v646_v63 }
 0x129   :  { %v650_v3 = vpop.eup %649  ;;  %667 = vrcp.f32 %v318_v0  ;;  %v321_v4 = vadd.f32 1.0, %v648_v1 }
 0x12a   :  { %v652_v5 = vpop.eup %651  ;;  %669 = vrcp.f32 %v313_v2  ;;  %v311_v6 = vadd.f32 1.0, %v650_v3 }
 0x12b   :  { %v654_v8 = vpop.eup %653  ;;  %671 = vrcp.f32 %v321_v4  ;;  %v319_v9 = vadd.f32 1.0, %v652_v5 }
 0x12c   :  { %673 = vrcp.f32 %v311_v6  ;;  %v316_v11 = vadd.f32 1.0, %v654_v8  ;;  %v656_v13 = vpop.eup %655 }
 0x12d   :  { %675 = vrcp.f32 %v319_v9  ;;  %v658_v16 = vpop.eup %657  ;;  %v324_v51 = vadd.f32 1.0, %v656_v13 }
 0x12e   :  { %677 = vpow2.f32 %v503_v7  ;;  %v660_v19 = vpop.eup %659  ;;  %v314_v53 = vadd.f32 1.0, %v658_v16 }
 0x12f   :  { %679 = vrcp.f32 %v316_v11  ;;  %v317_v24 = vadd.f32 1.0, %v660_v19 }
 0x130   :  { %v662_v23 = vpop.eup %661 }
 0x131   :  { %v664_v26 = vpop.eup %663  ;;  %681 = vrcp.f32 %v317_v24  ;;  %v360_v35 = vmul.f32 %v662_v23, %v882_v17 }
 0x132   :  { %v666_v30 = vpop.eup %665  ;;  %683 = vpow2.f32 %v506_v20  ;;  %v368_v38 = vmul.f32 %v664_v26, %v885_v18 }
 0x133   :  { %v668_v31 = vpop.eup %667  ;;  %685 = vpow2.f32 %v496_v25  ;;  %v358_v43 = vmul.f32 %v666_v30, %v888_v21 }
 0x134   :  { %v670_v32 = vpop.eup %669  ;;  %687 = vpow2.f32 %v504_v29  ;;  %v366_v48 = vmul.f32 %v668_v31, %v891_v22 }
 0x135   :  { %v672_v14 = vpop.eup %671  ;;  %v361_v36 = vmul.f32 %v670_v32, %v896_v27  ;;  %689 = vrcp.f32 %v324_v51 }
 0x136   :  { %v674_v37 = vpop.eup %673  ;;  %v369_v39 = vmul.f32 %v672_v14, %v899_v28  ;;  %691 = vrcp.f32 %v314_v53 }
 0x137   :  { %v676_v40 = vpop.eup %675  ;;  %v547_v44 = vpack.c.bf16 %v361_v36, %v360_v35  ;;  %v359_v46 = vmul.f32 %v674_v37, %v904_v33 }
 0x138   :  { %v678_v47 = vpop.eup %677  ;;  %v567_v49 = vpack.c.bf16 %v369_v39, %v368_v38  ;;  %v367_v17 = vmul.f32 %v676_v40, %v907_v34 }
 0x139   :  { %579 = vst [vmem:[#allocation8 + $0x8] sm:$0xff] %v547_v44   ;;  %v542_v27 = vpack.c.bf16 %v359_v46, %v358_v43  ;;  %v680_v52 = vpop.eup %679  ;;  %v322_v28 = vadd.f32 1.0, %v678_v47 }
 0x13a   :  { %583 = vst [vmem:[#allocation8 + $0x28] sm:$0xff] %v567_v49   ;;  %v562_v18 = vpack.c.bf16 %v367_v17, %v366_v48  ;;  %v364_v33 = vmul.f32 %v680_v52, %v914_v41 }
 0x13b   :  { %543 = vst [vmem:[#allocation8] sm:$0xff] %v542_v27   ;;  %v682_v54 = vpop.eup %681  ;;  %693 = vrcp.f32 %v322_v28 }
 0x13c   :  { %582 = vst [vmem:[#allocation8 + $0x20] sm:$0xff] %v562_v18   ;;  %v684_v21 = vpop.eup %683  ;;  %v365_v22 = vmul.f32 %v682_v54, %v925_v50 }
 0x13d   :  { %v686_v55 = vpop.eup %685  ;;  %v325_v34 = vadd.f32 1.0, %v684_v21 }
 0x13e   :  { %v688_v56 = vpop.eup %687  ;;  %v557_v57 = vpack.c.bf16 %v365_v22, %v364_v33  ;;  %v315_v58 = vadd.f32 1.0, %v686_v55 }
 0x13f   :  { %695 = vrcp.f32 %v325_v34  ;;  %v323_v59 = vadd.f32 1.0, %v688_v56  ;;  %v690_v60 = vpop.eup %689 }
 0x140   :  { %581 = vst [vmem:[#allocation8 + $0x18] sm:$0xff] %v557_v57   ;;  %697 = vrcp.f32 %v315_v58  ;;  %v692_v61 = vpop.eup %691  ;;  %v372_v1 = vmul.f32 %v690_v60, %v917_v42 }
 0x141   :  { %699 = vrcp.f32 %v323_v59  ;;  %v362_v3 = vmul.f32 %v692_v61, %v920_v45 }
 0x145   :  { %v694_v63 = vpop.eup %693 }
 0x146   :  { %v370_v5 = vmul.f32 %v694_v63, %v930_v62 }
 0x149   :  { %v696_v0 = vpop.eup %695 }
 0x14a   :  { %v698_v41 = vpop.eup %697  ;;  %v373_v50 = vmul.f32 %v696_v0, %v934_v10 }
 0x14b   :  { %v700_v2 = vpop.eup %699  ;;  %v363_v4 = vmul.f32 %v698_v41, %v937_v12 }
 0x14c   :  { %v577_v6 = vpack.c.bf16 %v373_v50, %v372_v1  ;;  %v371_v7 = vmul.f32 %v700_v2, %v940_v15 }
 0x14d   :  { %v552_v8 = vpack.c.bf16 %v363_v4, %v362_v3 }
 0x14e   :  { %585 = vst [vmem:[#allocation8 + $0x38] sm:$0xff] %v577_v6   ;;  %v572_v9 = vpack.c.bf16 %v371_v7, %v370_v5 }
 0x14f   :  { %580 = vst [vmem:[#allocation8 + $0x10] sm:$0xff] %v552_v8  }
 0x150   :  { %584 = vst [vmem:[#allocation8 + $0x30] sm:$0xff] %v572_v9  }
 0x151   :  { %778 = shalt.err (!%p775_p0)
}
 0x152   :  { %s779_s28 = scalar_lea.hbm %s979_s3, 1024 }
 0x153   :  { %p780_p1 = scmp.ne.s32.totalorder %s979_s3, %s779_s28  ;;  %p783_p2 = scmp.lt.u32.totalorder %s779_s28, %s979_s3 }
 0x155   :  { %p785_p3 = pnand %p783_p2, %p780_p1 }
 0x157   :  { %788 = shalt.err (!%p785_p3)
}
 0x158   :  { %465 = dma.vmem_to_hbm [thread:$0]  %s460_s22, 1024, %s979_s3, [#allocation4], %s797_s24, %s797_s24, %s798_s25  }
 0x159   :  { %793 = dma.done.wait [#allocation4], 1024  }
 0x15a   :  { %794 = vsyncadd [#allocation4], 4294966272 }
 0x15b   :  { %469 = vsyncpa [#allocation3], 1 }
 0x15c   :  { %470 = vsyncpa [#allocation6], 1 }
 0x15d   :  { %471 = vsyncpa [#allocation4], 1 }

// kernel: _lambda_.7
= control target key start
LH: loop header
LB: loop body
LE: loop exit
PB: predicated region body
PF: predicated region fallthrough
CT: control target
= control target key end

     0   :  { %s3727_s0 = inlined_call_operand.hbm [shape: bf16[2,10,10,128], index: 0, kind: input, shape index: {}]   ;;  %s3728_s1 = inlined_call_operand.hbm [shape: f32[9,1,128], index: 1, kind: input, shape index: {}]   ;;  %s3729_s2 = inlined_call_operand.hbm [shape: f32[1,128], index: 2, kind: input, shape index: {}]   ;;  %s3730_s3 = inlined_call_operand.hbm [shape: bf16[128,128], index: 3, kind: input, shape index: {}]   ;;  %s3731_s4 = inlined_call_operand.hbm [shape: f32[1,128], index: 4, kind: input, shape index: {}]   ;;  %s3732_s5 = inlined_call_operand.hbm [shape: bf16[128,128], index: 5, kind: input, shape index: {}]   ;;  %s3733_s6 = inlined_call_operand.hbm [shape: f32[1,128], index: 6, kind: input, shape index: {}]   ;;  %s3734_s7 = inlined_call_operand.hbm [shape: bf16[128,128], index: 7, kind: input, shape index: {}]   ;;  %s3735_s8 = inlined_call_operand.hbm [shape: f32[1,128], index: 8, kind: input, shape index: {}]   ;;  %s3736_s9 = inlined_call_operand.hbm [shape: bf16[2,64,128], index: 9, kind: input, shape index: {}]   ;;  %s3737_s10 = inlined_call_operand.hbm [shape: bf16[2,64,128], index: 10, kind: output, shape index: {}]  }
   0x1   :  { %3747 = sst [smem:[#allocation28_spill]] %s3727_s0 }
   0x2   :  { %3748 = sst [smem:[#allocation29_spill]] %s3728_s1 }
   0x3   :  { %3749 = sst [smem:[#allocation30_spill]] %s3729_s2 }
   0x4   :  { %3750 = sst [smem:[#allocation31_spill]] %s3730_s3 }
   0x5   :  { %3751 = sst [smem:[#allocation32_spill]] %s3731_s4 }
   0x6   :  { %3752 = sst [smem:[#allocation33_spill]] %s3737_s10 }
   0x7   :  { %15 = vsyncpa [#allocation3], 0 }
   0x8   :  { %17 = vsyncpa [#allocation3 + $0x1], 0 }
   0x9   :  { %18 = vsyncpa [#allocation6], 0 }
   0xa   :  { %19 = vsyncpa [#allocation9], 0 }
   0xb   :  { %20 = vsyncpa [#allocation12], 0 }
   0xc   :  { %21 = vsyncpa [#allocation15], 0 }
   0xd   :  { %22 = vsyncpa [#allocation18], 0 }
   0xe   :  { %24 = vsyncpa [#allocation18 + $0x1], 0 }
   0xf   :  { %25 = vsyncpa [#allocation4], 0 }
  0x10   :  { %27 = vsyncpa [#allocation4 + $0x1], 0  ;;  %s2869_s13 = smov 0   ;;  %s2871_s14 = smov 0  }
  0x11   :  { %s2873_s15 = smov 0   ;;  %s2875_s16 = smov 0  }
  0x12 LB: > { %s2795_s17 = smov [#allocation5]   ;;  %s2890_s19 = sadd.s32 4294967295, %s2793_s16   ;;  %s2793_s16 = sphi %s2875_s16, %s3786_s16   ;;  %s2789_s15 = sphi %s2873_s15, %s3785_s15   ;;  %s2785_s14 = sphi %s2871_s14, %s3784_s14   ;;  %s2781_s13 = sphi %s2869_s13, %s3783_s13  }
  0x13   : > { %s296_s18 = sshll.u32 %s2795_s17, 4  ;;  %p1939_p0 = scmp.ge.s32.totalorder %s2793_s16, 1  ;;  %s2895_s18 = int_to_ptr.vmem [resolvable:$true] %s296_s18 }
  0x14   : > { %p3740_p1 = scmp.eq.s32.totalorder %s2890_s19, 0  ;;  %p284_p2 = scmp.lt.s32.totalorder %s2793_s16, 3 }
  0x15   : > { %s2796_s21 = smov [#allocation8]   ;;  %s2797_s24 = smov [#allocation11]  }
  0x16   : > { %p2897_p3 = pnand %p1939_p0, %p284_p2  ;;  %s320_s22 = sshll.u32 %s2796_s21, 4  ;;  %s2910_s22 = int_to_ptr.vmem [resolvable:$true] %s320_s22 }
  0x17   : > { %s2912_s25 = sshll.u32 %s2797_s24, 4  ;;  %s3756_s1 = sld [smem:[#allocation29_spill]]  ;;  %s345_s25 = int_to_ptr.vmem [resolvable:$true] %s2912_s25 }
  0x18   : > { %s3753_s20 = scalar_select %p2897_p3, 1, 0 }
  0x19   : > { %p2257_p5 = pneg %p2897_p3 }
  0x1a   : > { %3754 = sst [smem:[#allocation27_spill]] %s3753_s20 }
  0x1b   : > { %p2906_p6 = pnand %p2257_p5, %p3740_p1 }
  0x1d   : > { %s2423_s28 = scalar_lea.hbm %s3756_s1, 144  ;;  %p2922_p8 = pneg %p2906_p6 }
  0x1e   : > { %p2424_p7 = scmp.ne.s32.totalorder %s3756_s1, %s2423_s28  ;;  %p2430_p11 = scmp.lt.u32.totalorder %s2423_s28, %s3756_s1 }
  0x20   : > { %p2426_p9 = pnand %p2922_p8, %p2424_p7 }
  0x22   : > { %p2427_p10 = pneg %p2426_p9 }
  0x24   : > { %p2432_p12 = pnand %p2430_p11, %p2427_p10 }
  0x26   : > { %2435 = shalt.err (!%p2432_p12)
}
  0x27   : > { %s2436_s21 = scalar_lea.vmem %s2895_s18, 144  ;;  %s2443_s24 = scalar_lea.vmem %s2895_s18, 160 }
  0x28   : > { %p2437_p13 = scmp.ne.s32.totalorder %s2895_s18, %s2436_s21  ;;  %p2444_p5 = scmp.lt.s32.totalorder %s2895_s18, %s2895_s18 }
  0x29   : > { %p2445_p7 = scmp.lt.s32.totalorder %s2443_s24, %s2436_s21 }
  0x2a   : > { %p2439_p0 = pnand %p2437_p13, %p2922_p8 }
  0x2b   : > { %p2446_p9 = por %p2445_p7, %p2444_p5 }
  0x2c   : > { %p2440_p2 = pneg %p2439_p0 }
  0x2e   : > { %p2447_p4 = pnand %p2446_p9, %p2440_p2 }
  0x30   : > { %2450 = shalt.err (!%p2447_p4)
}
  0x31   : > { %s2798_s26 = smov 16   ;;  %s2799_s27 = smov 1  }
  0x32   : > { %2260 = dma.hbm_to_vmem [thread:$0]  (!%p2906_p6), %s3756_s1, 144, %s2895_s18, [#allocation6], %s2798_s26, %s2798_s26, %s2799_s27  }
  0x33   : > { %s3758_s3 = sld [smem:[#allocation31_spill]] }
  0x39   : > { %s2451_s17 = scalar_lea.hbm %s3758_s3, 1024 }
  0x3a   : > { %p2452_p10 = scmp.ne.s32.totalorder %s3758_s3, %s2451_s17  ;;  %p2458_p12 = scmp.lt.u32.totalorder %s2451_s17, %s3758_s3 }
  0x3c   : > { %p2454_p4 = pnand %p2452_p10, %p2922_p8 }
  0x3e   : > { %p2455_p11 = pneg %p2454_p4 }
  0x40   : > { %p2460_p13 = pnand %p2458_p12, %p2455_p11 }
  0x42   : > { %2463 = shalt.err (!%p2460_p13)
}
  0x43   : > { %s2464_s18 = scalar_lea.vmem %s2910_s22, 1024  ;;  %p2472_p7 = scmp.lt.s32.totalorder %s2910_s22, %s2910_s22 }
  0x44   : > { %p2465_p0 = scmp.ne.s32.totalorder %s2910_s22, %s2464_s18  ;;  %p2473_p9 = scmp.lt.s32.totalorder %s2464_s18, %s2464_s18 }
  0x46   : > { %p2467_p2 = pnand %p2465_p0, %p2922_p8  ;;  %p2474_p10 = por %p2473_p9, %p2472_p7 }
  0x48   : > { %p2468_p5 = pneg %p2467_p2 }
  0x4a   : > { %p2475_p4 = pnand %p2474_p10, %p2468_p5 }
  0x4c   : > { %2478 = shalt.err (!%p2475_p4)
}
  0x4d   : > { %s3742_s10 = smov 64   ;;  %s3744_s20 = smov 4  }
  0x4e   : > { %2266 = dma.hbm_to_vmem [thread:$0]  (!%p2906_p6), %s3758_s3, 1024, %s2910_s22, [#allocation9], %s3742_s10, %s3742_s10, %s3744_s20  }
  0x4f   : > { %s2479_s30 = scalar_lea.hbm %s3732_s5, 1024 }
  0x50   : > { %p2480_p11 = scmp.ne.s32.totalorder %s3732_s5, %s2479_s30  ;;  %p2486_p0 = scmp.lt.u32.totalorder %s2479_s30, %s3732_s5 }
  0x52   : > { %p2482_p12 = pnand %p2480_p11, %p2922_p8 }
  0x54   : > { %p2483_p13 = pneg %p2482_p12 }
  0x56   : > { %p2488_p2 = pnand %p2486_p0, %p2483_p13 }
  0x58   : > { %2491 = shalt.err (!%p2488_p2)
}
  0x59   : > { %s2492_s18 = scalar_lea.vmem %s345_s25, 1024  ;;  %p2500_p10 = scmp.lt.s32.totalorder %s345_s25, %s345_s25 }
  0x5a   : > { %p2493_p5 = scmp.ne.s32.totalorder %s345_s25, %s2492_s18  ;;  %p2501_p4 = scmp.lt.s32.totalorder %s2492_s18, %s2492_s18 }
  0x5c   : > { %p2495_p7 = pnand %p2493_p5, %p2922_p8  ;;  %p2502_p1 = por %p2501_p4, %p2500_p10 }
  0x5e   : > { %p2496_p9 = pneg %p2495_p7 }
  0x60   : > { %p2503_p3 = pnand %p2502_p1, %p2496_p9 }
  0x62   : > { %2506 = shalt.err (!%p2503_p3)
}
  0x63   : > { %2272 = dma.hbm_to_vmem [thread:$0]  (!%p2906_p6), %s3732_s5, 1024, %s345_s25, [#allocation12], %s3742_s10, %s3742_s10, %s3744_s20  }
  0x64   : > { %s2802_s27 = smov [#allocation14]   ;;  %s2803_s29 = smov [#allocation7]  }
  0x65   : > { %s368_s28 = sshll.u32 %s2802_s27, 4  ;;  %s310_s30 = sshll.u32 %s2803_s29, 4  ;;  %s369_s28 = int_to_ptr.vmem [resolvable:$true] %s368_s28  ;;  %s311_s30 = int_to_ptr.vmem [resolvable:$true] %s310_s30 }
  0x66   : > { %s2507_s21 = scalar_lea.hbm %s3734_s7, 1024 }
  0x67   : > { %p2508_p1 = scmp.ne.s32.totalorder %s3734_s7, %s2507_s21  ;;  %p2514_p12 = scmp.lt.u32.totalorder %s2507_s21, %s3734_s7 }
  0x69   : > { %p2510_p3 = pnand %p2508_p1, %p2922_p8 }
  0x6b   : > { %p2511_p11 = pneg %p2510_p3 }
  0x6d   : > { %p2516_p13 = pnand %p2514_p12, %p2511_p11 }
  0x6f   : > { %2519 = shalt.err (!%p2516_p13)
}
  0x70   : > { %s2520_s25 = scalar_lea.vmem %s369_s28, 1024  ;;  %p2528_p7 = scmp.lt.s32.totalorder %s369_s28, %s369_s28 }
  0x71   : > { %p2521_p0 = scmp.ne.s32.totalorder %s369_s28, %s2520_s25  ;;  %p2529_p9 = scmp.lt.s32.totalorder %s2520_s25, %s2520_s25 }
  0x73   : > { %p2523_p2 = pnand %p2521_p0, %p2922_p8  ;;  %p2530_p10 = por %p2529_p9, %p2528_p7 }
  0x75   : > { %p2524_p5 = pneg %p2523_p2 }
  0x77   : > { %p2531_p4 = pnand %p2530_p10, %p2524_p5 }
  0x79   : > { %2534 = shalt.err (!%p2531_p4)
}
  0x7a   : > { %2278 = dma.hbm_to_vmem [thread:$0]  (!%p2906_p6), %s3734_s7, 1024, %s369_s28, [#allocation15], %s3742_s10, %s3742_s10, %s3744_s20  }
  0x7b   : > { %s3759_s2 = sld [smem:[#allocation30_spill]] }
  0x81   : > { %s2535_s12 = scalar_lea.hbm %s3759_s2, 16 }
  0x82   : > { %p2536_p1 = scmp.ne.s32.totalorder %s3759_s2, %s2535_s12  ;;  %p2542_p12 = scmp.lt.u32.totalorder %s2535_s12, %s3759_s2 }
  0x84   : > { %p2538_p3 = pnand %p2536_p1, %p2922_p8 }
  0x86   : > { %p2539_p11 = pneg %p2538_p3 }
  0x88   : > { %p2544_p13 = pnand %p2542_p12, %p2539_p11 }
  0x8a   : > { %2547 = shalt.err (!%p2544_p13)
}
  0x8b   : > { %s2548_s22 = scalar_lea.vmem %s311_s30, 16  ;;  %s2555_s28 = scalar_lea.vmem %s311_s30, 32 }
  0x8c   : > { %p2549_p0 = scmp.ne.s32.totalorder %s311_s30, %s2548_s22  ;;  %p2556_p7 = scmp.lt.s32.totalorder %s311_s30, %s311_s30 }
  0x8d   : > { %p2557_p9 = scmp.lt.s32.totalorder %s2555_s28, %s2548_s22 }
  0x8e   : > { %p2551_p2 = pnand %p2549_p0, %p2922_p8 }
  0x8f   : > { %p2558_p10 = por %p2557_p9, %p2556_p7 }
  0x90   : > { %p2552_p5 = pneg %p2551_p2 }
  0x92   : > { %p2559_p4 = pnand %p2558_p10, %p2552_p5 }
  0x94   : > { %2562 = shalt.err (!%p2559_p4)
}
  0x95   : > { %2263 = dma.hbm_to_vmem [thread:$0]  (!%p2906_p6), %s3759_s2, 16, %s311_s30, [#allocation6]  }
  0x96   : > { %s2804_s26 = smov [#allocation10]   ;;  %s2805_s29 = smov [#allocation13]  }
  0x97   : > { %s334_s27 = sshll.u32 %s2804_s26, 4  ;;  %s358_s12 = sshll.u32 %s2805_s29, 4  ;;  %s335_s27 = int_to_ptr.vmem [resolvable:$true] %s334_s27  ;;  %s359_s12 = int_to_ptr.vmem [resolvable:$true] %s358_s12 }
  0x98   : > { %s3760_s4 = sld [smem:[#allocation32_spill]] }
  0x9e   : > { %s2563_s24 = scalar_lea.hbm %s3760_s4, 16 }
  0x9f   : > { %p2564_p1 = scmp.ne.s32.totalorder %s3760_s4, %s2563_s24  ;;  %p2570_p12 = scmp.lt.u32.totalorder %s2563_s24, %s3760_s4 }
  0xa1   : > { %p2566_p3 = pnand %p2564_p1, %p2922_p8 }
  0xa3   : > { %p2567_p11 = pneg %p2566_p3 }
  0xa5   : > { %p2572_p13 = pnand %p2570_p12, %p2567_p11 }
  0xa7   : > { %2575 = shalt.err (!%p2572_p13)
}
  0xa8   : > { %s2576_s30 = scalar_lea.vmem %s335_s27, 16  ;;  %s2583_s1 = scalar_lea.vmem %s335_s27, 32 }
  0xa9   : > { %p2577_p0 = scmp.ne.s32.totalorder %s335_s27, %s2576_s30  ;;  %p2584_p7 = scmp.lt.s32.totalorder %s335_s27, %s335_s27 }
  0xaa   : > { %p2585_p9 = scmp.lt.s32.totalorder %s2583_s1, %s2576_s30 }
  0xab   : > { %p2579_p2 = pnand %p2577_p0, %p2922_p8 }
  0xac   : > { %p2586_p10 = por %p2585_p9, %p2584_p7 }
  0xad   : > { %p2580_p5 = pneg %p2579_p2 }
  0xaf   : > { %p2587_p4 = pnand %p2586_p10, %p2580_p5 }
  0xb1   : > { %2590 = shalt.err (!%p2587_p4)
}
  0xb2   : > { %2269 = dma.hbm_to_vmem [thread:$0]  (!%p2906_p6), %s3760_s4, 16, %s335_s27, [#allocation9]  }
  0xb3   : > { %s2591_s24 = scalar_lea.hbm %s3733_s6, 16 }
  0xb4   : > { %p2592_p1 = scmp.ne.s32.totalorder %s3733_s6, %s2591_s24  ;;  %p2598_p12 = scmp.lt.u32.totalorder %s2591_s24, %s3733_s6 }
  0xb6   : > { %p2594_p3 = pnand %p2592_p1, %p2922_p8 }
  0xb8   : > { %p2595_p11 = pneg %p2594_p3 }
  0xba   : > { %p2600_p13 = pnand %p2598_p12, %p2595_p11 }
  0xbc   : > { %2603 = shalt.err (!%p2600_p13)
}
  0xbd   : > { %s2604_s30 = scalar_lea.vmem %s359_s12, 16  ;;  %s2611_s27 = scalar_lea.vmem %s359_s12, 32 }
  0xbe   : > { %p2605_p0 = scmp.ne.s32.totalorder %s359_s12, %s2604_s30  ;;  %p2612_p7 = scmp.lt.s32.totalorder %s359_s12, %s359_s12 }
  0xbf   : > { %p2613_p9 = scmp.lt.s32.totalorder %s2611_s27, %s2604_s30 }
  0xc0   : > { %p2607_p2 = pnand %p2605_p0, %p2922_p8 }
  0xc1   : > { %p2614_p10 = por %p2613_p9, %p2612_p7 }
  0xc2   : > { %p2608_p5 = pneg %p2607_p2 }
  0xc4   : > { %p2615_p4 = pnand %p2614_p10, %p2608_p5 }
  0xc6   : > { %2618 = shalt.err (!%p2615_p4)
}
  0xc7   : > { %2275 = dma.hbm_to_vmem [thread:$0]  (!%p2906_p6), %s3733_s6, 16, %s359_s12, [#allocation12]  }
  0xc8   : > { %s2806_s29 = smov [#allocation16]   ;;  %s2619_s18 = scalar_lea.hbm %s3735_s8, 16 }
  0xc9   : > { %s382_s17 = sshll.u32 %s2806_s29, 4  ;;  %p2620_p1 = scmp.ne.s32.totalorder %s3735_s8, %s2619_s18  ;;  %s383_s17 = int_to_ptr.vmem [resolvable:$true] %s382_s17 }
  0xca   : > { %p2626_p12 = scmp.lt.u32.totalorder %s2619_s18, %s3735_s8 }
  0xcb   : > { %p2622_p3 = pnand %p2620_p1, %p2922_p8 }
  0xcd   : > { %p2623_p11 = pneg %p2622_p3 }
  0xcf   : > { %p2628_p13 = pnand %p2626_p12, %p2623_p11 }
  0xd1   : > { %2631 = shalt.err (!%p2628_p13)
}
  0xd2   : > { %s2632_s12 = scalar_lea.vmem %s383_s17, 16  ;;  %s2639_s27 = scalar_lea.vmem %s383_s17, 32 }
  0xd3   : > { %p2633_p0 = scmp.ne.s32.totalorder %s383_s17, %s2632_s12  ;;  %p2640_p7 = scmp.lt.s32.totalorder %s383_s17, %s383_s17 }
  0xd4   : > { %p2641_p9 = scmp.lt.s32.totalorder %s2639_s27, %s2632_s12 }
  0xd5   : > { %p2635_p2 = pnand %p2633_p0, %p2922_p8 }
  0xd6   : > { %p2642_p10 = por %p2641_p9, %p2640_p7 }
  0xd7   : > { %p2636_p5 = pneg %p2635_p2 }
  0xd9   : > { %p2643_p4 = pnand %p2642_p10, %p2636_p5 }
  0xdb   : > { %2646 = shalt.err (!%p2643_p4)
}
  0xdc   : > { %2281 = dma.hbm_to_vmem [thread:$0]  (!%p2906_p6), %s3735_s8, 16, %s383_s17, [#allocation15]  }
  0xdd   : > { %s1938_s11 = sadd.s32 4294967294, %s2793_s16   ;;  %s3087_s23 = sadd.s32 1, %s2793_s16  }
  0xde   : > { %s37_s29 = ssub.s32 %s2793_s16, %s3087_s23  ;;  %s40_s21 = sadd.s32 1, %s2789_s15 }
  0xdf   : > { %p38_p8 = scmp.eq.s32.totalorder %s37_s29, 0  ;;  %p47_p1 = scmp.ne.s32.totalorder %s2789_s15, %s2785_s14 }
  0xe0   : > { %p48_p3 = scmp.eq.s32.totalorder %s2793_s16, 0  ;;  %p53_p11 = scmp.ne.s32.totalorder %s2785_s14, %s2781_s13 }
  0xe1   : > { %s3098_s24 = scalar_select %p38_p8, %s2789_s15, %s40_s21  }
  0xe2   : > { %p49_p12 = por %p48_p3, %p47_p1  ;;  %p3761_p13 = scmp.eq.s32.totalorder %s2890_s19, 0 }
  0xe3   : > { %p271_p6 = scmp.eq.s32.totalorder %s2890_s19, 1  ;;  %p277_p2 = scmp.eq.s32.totalorder %s1938_s11, 1 }
  0xe4   : > { %p3102_p0 = por %p3761_p13, %p53_p11  ;;  %p2301_p5 = scmp.lt.s32.totalorder %s2793_s16, 2 }
  0xe5   : > { %s3109_s17 = sand.u32 1, %s2789_s15   ;;  %p3111_p7 = por %p271_p6, %p47_p1 }
  0xe6   : > { %p3115_p9 = por %p277_p2, %p53_p11  ;;  %s2216_s25 = smul.u32 80, %s3109_s17 }
  0xe7   : > { %s3763_s22 = scalar_select %p3111_p7, 1, 0 }
  0xe8   : > { %s3764_s28 = scalar_select %p3115_p9, 1, 0 }
  0xe9   : > { %s2217_s30 = smul.u32 1280, %s2793_s16  ;;  %p3121_p10 = pnand %p2301_p5, %p49_p12 }
  0xea   : > { %s3766_s0 = sld [smem:[#allocation28_spill]]  ;;  %s397_s11 = scalar_lea.vmem [#allocation2], %s2216_s25 }
  0xeb   : > { %s404_s29 = sshll.u32 %s397_s11, 4  ;;  %s394_s21 = scalar_lea.sflag [#allocation3], %s3109_s17  ;;  %s3130_s29 = int_to_ptr.vmem [resolvable:$true] %s404_s29 }
  0xec   : > { %p2649_p8 = pneg %p3121_p10 }
  0xf0   : > { %s3128_s26 = scalar_lea.hbm %s3766_s0, %s2217_s30  ;;  %s2652_s1 = scalar_lea.hbm %s3766_s0, 2560 }
  0xf1   : > { %s2647_s10 = scalar_lea.hbm %s3128_s26, 1280  ;;  %p2653_p11 = scmp.lt.u32.totalorder %s3128_s26, %s3766_s0 }
  0xf2   : > { %p2648_p4 = scmp.ne.s32.totalorder %s3128_s26, %s2647_s10  ;;  %p2654_p12 = scmp.lt.u32.totalorder %s2652_s1, %s2647_s10 }
  0xf3   : > { %p2656_p6 = scmp.lt.u32.totalorder %s2647_s10, %s3128_s26 }
  0xf4   : > { %p2650_p1 = pnand %p2649_p8, %p2648_p4  ;;  %p2655_p13 = por %p2654_p12, %p2653_p11 }
  0xf6   : > { %p2651_p3 = pneg %p2650_p1  ;;  %p2657_p2 = por %p2656_p6, %p2655_p13 }
  0xf8   : > { %p2658_p5 = pnand %p2657_p2, %p2651_p3 }
  0xfa   : > { %2661 = shalt.err (!%p2658_p5)
}
  0xfb   : > { %s2662_s25 = scalar_lea.vmem %s3130_s29, 1280  ;;  %s2807_s11 = smov [#allocation2]  }
  0xfc   : > { %p2663_p4 = scmp.ne.s32.totalorder %s3130_s29, %s2662_s25  ;;  %s2667_s27 = sshll.u32 %s2807_s11, 4  ;;  %s2668_s27 = int_to_ptr.vmem [resolvable:$false] %s2667_s27 }
  0xfd   : > { %s2669_s2 = scalar_lea.vmem %s2668_s27, 2560  ;;  %p2670_p7 = scmp.lt.s32.totalorder %s3130_s29, %s2668_s27 }
  0xfe   : > { %p2665_p1 = pnand %p2663_p4, %p2649_p8  ;;  %p2671_p11 = scmp.lt.s32.totalorder %s2669_s2, %s2662_s25 }
 0x100   : > { %p2666_p9 = pneg %p2665_p1  ;;  %p2672_p12 = por %p2671_p11, %p2670_p7 }
 0x102   : > { %p2673_p13 = pnand %p2672_p12, %p2666_p9 }
 0x104   : > { %2676 = shalt.err (!%p2673_p13)
}
 0x105   : > { %s3767_s10 = smov 4   ;;  %s3768_s20 = smov 64  }
 0x106   : > { %2285 = dma.hbm_to_vmem [thread:$0]  (!%p3121_p10), %s3128_s26, 1280, %s3130_s29, %s394_s21, %s3768_s20, %s3768_s20, %s3767_s10  }
 0x107   : > { %s1950_s30 = sshll.u32 %s3109_s17, 5  ;;  %s2070_s1 = sshll.u32 %s2793_s16, 9 }
 0x108   : > { %s3168_s27 = scalar_lea.hbm %s3736_s9, %s2070_s1  ;;  %s418_s2 = scalar_lea.vmem [#allocation17], %s1950_s30 }
 0x109   : > { %s425_s0 = sshll.u32 %s418_s2, 4  ;;  %s415_s3 = scalar_lea.sflag [#allocation18], %s3109_s17  ;;  %s3170_s0 = int_to_ptr.vmem [resolvable:$true] %s425_s0 }
 0x10a   : > { %s2677_s4 = scalar_lea.hbm %s3168_s27, 512  ;;  %s2682_s21 = scalar_lea.hbm %s3736_s9, 1024 }
 0x10b   : > { %p2678_p7 = scmp.ne.s32.totalorder %s3168_s27, %s2677_s4  ;;  %p2683_p6 = scmp.lt.u32.totalorder %s3168_s27, %s3736_s9 }
 0x10c   : > { %p2684_p2 = scmp.lt.u32.totalorder %s2682_s21, %s2677_s4  ;;  %p2686_p4 = scmp.lt.u32.totalorder %s2677_s4, %s3168_s27 }
 0x10d   : > { %p2680_p9 = pnand %p2678_p7, %p2649_p8 }
 0x10e   : > { %p2685_p5 = por %p2684_p2, %p2683_p6 }
 0x10f   : > { %p2681_p3 = pneg %p2680_p9 }
 0x110   : > { %p2687_p1 = por %p2686_p4, %p2685_p5 }
 0x112   : > { %p2688_p11 = pnand %p2687_p1, %p2681_p3 }
 0x114   : > { %2691 = shalt.err (!%p2688_p11)
}
 0x115   : > { %s2692_s30 = scalar_lea.vmem %s3170_s0, 512  ;;  %s2808_s11 = smov [#allocation17]  }
 0x116   : > { %p2693_p12 = scmp.ne.s32.totalorder %s3170_s0, %s2692_s30  ;;  %s2697_s2 = sshll.u32 %s2808_s11, 4  ;;  %s2698_s2 = int_to_ptr.vmem [resolvable:$false] %s2697_s2 }
 0x117   : > { %s2699_s26 = scalar_lea.vmem %s2698_s2, 1024  ;;  %p2700_p9 = scmp.lt.s32.totalorder %s3170_s0, %s2698_s2 }
 0x118   : > { %p2695_p13 = pnand %p2693_p12, %p2649_p8  ;;  %p2701_p6 = scmp.lt.s32.totalorder %s2699_s26, %s2692_s30 }
 0x11a   : > { %p2696_p7 = pneg %p2695_p13  ;;  %p2702_p2 = por %p2701_p6, %p2700_p9 }
 0x11c   : > { %p2703_p5 = pnand %p2702_p2, %p2696_p7 }
 0x11e   : > { %2706 = shalt.err (!%p2703_p5)
}
 0x11f   : > { %2288 = dma.hbm_to_vmem [thread:$0]  (!%p3121_p10), %s3168_s27, 512, %s3170_s0, %s415_s3, %s3768_s20, %s3768_s20, %s3767_s10  }
 0x120   : > { %s3769_s4 = sld [smem:[#allocation27_spill]] }
 0x126   : > { %p3770_p8 = scmp.ne.s32.totalorder %s3769_s4, 0 }
 0x127   : > { %s3204_s29 = sand.u32 (!%p3770_p8), 1, %s2785_s14  }
 0x128   : > { %437 = sbr.rel (%p3770_p8) target bundleno = 1218 (0x4c2), region = 60  ;;  %s440_s1 = scalar_lea.sflag (!%p3770_p8), [#allocation3], %s3204_s29 }
 0x129   : > { %s2218_s21 = smul.u32 (!%p3770_p8), 80, %s3204_s29 }
 0x12b   : > { %s3208_s12 = scalar_lea.vmem (!%p3770_p8), [#allocation2], %s2218_s21 }
 0x12f   : > { %2752 = dma.done.wait (%p3102_p0), %s440_s1, 1280  }
 0x130   : > { %2754 = vsyncadd (%p3102_p0), %s440_s1, 4294966016  ;;  %p3771_p10 = scmp.eq.s32.totalorder %s2890_s19, 0 }
 0x132   : > { %2756 = dma.done.wait (%p3771_p10), [#allocation6], 160   ;;  %p3772_p3 = pmov %p3771_p10 }
 0x134   : > { %2758 = vsyncadd (%p3772_p3), [#allocation6], 4294967136  ;;  %p3773_p4 = pmov %p3772_p3 }
 0x135   : > { %p3774_p1 = pmov %p3772_p3 }
 0x136   : > { %2760 = dma.done.wait (%p3773_p4), [#allocation9], 1040  }
 0x137   : > { %2762 = vsyncadd (%p3774_p1), [#allocation9], 4294966256  ;;  %p3775_p11 = pmov %p3774_p1 }
 0x138   : > { %p3776_p12 = pmov %p3774_p1 }
 0x139   : > { %2764 = dma.done.wait (%p3775_p11), [#allocation12], 1040  }
 0x13a   : > { %2766 = vsyncadd (%p3776_p12), [#allocation12], 4294966256  ;;  %p3777_p13 = pmov %p3774_p1 }
 0x13b   : > { %p3778_p7 = pmov %p3774_p1 }
 0x13c   : > { %2768 = dma.done.wait (%p3777_p13), [#allocation15], 1040  }
 0x13d   : > { %2770 = vsyncadd (%p3778_p7), [#allocation15], 4294966256  ;;  %s1962_s0 = sshll.u32 %s3204_s29, 5  ;;  %s481_s3 = scalar_lea.sflag [#allocation18], %s3204_s29 }
 0x13e   : > { %s3234_s17 = scalar_lea.vmem [#allocation17], %s1962_s0 }
 0x13f   : > { %2772 = dma.done.wait (%p3102_p0), %s481_s3, 512  }
 0x140   : > { %2774 = vsyncadd (%p3102_p0), %s481_s3, 4294966784  ;;  %v2809_v0 = vmov 0.0   ;;  %vm2810_vm0 = vmmov 0   ;;  %v2359_v1 = vld [vmem:[#allocation8] sm:$0xff]   ;;  %v2360_v2 = vld [vmem:[#allocation8 + $0x8] sm:$0xff]   ;;  %vm622_vm1 = vcmask 1046528  }
 0x141   : > { %2152 = vmatprep.subr.bf16.mxu1 %v2809_v0  ;;  %2168 = vmatprep.mubr.msk.bf16.mxu1 %vm2810_vm0, %v2809_v0  ;;  %v2361_v3 = vld [vmem:[#allocation8 + $0x10] sm:$0xff]   ;;  %v2362_v4 = vld [vmem:[#allocation8 + $0x18] sm:$0xff]   ;;  %v2363_v39 = vld [vmem:[#allocation8 + $0x20] sm:$0xff]   ;;  %vm719_vm2 = vcmask 1045504   ;;  %s525_s18 = scalar_lea.vmem [#allocation19], %s1962_s0  ;;  %s2079_s20 = sshll.u32 %s2890_s19, 9 }
 0x142   : > { %2153 = vmatpush3.bf16.msra.mxu1 %v2359_v1  ;;  %v527_v5 = vld [vmem:[%s3208_s12] ss:$8 sps:$4 sm:$0xff]   ;;  %v529_v6 = vld [vmem:[%s3208_s12 + $0x10] ss:$8 sps:$4 sm:$0xff]   ;;  %v3250_v14 = vld [vmem:[%s3208_s12 + $0x4] sm:$0x1] }
 0x143   : > { %2154 = vmatprep.subr.bf16.mxu1 %v2809_v0  ;;  %v531_v7 = vld [vmem:[%s3208_s12 + $0x20] ss:$8 sps:$4 sm:$0xff]   ;;  %v533_v8 = vld [vmem:[%s3208_s12 + $0x30] ss:$8 sps:$4 sm:$0xff]   ;;  %v535_v9 = vunpack.c.l.bf16 %v527_v5  ;;  %v536_v10 = vunpack.c.h.bf16 %v527_v5  ;;  %v537_v11 = vunpack.c.l.bf16 %v529_v6  ;;  %v538_v12 = vunpack.c.h.bf16 %v529_v6  ;;  %v3253_v19 = vld [vmem:[%s3208_s12 + $0xc] sm:$0x1] }
 0x144   : > { %v1964_v13 = vld [vmem:[#allocation5] ss:$0 sm:$0xff]  ;;  %v539_v15 = vunpack.c.l.bf16 %v531_v7  ;;  %v540_v16 = vunpack.c.h.bf16 %v531_v7  ;;  %v541_v17 = vunpack.c.l.bf16 %v533_v8  ;;  %v542_v18 = vunpack.c.h.bf16 %v533_v8  ;;  %v3256_v20 = vld [vmem:[%s3208_s12 + $0x14] sm:$0x1]  ;;  %v3259_v21 = vld [vmem:[%s3208_s12 + $0x1c] sm:$0x1] }
 0x145   : > { %v3262_v22 = vmul.f32 %v1964_v13, %v535_v9  ;;  %v3264_v23 = vmul.f32 %v1964_v13, %v536_v10  ;;  %v3266_v24 = vmul.f32 %v1964_v13, %v537_v11  ;;  %v3268_v25 = vmul.f32 %v1964_v13, %v538_v12  ;;  %v3271_v26 = vld [vmem:[%s3208_s12 + $0x24] sm:$0x1]  ;;  %v3274_v27 = vld [vmem:[%s3208_s12 + $0x2c] sm:$0x1]  ;;  %v3277_v28 = vld [vmem:[%s3208_s12 + $0x34] sm:$0x1] }
 0x146   : > { %2155 = vmatpush3.bf16.msra.mxu1 %v2360_v2  ;;  %v3279_v29 = vmul.f32 %v1964_v13, %v539_v15  ;;  %v3281_v30 = vmul.f32 %v1964_v13, %v540_v16  ;;  %v3283_v31 = vmul.f32 %v1964_v13, %v541_v17  ;;  %v3285_v32 = vmul.f32 %v1964_v13, %v542_v18  ;;  %v3288_v33 = vld [vmem:[%s3208_s12 + $0x3c] sm:$0x1]  ;;  %v1965_v34 = vld [vmem:[#allocation5 + $0x1] ss:$0 sm:$0xff]  ;;  %v2364_v56 = vld [vmem:[#allocation8 + $0x28] sm:$0xff]   ;;  %s1766_s10 = sshll.u32 %s525_s18, 4  ;;  %s3678_s10 = int_to_ptr.vmem [resolvable:$true] %s1766_s10 }
 0x147   : > { %2156 = vmatprep.subr.bf16.mxu1 %v2809_v0  ;;  %v574_v35 = vunpack.c.l.bf16 %v3250_v14  ;;  %v575_v36 = vunpack.c.l.bf16 %v3253_v19  ;;  %v576_v37 = vunpack.c.l.bf16 %v3256_v20  ;;  %v577_v38 = vunpack.c.l.bf16 %v3259_v21  ;;  %v2365_v6 = vld [vmem:[#allocation8 + $0x30] sm:$0xff]   ;;  %s3779_s30 = sld [smem:[#allocation33_spill]]  ;;  %s1753_s2 = scalar_lea.sflag [#allocation4], %s3204_s29 }
 0x148   : > { %v578_v40 = vunpack.c.l.bf16 %v3271_v26  ;;  %v579_v41 = vunpack.c.l.bf16 %v3274_v27  ;;  %v580_v42 = vunpack.c.l.bf16 %v3277_v28  ;;  %v581_v43 = vunpack.c.l.bf16 %v3288_v33  ;;  %s2707_s19 = scalar_lea.vmem %s3678_s10, 512  ;;  %p3780_p9 = scmp.ne.s32.totalorder %s3763_s22, 0 }
 0x149   : > { %v590_v44 = vmul.f32 %v1965_v34, %v535_v9  ;;  %v591_v45 = vmul.f32 %v1965_v34, %v574_v35  ;;  %v592_v46 = vmul.f32 %v1965_v34, %v536_v10  ;;  %v593_v47 = vmul.f32 %v1965_v34, %v575_v36  ;;  %p2708_p0 = scmp.ne.s32.totalorder %s3678_s10, %s2707_s19  ;;  %s2811_s26 = smov [#allocation19]  }
 0x14a   : > { %2157 = vmatpush3.bf16.msra.mxu1 %v2361_v3  ;;  %v594_v48 = vmul.f32 %v1965_v34, %v537_v11  ;;  %v595_v49 = vmul.f32 %v1965_v34, %v576_v37  ;;  %v596_v50 = vmul.f32 %v1965_v34, %v538_v12  ;;  %v597_v51 = vmul.f32 %v1965_v34, %v577_v38  ;;  %s2711_s4 = sshll.u32 %s2811_s26, 4  ;;  %s2712_s4 = int_to_ptr.vmem [resolvable:$false] %s2711_s4 }
 0x14b   : > { %2158 = vmatprep.subr.bf16.mxu1 %v2809_v0  ;;  %v598_v52 = vmul.f32 %v1965_v34, %v539_v15  ;;  %v599_v53 = vmul.f32 %v1965_v34, %v578_v40  ;;  %v600_v54 = vmul.f32 %v1965_v34, %v540_v16  ;;  %v601_v55 = vmul.f32 %v1965_v34, %v579_v41  ;;  %v663_v16 = vld [vmem:[%s3208_s12] sm:$0xe]  ;;  %p2709_p6 = pnand %p2708_p0, %p3780_p9  ;;  %s2713_s21 = scalar_lea.vmem %s2712_s4, 1024 }
 0x14c   : > { %v602_v57 = vmul.f32 %v1965_v34, %v541_v17  ;;  %v603_v58 = vmul.f32 %v1965_v34, %v580_v42  ;;  %v604_v59 = vmul.f32 %v1965_v34, %v542_v18  ;;  %v605_v60 = vmul.f32 %v1965_v34, %v581_v43  ;;  %v664_v17 = vld [vmem:[%s3208_s12 + $0x8] sm:$0xe]  ;;  %p2714_p5 = scmp.lt.s32.totalorder %s3678_s10, %s2712_s4  ;;  %p2715_p8 = scmp.lt.s32.totalorder %s2713_s21, %s2707_s19 }
 0x14d   : > { %v623_v61 = vrot.slane %v590_v44, 1  ;;  %v624_v62 = vrot.slane %v591_v45, 1  ;;  %v626_v63 = vrot.slane %v592_v46, 1  ;;  %v627_v1 = vrot.slane %v593_v47, 1  ;;  %v665_v45 = vld [vmem:[%s3208_s12 + $0x10] sm:$0xe]  ;;  %s3683_s11 = scalar_lea.hbm %s3779_s30, %s2079_s20  ;;  %p2710_p2 = pneg %p2709_p6 }
 0x14e   : > { %2159 = vmatpush3.bf16.msra.mxu1 %v2362_v4  ;;  %v629_v2 = vrot.slane %v594_v48, 1  ;;  %v630_v3 = vrot.slane %v595_v49, 1  ;;  %v632_v4 = vrot.slane %v596_v50, 1  ;;  %v633_v5 = vrot.slane %v597_v51, 1  ;;  %v666_v50 = vld [vmem:[%s3208_s12 + $0x18] sm:$0xe]  ;;  %p2716_p10 = por %p2715_p8, %p2714_p5 }
 0x14f   : > { %2160 = vmatprep.subr.bf16.mxu1 %v2809_v0  ;;  %v625_v7 = vsel %vm622_vm1, %v623_v61, %v624_v62  ;;  %v628_v8 = vsel %vm622_vm1, %v626_v63, %v627_v1  ;;  %v635_v9 = vrot.slane %v598_v52, 1  ;;  %v636_v10 = vrot.slane %v599_v53, 1  ;;  %v667_v51 = vld [vmem:[%s3208_s12 + $0x20] sm:$0xe] }
 0x150   : > { %v631_v11 = vsel %vm622_vm1, %v629_v2, %v630_v3  ;;  %v634_v12 = vsel %vm622_vm1, %v632_v4, %v633_v5  ;;  %v638_v13 = vrot.slane %v600_v54, 1  ;;  %v639_v15 = vrot.slane %v601_v55, 1  ;;  %v1966_v61 = vld [vmem:[#allocation5 + $0x2] ss:$0 sm:$0xff]  ;;  %p2717_p3 = pnand %p2716_p10, %p2710_p2 }
 0x151   : > { %v637_v18 = vsel %vm622_vm1, %v635_v9, %v636_v10  ;;  %v641_v34 = vrot.slane %v602_v57, 1  ;;  %v644_v44 = vrot.slane %v604_v59, 1  ;;  %v645_v47 = vrot.slane %v605_v60, 1  ;;  %v670_v57 = vld [vmem:[%s3208_s12 + $0x38] sm:$0xe] }
 0x152   : > { %2161 = vmatpush3.bf16.msra.mxu1 %v2363_v39  ;;  %v642_v39 = vrot.slane %v603_v58, 1  ;;  %v640_v46 = vsel %vm622_vm1, %v638_v13, %v639_v15  ;;  %v3327_v48 = vadd.f32 %v625_v7, %v3262_v22  ;;  %v3330_v49 = vadd.f32 %v628_v8, %v3264_v23  ;;  %v669_v22 = vld [vmem:[%s3208_s12 + $0x30] sm:$0xe]  ;;  %v2366_v23 = vld [vmem:[#allocation8 + $0x38] sm:$0xff]  }
 0x153   : > { %2162 = vmatprep.subr.bf16.mxu1 %v2809_v0  ;;  %v3336_v53 = vadd.f32 %v631_v11, %v3266_v24  ;;  %v3339_v54 = vadd.f32 %v634_v12, %v3268_v25  ;;  %v3342_v55 = vadd.f32 %v637_v18, %v3279_v29  ;;  %v646_v58 = vsel %vm622_vm1, %v644_v44, %v645_v47 }
 0x154   : > { %v643_v52 = vsel %vm622_vm1, %v641_v34, %v642_v39  ;;  %v3349_v59 = vadd.f32 %v640_v46, %v3281_v30  ;;  %v671_v24 = vunpack.c.l.bf16 %v663_v16  ;;  %v3356_v25 = vadd.f32 %v646_v58, %v3285_v32  ;;  %v3383_v39 = vld [vmem:[%s3208_s12 + $0x18] ss:$8 sps:$4 sm:$0xff]  }
 0x155   : > { %v3352_v60 = vadd.f32 %v643_v52, %v3283_v31  ;;  %v672_v29 = vunpack.c.l.bf16 %v664_v17  ;;  %v673_v62 = vunpack.c.l.bf16 %v665_v45  ;;  %v674_v63 = vunpack.c.l.bf16 %v666_v50  ;;  %v3378_v17 = vld [vmem:[%s3208_s12 + $0x8] ss:$8 sps:$4 sm:$0xff]  }
 0x156   : > { %2163 = vmatpush3.bf16.msra.mxu1 %v2364_v56  ;;  %v668_v56 = vld [vmem:[%s3208_s12 + $0x28] sm:$0xe]  ;;  %v675_v1 = vunpack.c.l.bf16 %v667_v51  ;;  %v677_v3 = vunpack.c.l.bf16 %v669_v22  ;;  %v678_v4 = vunpack.c.l.bf16 %v670_v57  ;;  %v687_v5 = vmul.f32 %v1966_v61, %v671_v24  ;;  %v3390_v51 = vld [vmem:[%s3208_s12 + $0x38] ss:$8 sps:$4 sm:$0xff]  }
 0x157   : > { %2164 = vmatprep.subr.bf16.mxu1 %v2809_v0  ;;  %v676_v2 = vunpack.c.l.bf16 %v668_v56  ;;  %v688_v30 = vmul.f32 %v1966_v61, %v574_v35  ;;  %v689_v31 = vmul.f32 %v1966_v61, %v672_v29  ;;  %v691_v7 = vmul.f32 %v1966_v61, %v673_v62  ;;  %v3387_v50 = vld [vmem:[%s3208_s12 + $0x28] ss:$8 sps:$4 sm:$0xff]  }
 0x158   : > { %v692_v32 = vmul.f32 %v1966_v61, %v576_v37  ;;  %v693_v8 = vmul.f32 %v1966_v61, %v674_v63  ;;  %v694_v9 = vmul.f32 %v1966_v61, %v577_v38  ;;  %v695_v10 = vmul.f32 %v1966_v61, %v675_v1 }
 0x159   : > { %v696_v11 = vmul.f32 %v1966_v61, %v578_v40  ;;  %v697_v12 = vmul.f32 %v1966_v61, %v676_v2  ;;  %v698_v14 = vmul.f32 %v1966_v61, %v579_v41  ;;  %v699_v19 = vmul.f32 %v1966_v61, %v677_v3 }
 0x15a   : > { %2165 = vmatpush3.bf16.msra.mxu1 %v2365_v6  ;;  %v690_v6 = vmul.f32 %v1966_v61, %v575_v36  ;;  %v700_v20 = vmul.f32 %v1966_v61, %v580_v42  ;;  %v701_v35 = vmul.f32 %v1966_v61, %v678_v4  ;;  %v702_v21 = vmul.f32 %v1966_v61, %v581_v43  ;;  %v3412_v4 = vld [vmem:[%s3208_s12 + $0xc] sm:$0x1] }
 0x15b   : > { %2166 = vmatprep.subr.bf16.mxu1 %v2809_v0  ;;  %v720_v36 = vrot.slane %v687_v5, 2  ;;  %v721_v37 = vrot.slane %v688_v30, 2  ;;  %v723_v26 = vrot.slane %v689_v31, 2  ;;  %v726_v40 = vrot.slane %v691_v7, 2  ;;  %v3418_v5 = vld [vmem:[%s3208_s12 + $0x1c] sm:$0x1] }
 0x15c   : > { %v724_v38 = vrot.slane %v690_v6, 2  ;;  %v727_v13 = vrot.slane %v692_v32, 2  ;;  %v729_v27 = vrot.slane %v693_v8, 2  ;;  %v730_v41 = vrot.slane %v694_v9, 2  ;;  %v3421_v30 = vld [vmem:[%s3208_s12 + $0x24] sm:$0x1] }
 0x15d   : > { %v722_v15 = vsel %vm719_vm2, %v720_v36, %v721_v37  ;;  %v732_v42 = vrot.slane %v695_v10, 2  ;;  %v733_v16 = vrot.slane %v696_v11, 2  ;;  %v735_v18 = vrot.slane %v697_v12, 2  ;;  %v3424_v8 = vld [vmem:[%s3208_s12 + $0x2c] sm:$0x1] }
 0x15e   : > { %2167 = vmatpush3.bf16.msra.mxu1 %v2366_v23  ;;  %v725_v28 = vsel %vm719_vm2, %v723_v26, %v724_v38  ;;  %v728_v33 = vsel %vm719_vm2, %v726_v40, %v727_v13  ;;  %v731_v43 = vsel %vm719_vm2, %v729_v27, %v730_v41  ;;  %v736_v34 = vrot.slane %v698_v14, 2  ;;  %v1975_v23 = vld [vmem:[#allocation5 + $0x3] ss:$0 sm:$0xff]  ;;  %v3427_v9 = vld [vmem:[%s3208_s12 + $0x34] sm:$0x1] }
 0x15f   : > { %2172 = vmatprep.subr.bf16.mxu1 %v2809_v0  ;;  %v734_v44 = vsel %vm719_vm2, %v732_v42, %v733_v16  ;;  %v738_v45 = vrot.slane %v699_v19, 2  ;;  %v739_v46 = vrot.slane %v700_v20, 2  ;;  %v741_v47 = vrot.slane %v701_v35, 2  ;;  %v3430_v10 = vld [vmem:[%s3208_s12 + $0x3c] sm:$0x1] }
 0x160   : > { %v737_v52 = vsel %vm719_vm2, %v735_v18, %v736_v34  ;;  %v742_v56 = vrot.slane %v702_v21, 2  ;;  %v752_v22 = vadd.f32 %v722_v15, %v3327_v48  ;;  %v753_v57 = vadd.f32 %v725_v28, %v3330_v49  ;;  %v3433_v11 = vld [vmem:[%s3208_s12 + $0x44] sm:$0x1] }
 0x161   : > { %v740_v58 = vsel %vm719_vm2, %v738_v45, %v739_v46  ;;  %v754_v24 = vadd.f32 %v728_v33, %v3336_v53  ;;  %v755_v61 = vadd.f32 %v731_v43, %v3339_v54  ;;  %v756_v29 = vadd.f32 %v734_v44, %v3342_v55  ;;  %v1984_v35 = vld [vmem:[#allocation5 + $0x4] ss:$0 sm:$0xff] }
 0x162   : > { %v743_v62 = vsel %vm719_vm2, %v741_v47, %v742_v56  ;;  %v757_v63 = vadd.f32 %v737_v52, %v3349_v59  ;;  %v758_v48 = vadd.f32 %v740_v58, %v3352_v60  ;;  %v769_v49 = vunpack.c.l.bf16 %v3378_v17 }
 0x163   : > { %v759_v1 = vadd.f32 %v743_v62, %v3356_v25  ;;  %v770_v53 = vunpack.c.h.bf16 %v3378_v17  ;;  %v771_v54 = vunpack.c.l.bf16 %v3383_v39  ;;  %v772_v55 = vunpack.c.h.bf16 %v3383_v39  ;;  %v3415_v25 = vld [vmem:[%s3208_s12 + $0x14] sm:$0x1] }
 0x164   : > { %v773_v2 = vunpack.c.l.bf16 %v3387_v50  ;;  %v774_v59 = vunpack.c.h.bf16 %v3387_v50  ;;  %v775_v60 = vunpack.c.l.bf16 %v3390_v51  ;;  %v776_v3 = vunpack.c.h.bf16 %v3390_v51 }
 0x165   : > { %v785_v31 = vmul.f32 %v1975_v23, %v769_v49  ;;  %v786_v6 = vmul.f32 %v1975_v23, %v770_v53  ;;  %v787_v7 = vmul.f32 %v1975_v23, %v771_v54  ;;  %v788_v32 = vmul.f32 %v1975_v23, %v772_v55 }
 0x166   : > { %v789_v12 = vmul.f32 %v1975_v23, %v773_v2  ;;  %v790_v14 = vmul.f32 %v1975_v23, %v774_v59  ;;  %v791_v19 = vmul.f32 %v1975_v23, %v775_v60  ;;  %v792_v20 = vmul.f32 %v1975_v23, %v776_v3 }
 0x167   : > { %v793_v21 = vadd.f32 %v785_v31, %v752_v22  ;;  %v794_v36 = vadd.f32 %v786_v6, %v753_v57  ;;  %v795_v37 = vadd.f32 %v787_v7, %v754_v24  ;;  %v796_v26 = vadd.f32 %v788_v32, %v755_v61  ;;  %v1985_v7 = vld [vmem:[%s3208_s12 + $0x8] sm:$0xe]  ;;  %v1986_v32 = vld [vmem:[%s3208_s12 + $0x10] sm:$0xe] }
 0x168   : > { %v797_v38 = vadd.f32 %v789_v12, %v756_v29  ;;  %v3435_v40 = vadd.f32 %v790_v14, %v757_v63  ;;  %v3437_v13 = vadd.f32 %v791_v19, %v758_v48  ;;  %v3439_v27 = vadd.f32 %v792_v20, %v759_v1 }
 0x169   : > { %v809_v41 = vunpack.c.l.bf16 %v3412_v4  ;;  %v810_v15 = vunpack.c.l.bf16 %v3415_v25  ;;  %v811_v28 = vunpack.c.l.bf16 %v3418_v5  ;;  %v812_v42 = vunpack.c.l.bf16 %v3421_v30 }
 0x16a   : > { %v813_v16 = vunpack.c.l.bf16 %v3424_v8  ;;  %v814_v17 = vunpack.c.l.bf16 %v3427_v9  ;;  %v815_v33 = vunpack.c.l.bf16 %v3430_v10  ;;  %v816_v43 = vunpack.c.l.bf16 %v3433_v11 }
 0x16b   : > { %v825_v18 = vmul.f32 %v1984_v35, %v769_v49  ;;  %v826_v34 = vmul.f32 %v1984_v35, %v809_v41  ;;  %v827_v39 = vmul.f32 %v1984_v35, %v770_v53  ;;  %v828_v44 = vmul.f32 %v1984_v35, %v810_v15 }
 0x16c   : > { %v829_v45 = vmul.f32 %v1984_v35, %v771_v54  ;;  %v830_v46 = vmul.f32 %v1984_v35, %v811_v28  ;;  %v831_v47 = vmul.f32 %v1984_v35, %v772_v55  ;;  %v832_v50 = vmul.f32 %v1984_v35, %v812_v42 }
 0x16d   : > { %v833_v51 = vmul.f32 %v1984_v35, %v773_v2  ;;  %v834_v52 = vmul.f32 %v1984_v35, %v813_v16  ;;  %v835_v56 = vmul.f32 %v1984_v35, %v774_v59  ;;  %v836_v22 = vmul.f32 %v1984_v35, %v814_v17 }
 0x16e   : > { %v837_v57 = vmul.f32 %v1984_v35, %v775_v60  ;;  %v838_v23 = vmul.f32 %v1984_v35, %v815_v33  ;;  %v839_v58 = vmul.f32 %v1984_v35, %v776_v3  ;;  %v840_v24 = vmul.f32 %v1984_v35, %v816_v43  ;;  %v1987_v35 = vld [vmem:[%s3208_s12 + $0x18] sm:$0xe] }
 0x16f   : > { %v857_v61 = vrot.slane %v825_v18, 1  ;;  %v858_v29 = vrot.slane %v826_v34, 1  ;;  %v860_v62 = vrot.slane %v827_v39, 1  ;;  %v861_v63 = vrot.slane %v828_v44, 1 }
 0x170   : > { %v863_v48 = vrot.slane %v829_v45, 1  ;;  %v864_v49 = vrot.slane %v830_v46, 1  ;;  %v866_v1 = vrot.slane %v831_v47, 1  ;;  %v867_v53 = vrot.slane %v832_v50, 1  ;;  %v1988_v45 = vld [vmem:[%s3208_s12 + $0x20] sm:$0xe] }
 0x171   : > { %v859_v54 = vsel %vm622_vm1, %v857_v61, %v858_v29  ;;  %v862_v55 = vsel %vm622_vm1, %v860_v62, %v861_v63  ;;  %v869_v2 = vrot.slane %v833_v51, 1  ;;  %v870_v59 = vrot.slane %v834_v52, 1  ;;  %v1989_v46 = vld [vmem:[%s3208_s12 + $0x28] sm:$0xe] }
 0x172   : > { %v865_v60 = vsel %vm622_vm1, %v863_v48, %v864_v49  ;;  %v868_v3 = vsel %vm622_vm1, %v866_v1, %v867_v53  ;;  %v872_v31 = vrot.slane %v835_v56, 1  ;;  %v873_v6 = vrot.slane %v836_v22, 1  ;;  %v1990_v56 = vld [vmem:[%s3208_s12 + $0x30] sm:$0xe]  ;;  %v1991_v22 = vld [vmem:[%s3208_s12 + $0x38] sm:$0xe] }
 0x173   : > { %v871_v12 = vsel %vm622_vm1, %v869_v2, %v870_v59  ;;  %v875_v14 = vrot.slane %v837_v57, 1  ;;  %v876_v19 = vrot.slane %v838_v23, 1  ;;  %v878_v20 = vrot.slane %v839_v58, 1  ;;  %v1992_v57 = vld [vmem:[%s3208_s12 + $0x40] sm:$0xe] }
 0x174   : > { %v874_v18 = vsel %vm622_vm1, %v872_v31, %v873_v6  ;;  %v879_v34 = vrot.slane %v840_v24, 1  ;;  %v3474_v39 = vadd.f32 %v859_v54, %v793_v21  ;;  %v3476_v44 = vadd.f32 %v862_v55, %v794_v36  ;;  %v1993_v36 = vld [vmem:[#allocation5 + $0x5] ss:$0 sm:$0xff] }
 0x175   : > { %v877_v47 = vsel %vm622_vm1, %v875_v14, %v876_v19  ;;  %v3481_v50 = vadd.f32 %v865_v60, %v795_v37  ;;  %v892_v51 = vadd.f32 %v868_v3, %v796_v26  ;;  %v893_v52 = vadd.f32 %v871_v12, %v797_v38 }
 0x176   : > { %v880_v23 = vsel %vm622_vm1, %v878_v20, %v879_v34  ;;  %v894_v58 = vadd.f32 %v874_v18, %v3435_v40  ;;  %v895_v21 = vadd.f32 %v877_v47, %v3437_v13  ;;  %v905_v24 = vunpack.c.l.bf16 %v1985_v7  ;;  %v1996_v47 = vld [vmem:[%s3208_s12 + $0x20] ss:$8 sps:$4 sm:$0xff]  }
 0x177   : > { %v896_v61 = vadd.f32 %v880_v23, %v3439_v27  ;;  %v906_v29 = vunpack.c.l.bf16 %v1986_v32  ;;  %v907_v62 = vunpack.c.l.bf16 %v1987_v35  ;;  %v908_v63 = vunpack.c.l.bf16 %v1988_v45  ;;  %v1994_v35 = vld [vmem:[%s3208_s12 + $0x10] ss:$8 sps:$4 sm:$0xff]  }
 0x178   : > { %v909_v37 = vunpack.c.l.bf16 %v1989_v46  ;;  %v910_v48 = vunpack.c.l.bf16 %v1990_v56  ;;  %v911_v26 = vunpack.c.l.bf16 %v1991_v22  ;;  %v912_v38 = vunpack.c.l.bf16 %v1992_v57 }
 0x179   : > { %v921_v49 = vmul.f32 %v1993_v36, %v905_v24  ;;  %v922_v1 = vmul.f32 %v1993_v36, %v809_v41  ;;  %v923_v53 = vmul.f32 %v1993_v36, %v906_v29  ;;  %v924_v40 = vmul.f32 %v1993_v36, %v810_v15  ;;  %v1998_v24 = vld [vmem:[%s3208_s12 + $0x30] ss:$8 sps:$4 sm:$0xff]  }
 0x17a   : > { %v925_v13 = vmul.f32 %v1993_v36, %v907_v62  ;;  %v926_v54 = vmul.f32 %v1993_v36, %v811_v28  ;;  %v927_v27 = vmul.f32 %v1993_v36, %v908_v63  ;;  %v928_v55 = vmul.f32 %v1993_v36, %v812_v42 }
 0x17b   : > { %v929_v2 = vmul.f32 %v1993_v36, %v909_v37  ;;  %v930_v59 = vmul.f32 %v1993_v36, %v813_v16  ;;  %v931_v60 = vmul.f32 %v1993_v36, %v910_v48  ;;  %v932_v4 = vmul.f32 %v1993_v36, %v814_v17  ;;  %v2002_v48 = vld [vmem:[#allocation5 + $0x6] ss:$0 sm:$0xff] }
 0x17c   : > { %v933_v41 = vmul.f32 %v1993_v36, %v911_v26  ;;  %v934_v25 = vmul.f32 %v1993_v36, %v815_v33  ;;  %v935_v15 = vmul.f32 %v1993_v36, %v912_v38  ;;  %v936_v5 = vmul.f32 %v1993_v36, %v816_v43  ;;  %v2000_v36 = vld [vmem:[%s3208_s12 + $0x40] ss:$8 sps:$4 sm:$0xff]  }
 0x17d   : > { %v953_v28 = vrot.slane %v921_v49, 2  ;;  %v954_v3 = vrot.slane %v922_v1, 2  ;;  %v956_v30 = vrot.slane %v923_v53, 2  ;;  %v957_v42 = vrot.slane %v924_v40, 2  ;;  %v3522_v40 = vld [vmem:[%s3208_s12 + $0x14] sm:$0x1] }
 0x17e   : > { %v959_v31 = vrot.slane %v925_v13, 2  ;;  %v960_v8 = vrot.slane %v926_v54, 2  ;;  %v962_v16 = vrot.slane %v927_v27, 2  ;;  %v963_v6 = vrot.slane %v928_v55, 2 }
 0x17f   : > { %v955_v9 = vsel %vm719_vm2, %v953_v28, %v954_v3  ;;  %v958_v17 = vsel %vm719_vm2, %v956_v30, %v957_v42  ;;  %v965_v10 = vrot.slane %v929_v2, 2  ;;  %v966_v33 = vrot.slane %v930_v59, 2  ;;  %v3528_v2 = vld [vmem:[%s3208_s12 + $0x24] sm:$0x1]  ;;  %v3531_v59 = vld [vmem:[%s3208_s12 + $0x2c] sm:$0x1] }
 0x180   : > { %v961_v7 = vsel %vm719_vm2, %v959_v31, %v960_v8  ;;  %v964_v11 = vsel %vm719_vm2, %v962_v16, %v963_v6  ;;  %v968_v43 = vrot.slane %v931_v60, 2  ;;  %v969_v32 = vrot.slane %v932_v4, 2  ;;  %v3534_v60 = vld [vmem:[%s3208_s12 + $0x34] sm:$0x1]  ;;  %v3544_v28 = vld [vmem:[%s3208_s12 + $0x44] sm:$0x1] }
 0x181   : > { %v967_v12 = vsel %vm719_vm2, %v965_v10, %v966_v33  ;;  %v971_v14 = vrot.slane %v933_v41, 2  ;;  %v972_v19 = vrot.slane %v934_v25, 2  ;;  %v974_v20 = vrot.slane %v935_v15, 2  ;;  %v3547_v3 = vld [vmem:[%s3208_s12 + $0x4c] sm:$0x1] }
 0x182   : > { %v970_v18 = vsel %vm719_vm2, %v968_v43, %v969_v32  ;;  %v975_v34 = vrot.slane %v936_v5, 2  ;;  %v985_v45 = vadd.f32 %v955_v9, %v3474_v39  ;;  %v986_v46 = vadd.f32 %v958_v17, %v3476_v44  ;;  %v3541_v5 = vld [vmem:[%s3208_s12 + $0x3c] sm:$0x1]  ;;  %v2011_v16 = vld [vmem:[#allocation5 + $0x7] ss:$0 sm:$0xff] }
 0x183   : > { %v973_v56 = vsel %vm719_vm2, %v971_v14, %v972_v19  ;;  %v987_v22 = vadd.f32 %v961_v7, %v3481_v50  ;;  %v988_v57 = vadd.f32 %v964_v11, %v892_v51  ;;  %v989_v23 = vadd.f32 %v967_v12, %v893_v52 }
 0x184   : > { %v976_v29 = vsel %vm719_vm2, %v974_v20, %v975_v34  ;;  %v990_v62 = vadd.f32 %v970_v18, %v894_v58  ;;  %v991_v63 = vadd.f32 %v973_v56, %v895_v21  ;;  %v1002_v37 = vunpack.c.l.bf16 %v1994_v35 }
 0x185   : > { %v992_v39 = vadd.f32 %v976_v29, %v896_v61  ;;  %v1003_v26 = vunpack.c.h.bf16 %v1994_v35  ;;  %v1004_v44 = vunpack.c.l.bf16 %v1996_v47  ;;  %v1005_v38 = vunpack.c.h.bf16 %v1996_v47  ;;  %v3525_v61 = vld [vmem:[%s3208_s12 + $0x1c] sm:$0x1] }
 0x186   : > { %v1006_v49 = vunpack.c.l.bf16 %v1998_v24  ;;  %v1007_v50 = vunpack.c.h.bf16 %v1998_v24  ;;  %v1008_v51 = vunpack.c.l.bf16 %v2000_v36  ;;  %v1009_v52 = vunpack.c.h.bf16 %v2000_v36 }
 0x187   : > { %v1018_v1 = vmul.f32 %v2002_v48, %v1002_v37  ;;  %v1019_v53 = vmul.f32 %v2002_v48, %v1003_v26  ;;  %v1020_v58 = vmul.f32 %v2002_v48, %v1004_v44  ;;  %v1021_v21 = vmul.f32 %v2002_v48, %v1005_v38 }
 0x188   : > { %v1022_v13 = vmul.f32 %v2002_v48, %v1006_v49  ;;  %v1023_v54 = vmul.f32 %v2002_v48, %v1007_v50  ;;  %v1024_v27 = vmul.f32 %v2002_v48, %v1008_v51  ;;  %v1025_v55 = vmul.f32 %v2002_v48, %v1009_v52 }
 0x189   : > { %v1026_v4 = vadd.f32 %v1018_v1, %v985_v45  ;;  %v1027_v41 = vadd.f32 %v1019_v53, %v986_v46  ;;  %v3536_v25 = vadd.f32 %v1020_v58, %v987_v22  ;;  %v3538_v15 = vadd.f32 %v1021_v21, %v988_v57  ;;  %v2012_v58 = vld [vmem:[%s3208_s12 + $0x10] sm:$0xe]  ;;  %v2013_v21 = vld [vmem:[%s3208_s12 + $0x18] sm:$0xe] }
 0x18a   : > { %v1030_v30 = vadd.f32 %v1022_v13, %v989_v23  ;;  %v3549_v42 = vadd.f32 %v1023_v54, %v990_v62  ;;  %v3551_v31 = vadd.f32 %v1024_v27, %v991_v63  ;;  %v3553_v8 = vadd.f32 %v1025_v55, %v992_v39 }
 0x18b   : > { %v1042_v6 = vunpack.c.l.bf16 %v3522_v40  ;;  %v1043_v9 = vunpack.c.l.bf16 %v3525_v61  ;;  %v1044_v17 = vunpack.c.l.bf16 %v3528_v2  ;;  %v1045_v10 = vunpack.c.l.bf16 %v3531_v59 }
 0x18c   : > { %v1046_v33 = vunpack.c.l.bf16 %v3534_v60  ;;  %v1047_v7 = vunpack.c.l.bf16 %v3541_v5  ;;  %v1048_v11 = vunpack.c.l.bf16 %v3544_v28  ;;  %v1049_v43 = vunpack.c.l.bf16 %v3547_v3 }
 0x18d   : > { %v1058_v32 = vmul.f32 %v2011_v16, %v1002_v37  ;;  %v1059_v12 = vmul.f32 %v2011_v16, %v1042_v6  ;;  %v1060_v14 = vmul.f32 %v2011_v16, %v1003_v26  ;;  %v1061_v19 = vmul.f32 %v2011_v16, %v1043_v9 }
 0x18e   : > { %v1062_v20 = vmul.f32 %v2011_v16, %v1004_v44  ;;  %v1063_v35 = vmul.f32 %v2011_v16, %v1044_v17  ;;  %v1064_v18 = vmul.f32 %v2011_v16, %v1005_v38  ;;  %v1065_v34 = vmul.f32 %v2011_v16, %v1045_v10 }
 0x18f   : > { %v1066_v45 = vmul.f32 %v2011_v16, %v1006_v49  ;;  %v1067_v46 = vmul.f32 %v2011_v16, %v1046_v33  ;;  %v1068_v47 = vmul.f32 %v2011_v16, %v1007_v50  ;;  %v1069_v56 = vmul.f32 %v2011_v16, %v1047_v7 }
 0x190   : > { %v1070_v22 = vmul.f32 %v2011_v16, %v1008_v51  ;;  %v1071_v57 = vmul.f32 %v2011_v16, %v1048_v11  ;;  %v1072_v23 = vmul.f32 %v2011_v16, %v1009_v52  ;;  %v1073_v24 = vmul.f32 %v2011_v16, %v1049_v43  ;;  %v2014_v16 = vld [vmem:[%s3208_s12 + $0x20] sm:$0xe] }
 0x191   : > { %v1090_v36 = vrot.slane %v1058_v32, 1  ;;  %v1091_v29 = vrot.slane %v1059_v12, 1  ;;  %v1093_v62 = vrot.slane %v1060_v14, 1  ;;  %v1094_v63 = vrot.slane %v1061_v19, 1 }
 0x192   : > { %v1096_v37 = vrot.slane %v1062_v20, 1  ;;  %v1097_v48 = vrot.slane %v1063_v35, 1  ;;  %v1099_v39 = vrot.slane %v1064_v18, 1  ;;  %v1100_v26 = vrot.slane %v1065_v34, 1  ;;  %v2015_v20 = vld [vmem:[%s3208_s12 + $0x28] sm:$0xe] }
 0x193   : > { %v1092_v44 = vsel %vm622_vm1, %v1090_v36, %v1091_v29  ;;  %v1095_v38 = vsel %vm622_vm1, %v1093_v62, %v1094_v63  ;;  %v1102_v49 = vrot.slane %v1066_v45, 1  ;;  %v1103_v50 = vrot.slane %v1067_v46, 1  ;;  %v2016_v35 = vld [vmem:[%s3208_s12 + $0x30] sm:$0xe] }
 0x194   : > { %v1098_v51 = vsel %vm622_vm1, %v1096_v37, %v1097_v48  ;;  %v1101_v52 = vsel %vm622_vm1, %v1099_v39, %v1100_v26  ;;  %v1105_v1 = vrot.slane %v1068_v47, 1  ;;  %v1106_v53 = vrot.slane %v1069_v56, 1  ;;  %v2017_v47 = vld [vmem:[%s3208_s12 + $0x38] sm:$0xe]  ;;  %v2018_v56 = vld [vmem:[%s3208_s12 + $0x40] sm:$0xe] }
 0x195   : > { %v1104_v13 = vsel %vm622_vm1, %v1102_v49, %v1103_v50  ;;  %v1108_v54 = vrot.slane %v1070_v22, 1  ;;  %v1109_v27 = vrot.slane %v1071_v57, 1  ;;  %v1111_v55 = vrot.slane %v1072_v23, 1  ;;  %v2019_v22 = vld [vmem:[%s3208_s12 + $0x48] sm:$0xe] }
 0x196   : > { %v1107_v32 = vsel %vm622_vm1, %v1105_v1, %v1106_v53  ;;  %v1112_v12 = vrot.slane %v1073_v24, 1  ;;  %v3588_v14 = vadd.f32 %v1092_v44, %v1026_v4  ;;  %v3590_v19 = vadd.f32 %v1095_v38, %v1027_v41  ;;  %v2020_v24 = vld [vmem:[#allocation5 + $0x8] ss:$0 sm:$0xff] }
 0x197   : > { %v1110_v18 = vsel %vm622_vm1, %v1108_v54, %v1109_v27  ;;  %v1124_v34 = vadd.f32 %v1098_v51, %v3536_v25  ;;  %v1125_v45 = vadd.f32 %v1101_v52, %v3538_v15  ;;  %v1126_v46 = vadd.f32 %v1104_v13, %v1030_v30 }
 0x198   : > { %v1113_v57 = vsel %vm622_vm1, %v1111_v55, %v1112_v12  ;;  %v1127_v23 = vadd.f32 %v1107_v32, %v3549_v42  ;;  %v1128_v4 = vadd.f32 %v1110_v18, %v3551_v31  ;;  %v1138_v41 = vunpack.c.l.bf16 %v2012_v58 }
 0x199   : > { %v1129_v36 = vadd.f32 %v1113_v57, %v3553_v8  ;;  %v1139_v29 = vunpack.c.l.bf16 %v2013_v21  ;;  %v1140_v62 = vunpack.c.l.bf16 %v2014_v16  ;;  %v1141_v63 = vunpack.c.l.bf16 %v2015_v20  ;;  %v2021_v16 = vld [vmem:[#allocation7] ss:$0 sm:$0xff] }
 0x19a   : > { %v1142_v25 = vunpack.c.l.bf16 %v2016_v35  ;;  %v1143_v37 = vunpack.c.l.bf16 %v2017_v47  ;;  %v1144_v15 = vunpack.c.l.bf16 %v2018_v56  ;;  %v1145_v30 = vunpack.c.l.bf16 %v2019_v22 }
 0x19b   : > { %v1154_v48 = vmul.f32 %v2020_v24, %v1138_v41  ;;  %v1155_v39 = vmul.f32 %v2020_v24, %v1042_v6  ;;  %v1156_v26 = vmul.f32 %v2020_v24, %v1139_v29  ;;  %v1157_v42 = vmul.f32 %v2020_v24, %v1043_v9 }
 0x19c   : > { %v1158_v31 = vmul.f32 %v2020_v24, %v1140_v62  ;;  %v1159_v44 = vmul.f32 %v2020_v24, %v1044_v17  ;;  %v1160_v8 = vmul.f32 %v2020_v24, %v1141_v63  ;;  %v1161_v38 = vmul.f32 %v2020_v24, %v1045_v10 }
 0x19d   : > { %v1162_v49 = vmul.f32 %v2020_v24, %v1142_v25  ;;  %v1163_v50 = vmul.f32 %v2020_v24, %v1046_v33  ;;  %v1164_v51 = vmul.f32 %v2020_v24, %v1143_v37  ;;  %v1165_v40 = vmul.f32 %v2020_v24, %v1047_v7 }
 0x19e   : > { %v1166_v6 = vmul.f32 %v2020_v24, %v1144_v15  ;;  %v1167_v61 = vmul.f32 %v2020_v24, %v1048_v11  ;;  %v1168_v9 = vmul.f32 %v2020_v24, %v1145_v30  ;;  %v1169_v2 = vmul.f32 %v2020_v24, %v1049_v43 }
 0x19f   : > { %v1186_v17 = vrot.slane %v1154_v48, 2  ;;  %v1187_v52 = vrot.slane %v1155_v39, 2  ;;  %v1189_v59 = vrot.slane %v1156_v26, 2  ;;  %v1190_v10 = vrot.slane %v1157_v42, 2 }
 0x1a0   : > { %v1192_v1 = vrot.slane %v1158_v31, 2  ;;  %v1193_v53 = vrot.slane %v1159_v44, 2  ;;  %v1195_v60 = vrot.slane %v1160_v8, 2  ;;  %v1196_v33 = vrot.slane %v1161_v38, 2 }
 0x1a1   : > { %v1188_v58 = vsel %vm719_vm2, %v1186_v17, %v1187_v52  ;;  %v1191_v5 = vsel %vm719_vm2, %v1189_v59, %v1190_v10  ;;  %v1198_v7 = vrot.slane %v1162_v49, 2  ;;  %v1199_v21 = vrot.slane %v1163_v50, 2 }
 0x1a2   : > { %v1194_v28 = vsel %vm719_vm2, %v1192_v1, %v1193_v53  ;;  %v1197_v11 = vsel %vm719_vm2, %v1195_v60, %v1196_v33  ;;  %v1201_v3 = vrot.slane %v1164_v51, 2  ;;  %v1202_v43 = vrot.slane %v1165_v40, 2 }
 0x1a3   : > { %v1200_v13 = vsel %vm719_vm2, %v1198_v7, %v1199_v21  ;;  %v1204_v54 = vrot.slane %v1166_v6, 2  ;;  %v1205_v27 = vrot.slane %v1167_v61, 2  ;;  %v1207_v55 = vrot.slane %v1168_v9, 2 }
 0x1a4   : > { %v1203_v32 = vsel %vm719_vm2, %v1201_v3, %v1202_v43  ;;  %v1208_v12 = vrot.slane %v1169_v2, 2  ;;  %v1218_v20 = vadd.f32 %v1188_v58, %v3588_v14  ;;  %v1219_v35 = vadd.f32 %v1191_v5, %v3590_v19 }
 0x1a5   : > { %v1206_v18 = vsel %vm719_vm2, %v1204_v54, %v1205_v27  ;;  %v1220_v47 = vadd.f32 %v1194_v28, %v1124_v34  ;;  %v1221_v56 = vadd.f32 %v1197_v11, %v1125_v45  ;;  %v1222_v22 = vadd.f32 %v1200_v13, %v1126_v46 }
 0x1a6   : > { %v1209_v57 = vsel %vm719_vm2, %v1207_v55, %v1208_v12  ;;  %v1223_v41 = vadd.f32 %v1203_v32, %v1127_v23  ;;  %v1224_v24 = vadd.f32 %v1206_v18, %v1128_v4  ;;  %v1233_v29 = vadd.f32 %v2021_v16, %v1218_v20 }
 0x1a7   : > { %v1225_v62 = vadd.f32 %v1209_v57, %v1129_v36  ;;  %v1234_v63 = vadd.f32 %v2021_v16, %v1219_v35  ;;  %v1235_v25 = vadd.f32 %v2021_v16, %v1220_v47  ;;  %v1236_v37 = vadd.f32 %v2021_v16, %v1221_v56 }
 0x1a8   : > { %v1237_v15 = vadd.f32 %v2021_v16, %v1222_v22  ;;  %v1238_v30 = vadd.f32 %v2021_v16, %v1223_v41  ;;  %v1239_v48 = vadd.f32 %v2021_v16, %v1224_v24  ;;  %v2022_v14 = vmul.f32 -1.442695, %v1233_v29 }
 0x1a9   : > { %v1240_v39 = vadd.f32 %v2021_v16, %v1225_v62  ;;  %v2023_v19 = vmul.f32 -1.442695, %v1234_v63  ;;  %v2024_v26 = vmul.f32 -1.442695, %v1235_v25  ;;  %v2025_v42 = vmul.f32 -1.442695, %v1236_v37 }
 0x1aa   : > { %2383 = vpow2.f32 %v2022_v14  ;;  %v2026_v34 = vmul.f32 -1.442695, %v1237_v15  ;;  %v2027_v45 = vmul.f32 -1.442695, %v1238_v30  ;;  %v2028_v46 = vmul.f32 -1.442695, %v1239_v48 }
 0x1ab   : > { %2385 = vpow2.f32 %v2023_v19  ;;  %v2029_v23 = vmul.f32 -1.442695, %v1240_v39  ;;  %v2367_v62 = vld [vmem:[#allocation11] sm:$0xff]   ;;  %v2374_v14 = vld [vmem:[#allocation11 + $0x38] sm:$0xff]  }
 0x1ac   : > { %2387 = vpow2.f32 %v2024_v26 }
 0x1ad   : > { %2389 = vpow2.f32 %v2025_v42 }
 0x1ae   : > { %2391 = vpow2.f32 %v2026_v34 }
 0x1af   : > { %2393 = vpow2.f32 %v2027_v45 }
 0x1b0   : > { %2395 = vpow2.f32 %v2028_v46 }
 0x1b1   : > { %2397 = vpow2.f32 %v2029_v23 }
 0x1b4   : > { %v2384_v4 = vpop.eup %2383 }
 0x1b5   : > { %v2386_v36 = vpop.eup %2385  ;;  %v1265_v31 = vadd.f32 1.0, %v2384_v4 }
 0x1b6   : > { %v2388_v44 = vpop.eup %2387  ;;  %v1266_v8 = vadd.f32 1.0, %v2386_v36 }
 0x1b7   : > { %v2390_v38 = vpop.eup %2389  ;;  %v1267_v49 = vadd.f32 1.0, %v2388_v44  ;;  %2399 = vrcp.f32 %v1265_v31 }
 0x1b8   : > { %v2392_v50 = vpop.eup %2391  ;;  %v1268_v51 = vadd.f32 1.0, %v2390_v38  ;;  %2401 = vrcp.f32 %v1266_v8  ;;  %v2375_v8 = vld [vmem:[#allocation14] sm:$0xff]   ;;  %v2377_v38 = vld [vmem:[#allocation14 + $0x10] sm:$0xff]  }
 0x1b9   : > { %v2394_v40 = vpop.eup %2393  ;;  %v1269_v6 = vadd.f32 1.0, %v2392_v50  ;;  %2403 = vrcp.f32 %v1267_v49  ;;  %2192 = vmatprep.subr.bf16.mxu0 %v2375_v8  ;;  %v2378_v49 = vld [vmem:[#allocation14 + $0x18] sm:$0xff]   ;;  %v2379_v50 = vld [vmem:[#allocation14 + $0x20] sm:$0xff]  }
 0x1ba   : > { %v2396_v61 = vpop.eup %2395  ;;  %v1270_v9 = vadd.f32 1.0, %v2394_v40  ;;  %2405 = vrcp.f32 %v1268_v51  ;;  %2193 = vmatpush3.bf16.msra.mxu0 %v2375_v8  ;;  %v2380_v51 = vld [vmem:[#allocation14 + $0x28] sm:$0xff]   ;;  %v2381_v40 = vld [vmem:[#allocation14 + $0x30] sm:$0xff]  }
 0x1bb   : > { %v2398_v2 = vpop.eup %2397  ;;  %v1271_v17 = vadd.f32 1.0, %v2396_v61  ;;  %2407 = vrcp.f32 %v1269_v6  ;;  %v2382_v6 = vld [vmem:[#allocation14 + $0x38] sm:$0xff]  }
 0x1bc   : > { %v1272_v52 = vadd.f32 1.0, %v2398_v2  ;;  %2409 = vrcp.f32 %v1270_v9  ;;  %v1441_v61 = vld [vmem:[#allocation13] sm:$0x1] }
 0x1bd   : > { %2411 = vrcp.f32 %v1271_v17 }
 0x1be   : > { %2413 = vrcp.f32 %v1272_v52 }
 0x1c1   : > { %v2400_v59 = vpop.eup %2399 }
 0x1c2   : > { %v2402_v10 = vpop.eup %2401  ;;  %v3630_v1 = vmul.f32 %v2400_v59, %v1233_v29 }
 0x1c3   : > { %v2404_v53 = vpop.eup %2403  ;;  %v3632_v60 = vmul.f32 %v2402_v10, %v1234_v63  ;;  %v2368_v63 = vld [vmem:[#allocation11 + $0x8] sm:$0xff]  }
 0x1c4   : > { %v2406_v33 = vpop.eup %2405  ;;  %v3634_v58 = vmul.f32 %v2404_v53, %v1235_v25  ;;  %v2369_v25 = vld [vmem:[#allocation11 + $0x10] sm:$0xff]  }
 0x1c5   : > { %v2408_v5 = vpop.eup %2407  ;;  %v3636_v7 = vmul.f32 %v2406_v33, %v1236_v37  ;;  %v1297_v21 = vadd.f32 %v3632_v60, %v3630_v1  ;;  %v2370_v37 = vld [vmem:[#allocation11 + $0x18] sm:$0xff]  }
 0x1c6   : > { %v2410_v28 = vpop.eup %2409  ;;  %v3640_v11 = vmul.f32 %v2408_v5, %v1237_v15  ;;  %v2371_v15 = vld [vmem:[#allocation11 + $0x20] sm:$0xff]   ;;  %v1536_v5 = vlaneseq }
 0x1c7   : > { %v1298_v3 = vadd.f32 %v1297_v21, %v3634_v58  ;;  %v2412_v43 = vpop.eup %2411  ;;  %v3643_v13 = vmul.f32 %v2410_v28, %v1238_v30  ;;  %v2372_v30 = vld [vmem:[#allocation11 + $0x28] sm:$0xff]  }
 0x1c8   : > { %v2414_v27 = vpop.eup %2413  ;;  %v3646_v55 = vmul.f32 %v2412_v43, %v1239_v48  ;;  %v2373_v48 = vld [vmem:[#allocation11 + $0x30] sm:$0xff]   ;;  %v1537_v21 = vshrl.u32 %v1536_v5, 7 }
 0x1c9   : > { %v1299_v54 = vadd.f32 %v1298_v3, %v3636_v7  ;;  %v3649_v32 = vmul.f32 %v2414_v27, %v1240_v39  ;;  %v1328_v39 = vld [vmem:[#allocation10] sm:$0x1] }
 0x1ca   : > { %v1538_v28 = vsub.s32 0, %v1537_v21 }
 0x1cb   : > { %v1300_v16 = vadd.f32 %v1299_v54, %v3640_v11 }
 0x1cd   : > { %v1301_v12 = vadd.f32 %v1300_v16, %v3643_v13 }
 0x1cf   : > { %v1302_v20 = vadd.f32 %v1301_v12, %v3646_v55 }
 0x1d1   : > { %v1303_v35 = vadd.f32 %v1302_v20, %v3649_v32 }
 0x1d3   : > { %v1304_v18 = vrot.slane %v1303_v35, 4 }
 0x1d5   : > { %v1305_v47 = vadd.f32 %v1304_v18, %v1303_v35 }
 0x1d7   : > { %v1306_v56 = vrot.slane %v1305_v47, 2 }
 0x1d9   : > { %v1307_v22 = vadd.f32 %v1306_v56, %v1305_v47 }
 0x1db   : > { %v1308_v57 = vrot.slane %v1307_v22, 1 }
 0x1dd   : > { %v1309_v41 = vadd.f32 %v1308_v57, %v1307_v22  ;;  %v2116_v57 = vld [vmem:[%s3234_s17 + $0x8] sm:$0xff]  }
 0x1df   : > { %v1310_v24 = vmul.f32 0.015625, %v1309_v41  ;;  %v2081_v41 = vld [vmem:[%s3234_s17] sm:$0xff]  }
 0x1e1   : > { %v1311_v29 = vpack.c.bf16 %v1310_v24, %v1310_v24  ;;  %v2086_v24 = vunpack.c.l.bf16 %v2116_v57 }
 0x1e3   : > { %2169 = vmatmul.mubr.bf16.vlgmr.msra.gmra.mrb[0].mxu1 %v1311_v29  ;;  %v2087_v29 = vunpack.c.h.bf16 %v2116_v57 }
 0x1e4   : > { %2188 = vmatprep.mubr.msk.bf16.mxu1 %vm2810_vm0, %v2809_v0  ;;  %2173 = vmatpush3.bf16.msra.mxu1 %v2367_v62 }
 0x1e5   : > { %2174 = vmatprep.subr.bf16.mxu1 %v2809_v0 }
 0x1e8   : > { %2175 = vmatpush3.bf16.msra.mxu1 %v2368_v63  ;;  %v2082_v63 = vunpack.c.l.bf16 %v2081_v41 }
 0x1e9   : > { %2176 = vmatprep.subr.bf16.mxu1 %v2809_v0 }
 0x1ec   : > { %2177 = vmatpush3.bf16.msra.mxu1 %v2369_v25 }
 0x1ed   : > { %2178 = vmatprep.subr.bf16.mxu1 %v2809_v0 }
 0x1f0   : > { %2179 = vmatpush3.bf16.msra.mxu1 %v2370_v37  ;;  %v2083_v37 = vunpack.c.h.bf16 %v2081_v41 }
 0x1f1   : > { %2180 = vmatprep.subr.bf16.mxu1 %v2809_v0 }
 0x1f4   : > { %2181 = vmatpush3.bf16.msra.mxu1 %v2371_v15 }
 0x1f5   : > { %2182 = vmatprep.subr.bf16.mxu1 %v2809_v0 }
 0x1f8   : > { %2183 = vmatpush3.bf16.msra.mxu1 %v2372_v30 }
 0x1f9   : > { %2184 = vmatprep.subr.bf16.mxu1 %v2809_v0 }
 0x1fc   : > { %2185 = vmatpush3.bf16.msra.mxu1 %v2373_v48 }
 0x1fd   : > { %2186 = vmatprep.subr.bf16.mxu1 %v2809_v0  ;;  %v2376_v0 = vld [vmem:[#allocation14 + $0x8] sm:$0xff]  }
 0x1fe   : > { %2194 = vmatprep.subr.bf16.mxu0 %v2376_v0 }
 0x1ff   : > { %2195 = vmatpush3.bf16.msra.mxu0 %v2376_v0 }
 0x200   : > { %2187 = vmatpush3.bf16.msra.mxu1 %v2374_v14  ;;  %2196 = vmatprep.subr.bf16.mxu0 %v2377_v38 }
 0x203   : > { %2197 = vmatpush3.bf16.msra.mxu0 %v2377_v38 }
 0x204   : > { %2198 = vmatprep.subr.bf16.mxu0 %v2378_v49 }
 0x207   : > { %2199 = vmatpush3.bf16.msra.mxu0 %v2378_v49 }
 0x208   : > { %2200 = vmatprep.subr.bf16.mxu0 %v2379_v50 }
 0x20b   : > { %2201 = vmatpush3.bf16.msra.mxu0 %v2379_v50 }
 0x20c   : > { %2202 = vmatprep.subr.bf16.mxu0 %v2380_v51 }
 0x20f   : > { %2203 = vmatpush3.bf16.msra.mxu0 %v2380_v51 }
 0x210   : > { %2204 = vmatprep.subr.bf16.mxu0 %v2381_v40 }
 0x213   : > { %2205 = vmatpush3.bf16.msra.mxu0 %v2381_v40 }
 0x214   : > { %2206 = vmatprep.subr.bf16.mxu0 %v2382_v6 }
 0x217   : > { %2207 = vmatpush3.bf16.msra.mxu0 %v2382_v6 }
 0x2b6   : > { %v1411_v19 = vpop.f32.mrb[0].mxu1 }
 0x2b7   : > { %v1412_v26 = vadd.f32 %v1411_v19, %v1328_v39  ;;  %v2170_v42 = vpop.f32.mrb[1].mxu1  ;;  %v2118_v19 = vld [vmem:[%s3234_s17 + $0x18] sm:$0xff]  }
 0x2b8   : > { %v1414_v34 = vpop.f32.mrb[2].mxu1  ;;  %v2117_v42 = vld [vmem:[%s3234_s17 + $0x10] sm:$0xff]  }
 0x2b9   : > { %v2038_v45 = vmul.f32 -1.442695, %v1412_v26  ;;  %v2171_v46 = vpop.f32.mrb[3].mxu1  ;;  %v2091_v0 = vunpack.c.h.bf16 %v2117_v42 }
 0x2bb   : > { %2415 = vpow2.f32 %v2038_v45 }
 0x2c5   : > { %v2416_v23 = vpop.eup %2415 }
 0x2c6   : > { %v1420_v4 = vadd.f32 1.0, %v2416_v23  ;;  %v2094_v23 = vunpack.c.l.bf16 %v2118_v19 }
 0x2c8   : > { %2417 = vrcp.f32 %v1420_v4 }
 0x2d2   : > { %v2418_v36 = vpop.eup %2417 }
 0x2d3   : > { %v1423_v31 = vmul.f32 %v2418_v36, %v1412_v26  ;;  %v2095_v36 = vunpack.c.h.bf16 %v2118_v19 }
 0x2d5   : > { %v1424_v44 = vpack.c.bf16 %v1423_v31, %v1423_v31 }
 0x2d7   : > { %2189 = vmatmul.mubr.bf16.vlgmr.msra.gmra.mrb[4].mxu1 %v1424_v44  ;;  %v2090_v44 = vunpack.c.l.bf16 %v2117_v42 }
 0x3aa   : > { %v1524_v9 = vpop.f32.mrb[4].mxu1 }
 0x3ab   : > { %v1525_v2 = vadd.f32 %v1524_v9, %v1441_v61  ;;  %v2190_v17 = vpop.f32.mrb[5].mxu1 }
 0x3ac   : > { %v1527_v52 = vpop.f32.mrb[6].mxu1 }
 0x3ad   : > { %v2047_v59 = vmul.f32 -1.442695, %v1525_v2  ;;  %v2191_v10 = vpop.f32.mrb[7].mxu1 }
 0x3af   : > { %2419 = vpow2.f32 %v2047_v59 }
 0x3b9   : > { %v2420_v53 = vpop.eup %2419 }
 0x3ba   : > { %v1533_v33 = vadd.f32 1.0, %v2420_v53 }
 0x3bc   : > { %2421 = vrcp.f32 %v1533_v33 }
 0x3c6   : > { %v2422_v3 = vpop.eup %2421 }
 0x3c7   : > { %v1539_v43 = vrot.slane %v2422_v3, %v1538_v28 }
 0x3c9   : > { %v1540_v54 = vmul.f32 %v1539_v43, %v3630_v1  ;;  %v1541_v27 = vmul.f32 %v1539_v43, %v3632_v60  ;;  %v1542_v16 = vmul.f32 %v1539_v43, %v3634_v58  ;;  %v1543_v12 = vmul.f32 %v1539_v43, %v3636_v7  ;;  %v2048_v58 = vld [vmem:[#allocation16] ss:$0 sm:$0xff] }
 0x3ca   : > { %v1544_v20 = vmul.f32 %v1539_v43, %v3640_v11  ;;  %v1545_v35 = vmul.f32 %v1539_v43, %v3643_v13  ;;  %v1546_v1 = vmul.f32 %v1539_v43, %v3646_v55  ;;  %v1547_v60 = vmul.f32 %v1539_v43, %v3649_v32 }
 0x3cb   : > { %v1548_v18 = vpack.c.bf16 %v1541_v27, %v1540_v54  ;;  %v1549_v47 = vpack.c.bf16 %v1543_v12, %v1542_v16 }
 0x3cc   : > { %v1550_v56 = vpack.c.bf16 %v1545_v35, %v1544_v20  ;;  %v1551_v22 = vpack.c.bf16 %v1547_v60, %v1546_v1 }
 0x3cd   : > { %2208 = vmatprep.mubr.bf16.mxu0 %v1548_v18 }
 0x3ce   : > { %2209 = vmatmul.mubr.bf16.vlgmr.msra.gmra.mrb[0].mxu0 %v1549_v47 }
 0x3cf   : > { %2212 = vmatprep.mubr.bf16.mxu0 %v1550_v56 }
 0x3d6   : > { %2213 = vmatmul.mubr.bf16.gmra.mrb[4].mxu0 %v1551_v22 }
 0x4a1   : > { %v2210_v7 = vpop.f32.mrb[0].mxu0 }
 0x4a2   : > { %v1666_v11 = vadd.f32 %v2210_v7, %v2048_v58  ;;  %v1657_v13 = vpop.f32.mrb[1].mxu0 }
 0x4a3   : > { %v1658_v62 = vadd.f32 %v2048_v58, %v1657_v13  ;;  %v2211_v25 = vpop.f32.mrb[2].mxu0 }
 0x4a4   : > { %v1669_v55 = vadd.f32 %v2211_v25, %v2048_v58  ;;  %v1660_v15 = vpop.f32.mrb[3].mxu0  ;;  %v1706_v30 = vadd.f32 %v2086_v24, %v1666_v11 }
 0x4a5   : > { %v1661_v32 = vadd.f32 %v2048_v58, %v1660_v15  ;;  %v1704_v14 = vadd.f32 %v2082_v63, %v1658_v62 }
 0x4a6   : > { %v1707_v48 = vadd.f32 %v2087_v29, %v1669_v55 }
 0x4a7   : > { %v1705_v39 = vadd.f32 %v2083_v37, %v1661_v32 }
 0x4a8   : > { %v2104_v26 = vpack.c.bf16 %v1707_v48, %v1706_v30 }
 0x4a9   : > { %v2099_v34 = vpack.c.bf16 %v1705_v39, %v1704_v14  ;;  %v2214_v45 = vpop.f32.mrb[4].mxu0 }
 0x4aa   : > { %2119 = vst [vmem:[%s525_s18 + $0x8] sm:$0xff] %v2104_v26   ;;  %v1682_v46 = vadd.f32 %v2214_v45, %v2048_v58  ;;  %v1673_v4 = vpop.f32.mrb[5].mxu0 }
 0x4ab   : > { %2100 = vst [vmem:[%s525_s18] sm:$0xff] %v2099_v34   ;;  %v1674_v31 = vadd.f32 %v2048_v58, %v1673_v4  ;;  %v2215_v8 = vpop.f32.mrb[6].mxu0 }
 0x4ac   : > { %v1685_v38 = vadd.f32 %v2215_v8, %v2048_v58  ;;  %v1676_v49 = vpop.f32.mrb[7].mxu0  ;;  %v1710_v51 = vadd.f32 %v2094_v23, %v1682_v46 }
 0x4ad   : > { %v1677_v50 = vadd.f32 %v2048_v58, %v1676_v49  ;;  %v1708_v6 = vadd.f32 %v2090_v44, %v1674_v31 }
 0x4ae   : > { %v1711_v40 = vadd.f32 %v2095_v36, %v1685_v38 }
 0x4af   : > { %v1709_v61 = vadd.f32 %v2091_v0, %v1677_v50 }
 0x4b0   : > { %v2114_v9 = vpack.c.bf16 %v1711_v40, %v1710_v51 }
 0x4b1   : > { %v2109_v2 = vpack.c.bf16 %v1709_v61, %v1708_v6 }
 0x4b2   : > { %2121 = vst [vmem:[%s525_s18 + $0x18] sm:$0xff] %v2114_v9  }
 0x4b3   : > { %2120 = vst [vmem:[%s525_s18 + $0x10] sm:$0xff] %v2109_v2  }
 0x4b4   : > { %2720 = shalt.err (!%p2717_p3)
}
 0x4b5   : > { %s2721_s1 = scalar_lea.hbm %s3683_s11, 512  ;;  %s2725_s3 = scalar_lea.hbm %s3779_s30, 1024 }
 0x4b6   : > { %p2722_p4 = scmp.ne.s32.totalorder %s3683_s11, %s2721_s1  ;;  %p2726_p12 = scmp.lt.u32.totalorder %s3683_s11, %s3779_s30 }
 0x4b7   : > { %p2727_p13 = scmp.lt.u32.totalorder %s2725_s3, %s2721_s1  ;;  %p2729_p0 = scmp.lt.u32.totalorder %s2721_s1, %s3683_s11 }
 0x4b8   : > { %p2723_p1 = pnand %p2722_p4, %p3780_p9 }
 0x4b9   : > { %p2728_p7 = por %p2727_p13, %p2726_p12 }
 0x4ba   : > { %p2724_p11 = pneg %p2723_p1 }
 0x4bb   : > { %p2730_p6 = por %p2729_p0, %p2728_p7 }
 0x4bd   : > { %p2731_p2 = pnand %p2730_p6, %p2724_p11 }
 0x4bf   : > { %2734 = shalt.err (!%p2731_p2)
}
 0x4c0   : > { %s2812_s20 = smov 64   ;;  %s2813_s27 = smov 4  }
 0x4c1   : > { %2255 = dma.vmem_to_hbm [thread:$0]  (%p3780_p9), %s3678_s10, 512, %s3683_s11, %s1753_s2, %s2812_s20, %s2812_s20, %s2813_s27  }
 0x4c2 PF: > { %s1781_s25 = sand.u32 1, %s2781_s13   ;;  %p3781_p5 = scmp.ne.s32.totalorder %s3764_s28, 0 }
 0x4c3   : > { %p3782_p8 = scmp.ge.s32.totalorder %s2793_s16, 2  ;;  %s1782_s19 = scalar_lea.sflag [#allocation4], %s1781_s25 }
 0x4c5   : > { %p2290_p10 = pnand %p3782_p8, %p3781_p5 }
 0x4c7   : > { %2776 = dma.done.wait (!%p2290_p10), %s1782_s19, 512  }
 0x4c8   : > { %2778 = vsyncadd (!%p2290_p10), %s1782_s19, 4294966784  ;;  %p30_p3 = scmp.ge.s32.totalorder %s3087_s23, 4   ;;  %s3783_s13 = smov %s2785_s14 }
 0x4c9   : > { %s3784_s14 = smov %s2789_s15  ;;  %s3785_s15 = smov %s3098_s24 }
 0x4ca   : > { %s3786_s16 = smov %s3087_s23  ;;  %32 = sbr.rel (!%p30_p3) target bundleno = 18 (0x12), region = 160 }
 0x4d1   :  { %1787 = vsyncpa [#allocation3], 1 }
 0x4d2   :  { %1789 = vsyncpa [#allocation3 + $0x1], 1 }
 0x4d3   :  { %1790 = vsyncpa [#allocation6], 1 }
 0x4d4   :  { %1791 = vsyncpa [#allocation9], 1 }
 0x4d5   :  { %1792 = vsyncpa [#allocation12], 1 }
 0x4d6   :  { %1793 = vsyncpa [#allocation15], 1 }
 0x4d7   :  { %1794 = vsyncpa [#allocation18], 1 }
 0x4d8   :  { %1796 = vsyncpa [#allocation18 + $0x1], 1 }
 0x4d9   :  { %1797 = vsyncpa [#allocation4], 1 }
 0x4da   :  { %1799 = vsyncpa [#allocation4 + $0x1], 1 }

// kernel: _lambda_.10
= control target key start
LH: loop header
LB: loop body
LE: loop exit
PB: predicated region body
PF: predicated region fallthrough
CT: control target
= control target key end

     0   :  { %8 = vsyncpa [#allocation3], 0  ;;  %s1037_s0 = inlined_call_operand.hbm [shape: bf16[2,16,128], index: 0, kind: input, shape index: {}]   ;;  %s1038_s1 = inlined_call_operand.hbm [shape: bf16[128,128], index: 1, kind: input, shape index: {}]   ;;  %s1039_s2 = inlined_call_operand.hbm [shape: f32[1,128], index: 2, kind: input, shape index: {}]   ;;  %s1040_s3 = inlined_call_operand.hbm [shape: bf16[2,1,128], index: 3, kind: output, shape index: {}]  }
   0x1   :  { %10 = vsyncpa [#allocation3 + $0x1], 0 }
   0x2   :  { %11 = vsyncpa [#allocation6], 0 }
   0x3   :  { %12 = vsyncpa [#allocation4], 0 }
   0x4   :  { %14 = vsyncpa [#allocation4 + $0x1], 0  ;;  %s794_s12 = smov 0   ;;  %s796_s13 = smov 0  }
   0x5   :  { %s798_s14 = smov 0   ;;  %s800_s15 = smov 0  }
   0x6 LB: > { %s815_s16 = sadd.s32 4294967295, %s764_s15   ;;  %s463_s17 = sadd.s32 4294967294, %s764_s15   ;;  %s764_s15 = sphi %s800_s15, %s1060_s15   ;;  %s760_s14 = sphi %s798_s14, %s1059_s14   ;;  %s756_s13 = sphi %s796_s13, %s1058_s13   ;;  %s752_s12 = sphi %s794_s12, %s1057_s12  }
   0x7   : > { %p40_p0 = scmp.ne.s32.totalorder %s756_s13, %s752_s12  ;;  %p1041_p1 = scmp.eq.s32.totalorder %s815_s16, 0 }
   0x8   : > { %p112_p3 = scmp.eq.s32.totalorder %s463_s17, 1  ;;  %p464_p5 = scmp.ge.s32.totalorder %s764_s15, 1 }
   0x9   : > { %p824_p4 = por %p1041_p1, %p40_p0  ;;  %p119_p7 = scmp.lt.s32.totalorder %s764_s15, 3 }
   0xa   : > { %p829_p6 = por %p112_p3, %p40_p0  ;;  %s766_s21 = smov [#allocation5]  }
   0xb   : > { %s1044_s18 = scalar_select %p824_p4, 1, 0 }
   0xc   : > { %s1045_s19 = scalar_select %p829_p6, 1, 0 }
   0xd   : > { %p834_p8 = pnand %p464_p5, %p119_p7  ;;  %s131_s22 = sshll.u32 %s766_s21, 4  ;;  %s838_s22 = int_to_ptr.vmem [resolvable:$true] %s131_s22 }
   0xe   : > { %s767_s24 = smov [#allocation7]   ;;  %s608_s28 = scalar_lea.hbm %s1038_s1, 1024 }
   0xf   : > { %p532_p9 = pneg %p834_p8  ;;  %s145_s25 = sshll.u32 %s767_s24, 4  ;;  %s849_s25 = int_to_ptr.vmem [resolvable:$true] %s145_s25 }
  0x10   : > { %p609_p12 = scmp.ne.s32.totalorder %s1038_s1, %s608_s28  ;;  %p615_p5 = scmp.lt.u32.totalorder %s608_s28, %s1038_s1 }
  0x11   : > { %p845_p11 = pnand %p532_p9, %p1041_p1 }
  0x13   : > { %p610_p13 = pneg %p845_p11 }
  0x15   : > { %p611_p0 = pnand %p610_p13, %p609_p12 }
  0x17   : > { %p612_p3 = pneg %p611_p0 }
  0x19   : > { %p617_p7 = pnand %p615_p5, %p612_p3 }
  0x1b   : > { %620 = shalt.err (!%p617_p7)
}
  0x1c   : > { %s621_s6 = scalar_lea.vmem %s838_s22, 1024  ;;  %p629_p2 = scmp.lt.s32.totalorder %s838_s22, %s838_s22 }
  0x1d   : > { %p622_p9 = scmp.ne.s32.totalorder %s838_s22, %s621_s6  ;;  %p630_p12 = scmp.lt.s32.totalorder %s621_s6, %s621_s6 }
  0x1f   : > { %p624_p10 = pnand %p622_p9, %p610_p13  ;;  %p631_p0 = por %p630_p12, %p629_p2 }
  0x21   : > { %p625_p1 = pneg %p624_p10 }
  0x23   : > { %p632_p6 = pnand %p631_p0, %p625_p1 }
  0x25   : > { %635 = shalt.err (!%p632_p6)
}
  0x26   : > { %s768_s7 = smov 64   ;;  %s769_s8 = smov 4  }
  0x27   : > { %535 = dma.hbm_to_vmem [thread:$0]  (!%p845_p11), %s1038_s1, 1024, %s838_s22, [#allocation6], %s768_s7, %s768_s7, %s769_s8  }
  0x28   : > { %s636_s21 = scalar_lea.hbm %s1039_s2, 16 }
  0x29   : > { %p637_p1 = scmp.ne.s32.totalorder %s1039_s2, %s636_s21  ;;  %p643_p10 = scmp.lt.u32.totalorder %s636_s21, %s1039_s2 }
  0x2b   : > { %p639_p2 = pnand %p637_p1, %p610_p13 }
  0x2d   : > { %p640_p6 = pneg %p639_p2 }
  0x2f   : > { %p645_p3 = pnand %p643_p10, %p640_p6 }
  0x31   : > { %648 = shalt.err (!%p645_p3)
}
  0x32   : > { %s649_s22 = scalar_lea.vmem %s849_s25, 16  ;;  %s656_s29 = scalar_lea.vmem %s849_s25, 32 }
  0x33   : > { %p650_p5 = scmp.ne.s32.totalorder %s849_s25, %s649_s22  ;;  %p657_p12 = scmp.lt.s32.totalorder %s849_s25, %s849_s25 }
  0x34   : > { %p658_p0 = scmp.lt.s32.totalorder %s656_s29, %s649_s22 }
  0x35   : > { %p652_p7 = pnand %p650_p5, %p610_p13 }
  0x36   : > { %p659_p1 = por %p658_p0, %p657_p12 }
  0x37   : > { %p653_p9 = pneg %p652_p7 }
  0x39   : > { %p660_p2 = pnand %p659_p1, %p653_p9 }
  0x3b   : > { %663 = shalt.err (!%p660_p2)
}
  0x3c   : > { %538 = dma.hbm_to_vmem [thread:$0]  (!%p845_p11), %s1039_s2, 16, %s849_s25, [#allocation6]  }
  0x3d   : > { %s908_s5 = sadd.s32 1, %s764_s15   ;;  %s27_s23 = sadd.s32 1, %s760_s14 }
  0x3e   : > { %s24_s6 = ssub.s32 %s764_s15, %s908_s5  ;;  %p34_p13 = scmp.ne.s32.totalorder %s760_s14, %s756_s13 }
  0x3f   : > { %p25_p6 = scmp.eq.s32.totalorder %s24_s6, 0  ;;  %p35_p10 = scmp.eq.s32.totalorder %s764_s15, 0 }
  0x40   : > { %p1048_p3 = scmp.eq.s32.totalorder %s815_s16, 1  ;;  %p549_p7 = scmp.lt.s32.totalorder %s764_s15, 2 }
  0x41   : > { %s924_s10 = scalar_select %p25_p6, %s760_s14, %s27_s23  }
  0x42   : > { %p918_p5 = por %p1048_p3, %p34_p13  ;;  %p36_p9 = por %p35_p10, %p34_p13 }
  0x43   : > { %s156_s11 = sand.u32 1, %s760_s14   ;;  %s490_s25 = sshll.u32 %s764_s15, 7 }
  0x44   : > { %s1049_s9 = scalar_select %p918_p5, 1, 0 }
  0x45   : > { %s468_s17 = sshll.u32 %s156_s11, 3  ;;  %s931_s26 = scalar_lea.hbm %s1037_s0, %s490_s25 }
  0x46   : > { %s160_s27 = scalar_lea.vmem [#allocation2], %s468_s17  ;;  %p935_p11 = pnand %p549_p7, %p36_p9 }
  0x47   : > { %s167_s28 = sshll.u32 %s160_s27, 4  ;;  %s939_s29 = scalar_lea.sflag [#allocation3], %s156_s11  ;;  %s933_s28 = int_to_ptr.vmem [resolvable:$true] %s167_s28 }
  0x48   : > { %s664_s30 = scalar_lea.hbm %s931_s26, 128  ;;  %p666_p0 = pneg %p935_p11 }
  0x49   : > { %p665_p12 = scmp.ne.s32.totalorder %s931_s26, %s664_s30  ;;  %s669_s6 = scalar_lea.hbm %s1037_s0, 256 }
  0x4a   : > { %p670_p13 = scmp.lt.u32.totalorder %s931_s26, %s1037_s0  ;;  %p671_p6 = scmp.lt.u32.totalorder %s669_s6, %s664_s30 }
  0x4b   : > { %p667_p1 = pnand %p666_p0, %p665_p12  ;;  %p673_p3 = scmp.lt.u32.totalorder %s664_s30, %s931_s26 }
  0x4c   : > { %p672_p10 = por %p671_p6, %p670_p13 }
  0x4d   : > { %p668_p2 = pneg %p667_p1 }
  0x4e   : > { %p674_p7 = por %p673_p3, %p672_p10 }
  0x50   : > { %p675_p9 = pnand %p674_p7, %p668_p2 }
  0x52   : > { %678 = shalt.err (!%p675_p9)
}
  0x53   : > { %s679_s11 = scalar_lea.vmem %s933_s28, 128  ;;  %s770_s21 = smov [#allocation2]  }
  0x54   : > { %p680_p12 = scmp.ne.s32.totalorder %s933_s28, %s679_s11  ;;  %s684_s24 = sshll.u32 %s770_s21, 4  ;;  %s685_s24 = int_to_ptr.vmem [resolvable:$false] %s684_s24 }
  0x55   : > { %s686_s27 = scalar_lea.vmem %s685_s24, 256  ;;  %p687_p4 = scmp.lt.s32.totalorder %s933_s28, %s685_s24 }
  0x56   : > { %p682_p1 = pnand %p680_p12, %p666_p0  ;;  %p688_p13 = scmp.lt.s32.totalorder %s686_s27, %s679_s11 }
  0x58   : > { %p683_p5 = pneg %p682_p1  ;;  %p689_p6 = por %p688_p13, %p687_p4 }
  0x5a   : > { %p690_p10 = pnand %p689_p6, %p683_p5 }
  0x5c   : > { %693 = shalt.err (!%p690_p10)
}
  0x5d   : > { %542 = dma.hbm_to_vmem [thread:$0]  (!%p935_p11), %s931_s26, 128, %s933_s28, %s939_s29, %s768_s7, %s768_s7, %s769_s8  }
  0x5e   : > { %179 = sbr.rel (%p834_p8) target bundleno = 415 (0x19f), region = 32  ;;  %s973_s30 = sand.u32 (!%p834_p8), 1, %s756_s13  }
  0x5f   : > { %s472_s4 = sshll.u32 (!%p834_p8), %s973_s30, 3  ;;  %s182_s23 = scalar_lea.sflag (!%p834_p8), [#allocation3], %s973_s30 }
  0x60   : > { %s977_s6 = scalar_lea.vmem (!%p834_p8), [#allocation2], %s472_s4  ;;  %p1051_p4 = scmp.ne.s32.totalorder (!%p834_p8), %s1044_s18, 0 }
  0x65   : > { %739 = dma.done.wait (%p1051_p4), %s182_s23, 128  }
  0x66   : > { %741 = vsyncadd (%p1051_p4), %s182_s23, 4294967168  ;;  %p1052_p5 = scmp.eq.s32.totalorder %s815_s16, 0 }
  0x68   : > { %743 = dma.done.wait (%p1052_p5), [#allocation6], 1040   ;;  %p1053_p8 = pmov %p1052_p5 }
  0x69   : > { %v771_v0 = vmov 0.0   ;;  %vm772_vm0 = vmmov 0   ;;  %v591_v1 = vld [vmem:[#allocation5] sm:$0xff]   ;;  %v592_v2 = vld [vmem:[#allocation5 + $0x8] sm:$0xff]   ;;  %v593_v3 = vld [vmem:[#allocation5 + $0x10] sm:$0xff]   ;;  %vm359_vm1 = vcmask 1040384  }
  0x6a   : > { %745 = vsyncadd (%p1053_p8), [#allocation6], 4294966256  ;;  %500 = vmatprep.subr.bf16.mxu0 %v771_v0  ;;  %516 = vmatprep.mubr.msk.bf16.mxu0 %vm772_vm0, %v771_v0  ;;  %v594_v4 = vld [vmem:[#allocation5 + $0x18] sm:$0xff]   ;;  %v595_v5 = vld [vmem:[#allocation5 + $0x20] sm:$0xff]   ;;  %vm360_vm2 = vsmask.f32 256 }
  0x6b   : > { %501 = vmatpush3.bf16.msra.mxu0 %v591_v1  ;;  %v596_v6 = vld [vmem:[#allocation5 + $0x28] sm:$0xff]   ;;  %v597_v7 = vld [vmem:[#allocation5 + $0x30] sm:$0xff]   ;;  %v598_v8 = vld [vmem:[#allocation5 + $0x38] sm:$0xff]   ;;  %s487_s18 = sshll.u32 %s815_s16, 4  ;;  %s214_s20 = scalar_lea.vmem [#allocation8], %s973_s30 }
  0x6c   : > { %502 = vmatprep.subr.bf16.mxu0 %v771_v0  ;;  %v599_v9 = vld [vmem:[%s977_s6] sm:$0xff]   ;;  %v475_v10 = vld [vmem:[#allocation7] ss:$0 sm:$0xff]  ;;  %s378_s7 = sshll.u32 %s214_s20, 4  ;;  %vm361_vm3 = vmand %vm359_vm1, %vm360_vm2  ;;  %s993_s28 = scalar_lea.hbm %s1040_s3, %s487_s18  ;;  %s995_s7 = int_to_ptr.vmem [resolvable:$true] %s378_s7 }
  0x6d   : > { %v362_v35 = vld [vmem:[%s214_s20] sm:$0x1]  ;;  %s366_s22 = scalar_lea.sflag [#allocation4], %s973_s30  ;;  %s694_s29 = scalar_lea.vmem %s995_s7, 16 }
  0x6e   : > { %p695_p11 = scmp.ne.s32.totalorder %s995_s7, %s694_s29  ;;  %p1054_p0 = scmp.ne.s32.totalorder %s1049_s9, 0 }
  0x6f   : > { %503 = vmatpush3.bf16.msra.mxu0 %v592_v2  ;;  %s773_s16 = smov [#allocation8]  }
  0x70   : > { %504 = vmatprep.subr.bf16.mxu0 %v771_v0  ;;  %p696_p2 = pnand %p695_p11, %p1054_p0  ;;  %s698_s17 = sshll.u32 %s773_s16, 4  ;;  %s699_s17 = int_to_ptr.vmem [resolvable:$false] %s698_s17 }
  0x71   : > { %s700_s25 = scalar_lea.vmem %s699_s17, 32  ;;  %p701_p7 = scmp.lt.s32.totalorder %s995_s7, %s699_s17 }
  0x72   : > { %p697_p3 = pneg %p696_p2  ;;  %p702_p9 = scmp.lt.s32.totalorder %s700_s25, %s694_s29 }
  0x73   : > { %505 = vmatpush3.bf16.msra.mxu0 %v593_v3 }
  0x74   : > { %506 = vmatprep.subr.bf16.mxu0 %v771_v0  ;;  %p703_p12 = por %p702_p9, %p701_p7 }
  0x76   : > { %p704_p1 = pnand %p703_p12, %p697_p3 }
  0x77   : > { %507 = vmatpush3.bf16.msra.mxu0 %v594_v4 }
  0x78   : > { %508 = vmatprep.subr.bf16.mxu0 %v771_v0 }
  0x7b   : > { %509 = vmatpush3.bf16.msra.mxu0 %v595_v5 }
  0x7c   : > { %510 = vmatprep.subr.bf16.mxu0 %v771_v0 }
  0x7f   : > { %511 = vmatpush3.bf16.msra.mxu0 %v596_v6 }
  0x80   : > { %512 = vmatprep.subr.bf16.mxu0 %v771_v0 }
  0x83   : > { %513 = vmatpush3.bf16.msra.mxu0 %v597_v7 }
  0x84   : > { %514 = vmatprep.subr.bf16.mxu0 %v771_v0 }
  0x87   : > { %515 = vmatpush3.bf16.msra.mxu0 %v598_v8 }
  0x8a   : > { %517 = vmatmul.mubr.bf16.vlgmr.msra.gmra.mrb[0].mxu0 %v599_v9 }
 0x15d   : > { %v329_v11 = vpop.f32.mrb[0].mxu0 }
 0x15e   : > { %v330_v12 = vadd.f32 %v475_v10, %v329_v11  ;;  %v518_v13 = vpop.f32.mrb[1].mxu0 }
 0x15f   : > { %v332_v14 = vpop.f32.mrb[2].mxu0 }
 0x160   : > { %v485_v15 = vmul.f32 -1.442695, %v330_v12  ;;  %v333_v16 = vadd.f32 %v475_v10, %v332_v14  ;;  %v519_v17 = vpop.f32.mrb[3].mxu0 }
 0x162   : > { %600 = vpow2.f32 %v485_v15  ;;  %v486_v18 = vmul.f32 -1.442695, %v333_v16 }
 0x164   : > { %602 = vpow2.f32 %v486_v18 }
 0x16c   : > { %v601_v19 = vpop.eup %600 }
 0x16d   : > { %v342_v20 = vadd.f32 1.0, %v601_v19 }
 0x16e   : > { %v603_v21 = vpop.eup %602 }
 0x16f   : > { %604 = vrcp.f32 %v342_v20  ;;  %v343_v22 = vadd.f32 1.0, %v603_v21 }
 0x171   : > { %606 = vrcp.f32 %v343_v22 }
 0x179   : > { %v605_v23 = vpop.eup %604 }
 0x17a   : > { %v348_v25 = vmul.f32 %v605_v23, %v330_v12 }
 0x17b   : > { %v607_v24 = vpop.eup %606 }
 0x17c   : > { %v349_v26 = vmul.f32 %v607_v24, %v333_v16 }
 0x17e   : > { %v350_v27 = vadd.f32 %v349_v26, %v348_v25 }
 0x180   : > { %v351_v28 = vrot.slane %v350_v27, 4 }
 0x182   : > { %v352_v29 = vadd.f32 %v351_v28, %v350_v27 }
 0x184   : > { %v353_v30 = vrot.slane %v352_v29, 2 }
 0x186   : > { %v354_v31 = vadd.f32 %v353_v30, %v352_v29 }
 0x188   : > { %v355_v32 = vrot.slane %v354_v31, 1 }
 0x18a   : > { %v356_v33 = vadd.f32 %v355_v32, %v354_v31 }
 0x18c   : > { %v357_v34 = vmul.f32 0.0625, %v356_v33 }
 0x18e   : > { %v358_v36 = vpack.c.bf16 %v357_v34, %v357_v34 }
 0x190   : > { %v363_v37 = vsel %vm361_vm3, %v358_v36, %v362_v35 }
 0x191   : > { %364 = vst [vmem:[%s214_s20] sm:$0x1] %v363_v37 }
 0x192   : > { %707 = shalt.err (!%p704_p1)
}
 0x193   : > { %s708_s11 = scalar_lea.hbm %s993_s28, 16  ;;  %s712_s27 = scalar_lea.hbm %s1040_s3, 32 }
 0x194   : > { %p709_p13 = scmp.ne.s32.totalorder %s993_s28, %s708_s11  ;;  %p713_p4 = scmp.lt.u32.totalorder %s993_s28, %s1040_s3 }
 0x195   : > { %p714_p5 = scmp.lt.u32.totalorder %s712_s27, %s708_s11  ;;  %p716_p11 = scmp.lt.u32.totalorder %s708_s11, %s993_s28 }
 0x196   : > { %p710_p6 = pnand %p709_p13, %p1054_p0 }
 0x197   : > { %p715_p8 = por %p714_p5, %p713_p4 }
 0x198   : > { %p711_p10 = pneg %p710_p6 }
 0x199   : > { %p717_p2 = por %p716_p11, %p715_p8 }
 0x19b   : > { %p718_p3 = pnand %p717_p2, %p711_p10 }
 0x19d   : > { %721 = shalt.err (!%p718_p3)
}
 0x19e   : > { %530 = dma.vmem_to_hbm [thread:$0]  (%p1054_p0), %s995_s7, 16, %s993_s28, %s366_s22  }
 0x19f PF: > { %s390_s23 = sand.u32 1, %s752_s12   ;;  %p1055_p7 = scmp.ne.s32.totalorder %s1045_s19, 0 }
 0x1a0   : > { %p1056_p9 = scmp.ge.s32.totalorder %s764_s15, 2  ;;  %s391_s6 = scalar_lea.sflag [#allocation4], %s390_s23 }
 0x1a2   : > { %p544_p12 = pnand %p1056_p9, %p1055_p7 }
 0x1a4   : > { %747 = dma.done.wait (!%p544_p12), %s391_s6, 16  }
 0x1a5   : > { %749 = vsyncadd (!%p544_p12), %s391_s6, 4294967280  ;;  %p17_p1 = scmp.ge.s32.totalorder %s908_s5, 4   ;;  %s1057_s12 = smov %s756_s13 }
 0x1a6   : > { %s1058_s13 = smov %s760_s14  ;;  %s1059_s14 = smov %s924_s10 }
 0x1a7   : > { %s1060_s15 = smov %s908_s5  ;;  %19 = sbr.rel (!%p17_p1) target bundleno = 6 (0x6), region = 85 }
 0x1ae   :  { %395 = vsyncpa [#allocation3], 1 }
 0x1af   :  { %397 = vsyncpa [#allocation3 + $0x1], 1 }
 0x1b0   :  { %398 = vsyncpa [#allocation6], 1 }
 0x1b1   :  { %399 = vsyncpa [#allocation4], 1 }
 0x1b2   :  { %401 = vsyncpa [#allocation4 + $0x1], 1 }

// kernel: _lambda_.11
= control target key start
LH: loop header
LB: loop body
LE: loop exit
PB: predicated region body
PF: predicated region fallthrough
CT: control target
= control target key end

     0   :  { %8 = vsyncpa [#allocation3], 0  ;;  %s406_s0 = inlined_call_operand.hbm [shape: bf16[2,128], index: 0, kind: input, shape index: {}]   ;;  %s407_s1 = inlined_call_operand.hbm [shape: bf16[128,128], index: 1, kind: input, shape index: {}]   ;;  %s408_s2 = inlined_call_operand.hbm [shape: f32[1,128], index: 2, kind: input, shape index: {}]   ;;  %s409_s3 = inlined_call_operand.hbm [shape: f32[2,128], index: 3, kind: output, shape index: {}]  }
   0x1   :  { %9 = vsyncpa [#allocation6], 0 }
   0x2   :  { %10 = vsyncpa [#allocation4], 0  ;;  %s330_s12 = smov [#allocation5]   ;;  %s236_s16 = scalar_lea.hbm %s407_s1, 1024 }
   0x3   :  { %s26_s13 = sshll.u32 %s330_s12, 4  ;;  %p237_p0 = scmp.ne.s32.totalorder %s407_s1, %s236_s16  ;;  %s27_s13 = int_to_ptr.vmem [resolvable:$true] %s26_s13 }
   0x4   :  { %p240_p1 = scmp.lt.u32.totalorder %s236_s16, %s407_s1 }
   0x6   :  { %p242_p2 = pnand %p240_p1, %p237_p0 }
   0x8   :  { %245 = shalt.err (!%p242_p2)
}
   0x9   :  { %s246_s21 = scalar_lea.vmem %s27_s13, 1024  ;;  %p251_p4 = scmp.lt.s32.totalorder %s27_s13, %s27_s13 }
   0xa   :  { %p247_p3 = scmp.ne.s32.totalorder %s27_s13, %s246_s21  ;;  %p252_p5 = scmp.lt.s32.totalorder %s246_s21, %s246_s21 }
   0xc   :  { %p253_p6 = por %p252_p5, %p251_p4 }
   0xe   :  { %p254_p7 = pnand %p253_p6, %p247_p3 }
  0x10   :  { %257 = shalt.err (!%p254_p7)
}
  0x11   :  { %s331_s22 = smov 64   ;;  %s332_s23 = smov 4  }
  0x12   :  { %32 = dma.hbm_to_vmem [thread:$0]  %s407_s1, 1024, %s27_s13, [#allocation6], %s331_s22, %s331_s22, %s332_s23  }
  0x13   :  { %s333_s26 = smov [#allocation2]   ;;  %s334_s28 = smov [#allocation7]  }
  0x14   :  { %s17_s27 = sshll.u32 %s333_s26, 4  ;;  %s39_s29 = sshll.u32 %s334_s28, 4  ;;  %s18_s27 = int_to_ptr.vmem [resolvable:$true] %s17_s27  ;;  %s40_s29 = int_to_ptr.vmem [resolvable:$true] %s39_s29 }
  0x15   :  { %s258_s5 = scalar_lea.hbm %s406_s0, 16 }
  0x16   :  { %p259_p8 = scmp.ne.s32.totalorder %s406_s0, %s258_s5  ;;  %p262_p9 = scmp.lt.u32.totalorder %s258_s5, %s406_s0 }
  0x18   :  { %p264_p10 = pnand %p262_p9, %p259_p8 }
  0x1a   :  { %267 = shalt.err (!%p264_p10)
}
  0x1b   :  { %s268_s1 = scalar_lea.vmem %s18_s27, 16  ;;  %s272_s10 = scalar_lea.vmem %s18_s27, 32 }
  0x1c   :  { %p269_p11 = scmp.ne.s32.totalorder %s18_s27, %s268_s1  ;;  %p273_p12 = scmp.lt.s32.totalorder %s18_s27, %s18_s27 }
  0x1d   :  { %p274_p13 = scmp.lt.s32.totalorder %s272_s10, %s268_s1 }
  0x1f   :  { %p275_p0 = por %p274_p13, %p273_p12 }
  0x21   :  { %p276_p1 = pnand %p275_p0, %p269_p11 }
  0x23   :  { %279 = shalt.err (!%p276_p1)
}
  0x24   :  { %20 = dma.hbm_to_vmem [thread:$0]  %s406_s0, 16, %s18_s27, [#allocation3]  }
  0x25   :  { %s280_s15 = scalar_lea.hbm %s408_s2, 16 }
  0x26   :  { %p281_p2 = scmp.ne.s32.totalorder %s408_s2, %s280_s15  ;;  %p284_p3 = scmp.lt.u32.totalorder %s280_s15, %s408_s2 }
  0x28   :  { %p286_p4 = pnand %p284_p3, %p281_p2 }
  0x2a   :  { %289 = shalt.err (!%p286_p4)
}
  0x2b   :  { %s290_s20 = scalar_lea.vmem %s40_s29, 16  ;;  %s294_s21 = scalar_lea.vmem %s40_s29, 32 }
  0x2c   :  { %p291_p5 = scmp.ne.s32.totalorder %s40_s29, %s290_s20  ;;  %p295_p6 = scmp.lt.s32.totalorder %s40_s29, %s40_s29 }
  0x2d   :  { %p296_p7 = scmp.lt.s32.totalorder %s294_s21, %s290_s20 }
  0x2f   :  { %p297_p8 = por %p296_p7, %p295_p6 }
  0x31   :  { %p298_p9 = pnand %p297_p8, %p291_p5 }
  0x33   :  { %301 = shalt.err (!%p298_p9)
}
  0x34   :  { %42 = dma.hbm_to_vmem [thread:$0]  %s408_s2, 16, %s40_s29, [#allocation6]  }
  0x35   :  { %324 = dma.done.wait [#allocation3], 16  }
  0x36   :  { %325 = vsyncadd [#allocation3], 4294967280 }
  0x37   :  { %326 = dma.done.wait [#allocation6], 1040  }
  0x38   :  { %327 = vsyncadd [#allocation6], 4294966256  ;;  %v335_v0 = vmov 0.0   ;;  %vm336_vm0 = vmmov 0   ;;  %v228_v1 = vld [vmem:[#allocation5] sm:$0xff]   ;;  %v229_v2 = vld [vmem:[#allocation5 + $0x8] sm:$0xff]  }
  0x39   :  { %200 = vmatprep.subr.bf16.mxu0 %v335_v0  ;;  %216 = vmatprep.mubr.msk.bf16.mxu0 %vm336_vm0, %v335_v0  ;;  %v230_v3 = vld [vmem:[#allocation5 + $0x10] sm:$0xff]   ;;  %v231_v4 = vld [vmem:[#allocation5 + $0x18] sm:$0xff]   ;;  %v232_v5 = vld [vmem:[#allocation5 + $0x20] sm:$0xff]   ;;  %s337_s2 = smov [#allocation8]  }
  0x3a   :  { %201 = vmatpush3.bf16.msra.mxu0 %v228_v1  ;;  %v233_v6 = vld [vmem:[#allocation5 + $0x28] sm:$0xff]   ;;  %v234_v7 = vld [vmem:[#allocation5 + $0x30] sm:$0xff]   ;;  %v235_v8 = vld [vmem:[#allocation5 + $0x38] sm:$0xff]   ;;  %s172_s23 = sshll.u32 %s337_s2, 4  ;;  %s173_s23 = int_to_ptr.vmem [resolvable:$true] %s172_s23 }
  0x3b   :  { %202 = vmatprep.subr.bf16.mxu0 %v335_v0  ;;  %v53_v9 = vld [vmem:[#allocation2] sm:$0x1]  ;;  %v182_v10 = vld [vmem:[#allocation7] ss:$0 sm:$0xff]  ;;  %s302_s24 = scalar_lea.vmem %s173_s23, 32  ;;  %p307_p11 = scmp.lt.s32.totalorder %s173_s23, %s173_s23 }
  0x3c   :  { %p303_p10 = scmp.ne.s32.totalorder %s173_s23, %s302_s24  ;;  %p308_p12 = scmp.lt.s32.totalorder %s302_s24, %s302_s24 }
  0x3e   :  { %203 = vmatpush3.bf16.msra.mxu0 %v229_v2  ;;  %p309_p13 = por %p308_p12, %p307_p11 }
  0x3f   :  { %204 = vmatprep.subr.bf16.mxu0 %v335_v0 }
  0x40   :  { %p310_p0 = pnand %p309_p13, %p303_p10 }
  0x42   :  { %205 = vmatpush3.bf16.msra.mxu0 %v230_v3 }
  0x43   :  { %206 = vmatprep.subr.bf16.mxu0 %v335_v0 }
  0x46   :  { %207 = vmatpush3.bf16.msra.mxu0 %v231_v4 }
  0x47   :  { %208 = vmatprep.subr.bf16.mxu0 %v335_v0 }
  0x4a   :  { %209 = vmatpush3.bf16.msra.mxu0 %v232_v5 }
  0x4b   :  { %210 = vmatprep.subr.bf16.mxu0 %v335_v0 }
  0x4e   :  { %211 = vmatpush3.bf16.msra.mxu0 %v233_v6 }
  0x4f   :  { %212 = vmatprep.subr.bf16.mxu0 %v335_v0 }
  0x52   :  { %213 = vmatpush3.bf16.msra.mxu0 %v234_v7 }
  0x53   :  { %214 = vmatprep.subr.bf16.mxu0 %v335_v0 }
  0x56   :  { %215 = vmatpush3.bf16.msra.mxu0 %v235_v8 }
  0x59   :  { %217 = vmatmul.mubr.bf16.vlgmr.msra.gmra.mrb[0].mxu0 %v53_v9 }
 0x12c   :  { %v159_v11 = vpop.f32.mrb[0].mxu0 }
 0x12d   :  { %v160_v12 = vadd.f32 %v182_v10, %v159_v11  ;;  %v218_v13 = vpop.f32.mrb[1].mxu0 }
 0x12e   :  { %v162_v14 = vpop.f32.mrb[2].mxu0 }
 0x12f   :  { %165 = vst [vmem:[#allocation8] sm:$0x3] %v160_v12  ;;  %v219_v15 = vpop.f32.mrb[3].mxu0 }
 0x130   :  { %313 = shalt.err (!%p310_p0)
}
 0x131   :  { %s314_s27 = scalar_lea.hbm %s409_s3, 32 }
 0x132   :  { %p315_p1 = scmp.ne.s32.totalorder %s409_s3, %s314_s27  ;;  %p318_p2 = scmp.lt.u32.totalorder %s314_s27, %s409_s3 }
 0x134   :  { %p320_p3 = pnand %p318_p2, %p315_p1 }
 0x136   :  { %323 = shalt.err (!%p320_p3)
}
 0x137   :  { %175 = dma.vmem_to_hbm [thread:$0]  %s173_s23, 32, %s409_s3, [#allocation4]  }
 0x138   :  { %328 = dma.done.wait [#allocation4], 32  }
 0x139   :  { %329 = vsyncadd [#allocation4], 4294967264 }
 0x13a   :  { %179 = vsyncpa [#allocation3], 1 }
 0x13b   :  { %180 = vsyncpa [#allocation6], 1 }
 0x13c   :  { %181 = vsyncpa [#allocation4], 1 }

// kernel: _lambda_.9
= control target key start
LH: loop header
LB: loop body
LE: loop exit
PB: predicated region body
PF: predicated region fallthrough
CT: control target
= control target key end

     0   :  { %s2539_s0 = inlined_call_operand.hbm [shape: bf16[2,20,5,128], index: 0, kind: input, shape index: {}]   ;;  %s2540_s1 = inlined_call_operand.hbm [shape: f32[9,1,128], index: 1, kind: input, shape index: {}]   ;;  %s2541_s2 = inlined_call_operand.hbm [shape: f32[1,128], index: 2, kind: input, shape index: {}]   ;;  %s2542_s3 = inlined_call_operand.hbm [shape: bf16[128,128], index: 3, kind: input, shape index: {}]   ;;  %s2543_s4 = inlined_call_operand.hbm [shape: f32[1,128], index: 4, kind: input, shape index: {}]   ;;  %s2544_s5 = inlined_call_operand.hbm [shape: bf16[128,128], index: 5, kind: input, shape index: {}]   ;;  %s2545_s6 = inlined_call_operand.hbm [shape: f32[1,128], index: 6, kind: input, shape index: {}]   ;;  %s2546_s7 = inlined_call_operand.hbm [shape: bf16[128,128], index: 7, kind: input, shape index: {}]   ;;  %s2547_s8 = inlined_call_operand.hbm [shape: f32[1,128], index: 8, kind: input, shape index: {}]   ;;  %s2548_s9 = inlined_call_operand.hbm [shape: bf16[2,16,128], index: 9, kind: output, shape index: {}]  }
   0x1   :  { %2555 = sst [smem:[#allocation24_spill]] %s2540_s1 }
   0x2   :  { %2556 = sst [smem:[#allocation25_spill]] %s2541_s2 }
   0x3   :  { %2557 = sst [smem:[#allocation26_spill]] %s2548_s9 }
   0x4   :  { %14 = vsyncpa [#allocation3], 0 }
   0x5   :  { %16 = vsyncpa [#allocation3 + $0x1], 0 }
   0x6   :  { %17 = vsyncpa [#allocation6], 0 }
   0x7   :  { %18 = vsyncpa [#allocation9], 0 }
   0x8   :  { %19 = vsyncpa [#allocation12], 0 }
   0x9   :  { %20 = vsyncpa [#allocation15], 0 }
   0xa   :  { %21 = vsyncpa [#allocation4], 0 }
   0xb   :  { %23 = vsyncpa [#allocation4 + $0x1], 0  ;;  %s2086_s30 = smov 0   ;;  %s2088_s10 = smov 0  }
   0xc   :  { %s2090_s11 = smov 0   ;;  %s2092_s12 = smov 0  }
   0xd LB: > { %s2018_s13 = smov [#allocation5]   ;;  %s2107_s15 = sadd.s32 4294967295, %s2016_s12   ;;  %s2016_s12 = sphi %s2092_s12, %s2586_s12   ;;  %s2012_s11 = sphi %s2090_s11, %s2585_s11   ;;  %s2008_s10 = sphi %s2088_s10, %s2584_s10   ;;  %s2004_s30 = sphi %s2086_s30, %s2583_s30  }
   0xe   : > { %s266_s14 = sshll.u32 %s2018_s13, 4  ;;  %p1302_p0 = scmp.ge.s32.totalorder %s2016_s12, 1  ;;  %s2112_s14 = int_to_ptr.vmem [resolvable:$true] %s266_s14 }
   0xf   : > { %p2550_p1 = scmp.eq.s32.totalorder %s2107_s15, 0  ;;  %p254_p2 = scmp.lt.s32.totalorder %s2016_s12, 3 }
  0x10   : > { %s2019_s17 = smov [#allocation8]   ;;  %s2020_s20 = smov [#allocation11]  }
  0x11   : > { %p2114_p3 = pnand %p1302_p0, %p254_p2  ;;  %s290_s18 = sshll.u32 %s2019_s17, 4  ;;  %s2127_s18 = int_to_ptr.vmem [resolvable:$true] %s290_s18 }
  0x12   : > { %s2129_s21 = sshll.u32 %s2020_s20, 4  ;;  %s2560_s1 = sld [smem:[#allocation24_spill]]  ;;  %s315_s21 = int_to_ptr.vmem [resolvable:$true] %s2129_s21 }
  0x13   : > { %s2558_s16 = scalar_select %p2114_p3, 1, 0 }
  0x14   : > { %p1533_p5 = pneg %p2114_p3 }
  0x16   : > { %p2123_p6 = pnand %p1533_p5, %p2550_p1 }
  0x18   : > { %s1680_s24 = scalar_lea.hbm %s2560_s1, 144  ;;  %p2139_p8 = pneg %p2123_p6 }
  0x19   : > { %p1681_p7 = scmp.ne.s32.totalorder %s2560_s1, %s1680_s24  ;;  %p1687_p11 = scmp.lt.u32.totalorder %s1680_s24, %s2560_s1 }
  0x1b   : > { %p1683_p9 = pnand %p2139_p8, %p1681_p7 }
  0x1d   : > { %p1684_p10 = pneg %p1683_p9 }
  0x1f   : > { %p1689_p12 = pnand %p1687_p11, %p1684_p10 }
  0x21   : > { %1692 = shalt.err (!%p1689_p12)
}
  0x22   : > { %s1693_s13 = scalar_lea.vmem %s2112_s14, 144  ;;  %s1700_s17 = scalar_lea.vmem %s2112_s14, 160 }
  0x23   : > { %p1694_p13 = scmp.ne.s32.totalorder %s2112_s14, %s1693_s13  ;;  %p1701_p5 = scmp.lt.s32.totalorder %s2112_s14, %s2112_s14 }
  0x24   : > { %p1702_p7 = scmp.lt.s32.totalorder %s1700_s17, %s1693_s13 }
  0x25   : > { %p1696_p0 = pnand %p1694_p13, %p2139_p8 }
  0x26   : > { %p1703_p9 = por %p1702_p7, %p1701_p5 }
  0x27   : > { %p1697_p2 = pneg %p1696_p0 }
  0x29   : > { %p1704_p4 = pnand %p1703_p9, %p1697_p2 }
  0x2b   : > { %1707 = shalt.err (!%p1704_p4)
}
  0x2c   : > { %s2021_s20 = smov 16   ;;  %s2022_s22 = smov 1  }
  0x2d   : > { %1536 = dma.hbm_to_vmem [thread:$0]  (!%p2123_p6), %s2560_s1, 144, %s2112_s14, [#allocation6], %s2021_s20, %s2021_s20, %s2022_s22  }
  0x2e   : > { %s1708_s28 = scalar_lea.hbm %s2542_s3, 1024 }
  0x2f   : > { %p1709_p10 = scmp.ne.s32.totalorder %s2542_s3, %s1708_s28  ;;  %p1715_p12 = scmp.lt.u32.totalorder %s1708_s28, %s2542_s3 }
  0x31   : > { %p1711_p4 = pnand %p1709_p10, %p2139_p8 }
  0x33   : > { %p1712_p11 = pneg %p1711_p4 }
  0x35   : > { %p1717_p13 = pnand %p1715_p12, %p1712_p11 }
  0x37   : > { %1720 = shalt.err (!%p1717_p13)
}
  0x38   : > { %s1721_s14 = scalar_lea.vmem %s2127_s18, 1024  ;;  %p1729_p7 = scmp.lt.s32.totalorder %s2127_s18, %s2127_s18 }
  0x39   : > { %p1722_p0 = scmp.ne.s32.totalorder %s2127_s18, %s1721_s14  ;;  %p1730_p9 = scmp.lt.s32.totalorder %s1721_s14, %s1721_s14 }
  0x3b   : > { %p1724_p2 = pnand %p1722_p0, %p2139_p8  ;;  %p1731_p10 = por %p1730_p9, %p1729_p7 }
  0x3d   : > { %p1725_p5 = pneg %p1724_p2 }
  0x3f   : > { %p1732_p4 = pnand %p1731_p10, %p1725_p5 }
  0x41   : > { %1735 = shalt.err (!%p1732_p4)
}
  0x42   : > { %s2552_s9 = smov 64   ;;  %s2553_s20 = smov 4  }
  0x43   : > { %1542 = dma.hbm_to_vmem [thread:$0]  (!%p2123_p6), %s2542_s3, 1024, %s2127_s18, [#allocation9], %s2552_s9, %s2552_s9, %s2553_s20  }
  0x44   : > { %s1736_s26 = scalar_lea.hbm %s2544_s5, 1024 }
  0x45   : > { %p1737_p11 = scmp.ne.s32.totalorder %s2544_s5, %s1736_s26  ;;  %p1743_p0 = scmp.lt.u32.totalorder %s1736_s26, %s2544_s5 }
  0x47   : > { %p1739_p12 = pnand %p1737_p11, %p2139_p8 }
  0x49   : > { %p1740_p13 = pneg %p1739_p12 }
  0x4b   : > { %p1745_p2 = pnand %p1743_p0, %p1740_p13 }
  0x4d   : > { %1748 = shalt.err (!%p1745_p2)
}
  0x4e   : > { %s1749_s14 = scalar_lea.vmem %s315_s21, 1024  ;;  %p1757_p10 = scmp.lt.s32.totalorder %s315_s21, %s315_s21 }
  0x4f   : > { %p1750_p5 = scmp.ne.s32.totalorder %s315_s21, %s1749_s14  ;;  %p1758_p4 = scmp.lt.s32.totalorder %s1749_s14, %s1749_s14 }
  0x51   : > { %p1752_p7 = pnand %p1750_p5, %p2139_p8  ;;  %p1759_p1 = por %p1758_p4, %p1757_p10 }
  0x53   : > { %p1753_p9 = pneg %p1752_p7 }
  0x55   : > { %p1760_p3 = pnand %p1759_p1, %p1753_p9 }
  0x57   : > { %1763 = shalt.err (!%p1760_p3)
}
  0x58   : > { %1548 = dma.hbm_to_vmem [thread:$0]  (!%p2123_p6), %s2544_s5, 1024, %s315_s21, [#allocation12], %s2552_s9, %s2552_s9, %s2553_s20  }
  0x59   : > { %s2025_s23 = smov [#allocation14]   ;;  %s2026_s25 = smov [#allocation7]  }
  0x5a   : > { %s338_s24 = sshll.u32 %s2025_s23, 4  ;;  %s280_s26 = sshll.u32 %s2026_s25, 4  ;;  %s339_s24 = int_to_ptr.vmem [resolvable:$true] %s338_s24  ;;  %s281_s26 = int_to_ptr.vmem [resolvable:$true] %s280_s26 }
  0x5b   : > { %s1764_s13 = scalar_lea.hbm %s2546_s7, 1024 }
  0x5c   : > { %p1765_p1 = scmp.ne.s32.totalorder %s2546_s7, %s1764_s13  ;;  %p1771_p12 = scmp.lt.u32.totalorder %s1764_s13, %s2546_s7 }
  0x5e   : > { %p1767_p3 = pnand %p1765_p1, %p2139_p8 }
  0x60   : > { %p1768_p11 = pneg %p1767_p3 }
  0x62   : > { %p1773_p13 = pnand %p1771_p12, %p1768_p11 }
  0x64   : > { %1776 = shalt.err (!%p1773_p13)
}
  0x65   : > { %s1777_s21 = scalar_lea.vmem %s339_s24, 1024  ;;  %p1785_p7 = scmp.lt.s32.totalorder %s339_s24, %s339_s24 }
  0x66   : > { %p1778_p0 = scmp.ne.s32.totalorder %s339_s24, %s1777_s21  ;;  %p1786_p9 = scmp.lt.s32.totalorder %s1777_s21, %s1777_s21 }
  0x68   : > { %p1780_p2 = pnand %p1778_p0, %p2139_p8  ;;  %p1787_p10 = por %p1786_p9, %p1785_p7 }
  0x6a   : > { %p1781_p5 = pneg %p1780_p2 }
  0x6c   : > { %p1788_p4 = pnand %p1787_p10, %p1781_p5 }
  0x6e   : > { %1791 = shalt.err (!%p1788_p4)
}
  0x6f   : > { %1554 = dma.hbm_to_vmem [thread:$0]  (!%p2123_p6), %s2546_s7, 1024, %s339_s24, [#allocation15], %s2552_s9, %s2552_s9, %s2553_s20  }
  0x70   : > { %s2562_s2 = sld [smem:[#allocation25_spill]] }
  0x76   : > { %s1792_s28 = scalar_lea.hbm %s2562_s2, 16 }
  0x77   : > { %p1793_p1 = scmp.ne.s32.totalorder %s2562_s2, %s1792_s28  ;;  %p1799_p12 = scmp.lt.u32.totalorder %s1792_s28, %s2562_s2 }
  0x79   : > { %p1795_p3 = pnand %p1793_p1, %p2139_p8 }
  0x7b   : > { %p1796_p11 = pneg %p1795_p3 }
  0x7d   : > { %p1801_p13 = pnand %p1799_p12, %p1796_p11 }
  0x7f   : > { %1804 = shalt.err (!%p1801_p13)
}
  0x80   : > { %s1805_s18 = scalar_lea.vmem %s281_s26, 16  ;;  %s1812_s24 = scalar_lea.vmem %s281_s26, 32 }
  0x81   : > { %p1806_p0 = scmp.ne.s32.totalorder %s281_s26, %s1805_s18  ;;  %p1813_p7 = scmp.lt.s32.totalorder %s281_s26, %s281_s26 }
  0x82   : > { %p1814_p9 = scmp.lt.s32.totalorder %s1812_s24, %s1805_s18 }
  0x83   : > { %p1808_p2 = pnand %p1806_p0, %p2139_p8 }
  0x84   : > { %p1815_p10 = por %p1814_p9, %p1813_p7 }
  0x85   : > { %p1809_p5 = pneg %p1808_p2 }
  0x87   : > { %p1816_p4 = pnand %p1815_p10, %p1809_p5 }
  0x89   : > { %1819 = shalt.err (!%p1816_p4)
}
  0x8a   : > { %1539 = dma.hbm_to_vmem [thread:$0]  (!%p2123_p6), %s2562_s2, 16, %s281_s26, [#allocation6]  }
  0x8b   : > { %s2027_s22 = smov [#allocation10]   ;;  %s2028_s25 = smov [#allocation13]  }
  0x8c   : > { %s304_s23 = sshll.u32 %s2027_s22, 4  ;;  %s328_s28 = sshll.u32 %s2028_s25, 4  ;;  %s305_s23 = int_to_ptr.vmem [resolvable:$true] %s304_s23  ;;  %s329_s28 = int_to_ptr.vmem [resolvable:$true] %s328_s28 }
  0x8d   : > { %s1820_s17 = scalar_lea.hbm %s2543_s4, 16 }
  0x8e   : > { %p1821_p1 = scmp.ne.s32.totalorder %s2543_s4, %s1820_s17  ;;  %p1827_p12 = scmp.lt.u32.totalorder %s1820_s17, %s2543_s4 }
  0x90   : > { %p1823_p3 = pnand %p1821_p1, %p2139_p8 }
  0x92   : > { %p1824_p11 = pneg %p1823_p3 }
  0x94   : > { %p1829_p13 = pnand %p1827_p12, %p1824_p11 }
  0x96   : > { %1832 = shalt.err (!%p1829_p13)
}
  0x97   : > { %s1833_s26 = scalar_lea.vmem %s305_s23, 16  ;;  %s1840_s1 = scalar_lea.vmem %s305_s23, 32 }
  0x98   : > { %p1834_p0 = scmp.ne.s32.totalorder %s305_s23, %s1833_s26  ;;  %p1841_p7 = scmp.lt.s32.totalorder %s305_s23, %s305_s23 }
  0x99   : > { %p1842_p9 = scmp.lt.s32.totalorder %s1840_s1, %s1833_s26 }
  0x9a   : > { %p1836_p2 = pnand %p1834_p0, %p2139_p8 }
  0x9b   : > { %p1843_p10 = por %p1842_p9, %p1841_p7 }
  0x9c   : > { %p1837_p5 = pneg %p1836_p2 }
  0x9e   : > { %p1844_p4 = pnand %p1843_p10, %p1837_p5 }
  0xa0   : > { %1847 = shalt.err (!%p1844_p4)
}
  0xa1   : > { %1545 = dma.hbm_to_vmem [thread:$0]  (!%p2123_p6), %s2543_s4, 16, %s305_s23, [#allocation9]  }
  0xa2   : > { %s1848_s17 = scalar_lea.hbm %s2545_s6, 16 }
  0xa3   : > { %p1849_p1 = scmp.ne.s32.totalorder %s2545_s6, %s1848_s17  ;;  %p1855_p12 = scmp.lt.u32.totalorder %s1848_s17, %s2545_s6 }
  0xa5   : > { %p1851_p3 = pnand %p1849_p1, %p2139_p8 }
  0xa7   : > { %p1852_p11 = pneg %p1851_p3 }
  0xa9   : > { %p1857_p13 = pnand %p1855_p12, %p1852_p11 }
  0xab   : > { %1860 = shalt.err (!%p1857_p13)
}
  0xac   : > { %s1861_s26 = scalar_lea.vmem %s329_s28, 16  ;;  %s1868_s23 = scalar_lea.vmem %s329_s28, 32 }
  0xad   : > { %p1862_p0 = scmp.ne.s32.totalorder %s329_s28, %s1861_s26  ;;  %p1869_p7 = scmp.lt.s32.totalorder %s329_s28, %s329_s28 }
  0xae   : > { %p1870_p9 = scmp.lt.s32.totalorder %s1868_s23, %s1861_s26 }
  0xaf   : > { %p1864_p2 = pnand %p1862_p0, %p2139_p8 }
  0xb0   : > { %p1871_p10 = por %p1870_p9, %p1869_p7 }
  0xb1   : > { %p1865_p5 = pneg %p1864_p2 }
  0xb3   : > { %p1872_p4 = pnand %p1871_p10, %p1865_p5 }
  0xb5   : > { %1875 = shalt.err (!%p1872_p4)
}
  0xb6   : > { %1551 = dma.hbm_to_vmem [thread:$0]  (!%p2123_p6), %s2545_s6, 16, %s329_s28, [#allocation12]  }
  0xb7   : > { %s2029_s25 = smov [#allocation16]   ;;  %s1876_s14 = scalar_lea.hbm %s2547_s8, 16 }
  0xb8   : > { %s352_s29 = sshll.u32 %s2029_s25, 4  ;;  %p1877_p1 = scmp.ne.s32.totalorder %s2547_s8, %s1876_s14  ;;  %s353_s29 = int_to_ptr.vmem [resolvable:$true] %s352_s29 }
  0xb9   : > { %p1883_p12 = scmp.lt.u32.totalorder %s1876_s14, %s2547_s8 }
  0xba   : > { %p1879_p3 = pnand %p1877_p1, %p2139_p8 }
  0xbc   : > { %p1880_p11 = pneg %p1879_p3 }
  0xbe   : > { %p1885_p13 = pnand %p1883_p12, %p1880_p11 }
  0xc0   : > { %1888 = shalt.err (!%p1885_p13)
}
  0xc1   : > { %s1889_s28 = scalar_lea.vmem %s353_s29, 16  ;;  %s1896_s23 = scalar_lea.vmem %s353_s29, 32 }
  0xc2   : > { %p1890_p0 = scmp.ne.s32.totalorder %s353_s29, %s1889_s28  ;;  %p1897_p7 = scmp.lt.s32.totalorder %s353_s29, %s353_s29 }
  0xc3   : > { %p1898_p9 = scmp.lt.s32.totalorder %s1896_s23, %s1889_s28 }
  0xc4   : > { %p1892_p2 = pnand %p1890_p0, %p2139_p8 }
  0xc5   : > { %p1899_p10 = por %p1898_p9, %p1897_p7 }
  0xc6   : > { %p1893_p5 = pneg %p1892_p2 }
  0xc8   : > { %p1900_p4 = pnand %p1899_p10, %p1893_p5 }
  0xca   : > { %1903 = shalt.err (!%p1900_p4)
}
  0xcb   : > { %1557 = dma.hbm_to_vmem [thread:$0]  (!%p2123_p6), %s2547_s8, 16, %s353_s29, [#allocation15]  }
  0xcc   : > { %s1301_s27 = sadd.s32 4294967294, %s2016_s12   ;;  %s2304_s19 = sadd.s32 1, %s2016_s12  }
  0xcd   : > { %s33_s25 = ssub.s32 %s2016_s12, %s2304_s19  ;;  %s36_s13 = sadd.s32 1, %s2012_s11 }
  0xce   : > { %p34_p8 = scmp.eq.s32.totalorder %s33_s25, 0  ;;  %p43_p1 = scmp.ne.s32.totalorder %s2012_s11, %s2008_s10 }
  0xcf   : > { %p44_p3 = scmp.eq.s32.totalorder %s2016_s12, 0  ;;  %p49_p11 = scmp.ne.s32.totalorder %s2008_s10, %s2004_s30 }
  0xd0   : > { %s2315_s17 = scalar_select %p34_p8, %s2012_s11, %s36_s13  }
  0xd1   : > { %p45_p12 = por %p44_p3, %p43_p1  ;;  %p2563_p13 = scmp.eq.s32.totalorder %s2107_s15, 0 }
  0xd2   : > { %p241_p6 = scmp.eq.s32.totalorder %s2107_s15, 1  ;;  %p247_p2 = scmp.eq.s32.totalorder %s1301_s27, 1 }
  0xd3   : > { %p2319_p0 = por %p2563_p13, %p49_p11  ;;  %p1574_p5 = scmp.lt.s32.totalorder %s2016_s12, 2 }
  0xd4   : > { %s363_s29 = sand.u32 1, %s2012_s11   ;;  %p2326_p7 = por %p241_p6, %p43_p1 }
  0xd5   : > { %p2330_p9 = por %p247_p2, %p49_p11  ;;  %s1494_s21 = smul.u32 80, %s363_s29 }
  0xd6   : > { %s2565_s18 = scalar_select %p2326_p7, 1, 0 }
  0xd7   : > { %s2566_s24 = scalar_select %p2330_p9, 1, 0 }
  0xd8   : > { %s1495_s26 = smul.u32 1280, %s2016_s12  ;;  %p2335_p10 = pnand %p1574_p5, %p45_p12 }
  0xd9   : > { %s367_s27 = scalar_lea.vmem [#allocation2], %s1494_s21  ;;  %s2346_s13 = scalar_lea.sflag [#allocation3], %s363_s29 }
  0xda   : > { %s2342_s22 = scalar_lea.hbm %s2539_s0, %s1495_s26  ;;  %s374_s25 = sshll.u32 %s367_s27, 4  ;;  %s2344_s25 = int_to_ptr.vmem [resolvable:$true] %s374_s25 }
  0xdb   : > { %s1904_s9 = scalar_lea.hbm %s2342_s22, 1280  ;;  %p1906_p8 = pneg %p2335_p10 }
  0xdc   : > { %p1905_p4 = scmp.ne.s32.totalorder %s2342_s22, %s1904_s9  ;;  %s1909_s1 = scalar_lea.hbm %s2539_s0, 2560 }
  0xdd   : > { %p1910_p11 = scmp.lt.u32.totalorder %s2342_s22, %s2539_s0  ;;  %p1911_p12 = scmp.lt.u32.totalorder %s1909_s1, %s1904_s9 }
  0xde   : > { %p1907_p1 = pnand %p1906_p8, %p1905_p4  ;;  %p1913_p6 = scmp.lt.u32.totalorder %s1904_s9, %s2342_s22 }
  0xdf   : > { %p1912_p13 = por %p1911_p12, %p1910_p11 }
  0xe0   : > { %p1908_p3 = pneg %p1907_p1 }
  0xe1   : > { %p1914_p2 = por %p1913_p6, %p1912_p13 }
  0xe3   : > { %p1915_p5 = pnand %p1914_p2, %p1908_p3 }
  0xe5   : > { %1918 = shalt.err (!%p1915_p5)
}
  0xe6   : > { %s1919_s29 = scalar_lea.vmem %s2344_s25, 1280  ;;  %s2030_s21 = smov [#allocation2]  }
  0xe7   : > { %p1920_p4 = scmp.ne.s32.totalorder %s2344_s25, %s1919_s29  ;;  %s1924_s27 = sshll.u32 %s2030_s21, 4  ;;  %s1925_s27 = int_to_ptr.vmem [resolvable:$false] %s1924_s27 }
  0xe8   : > { %s1926_s2 = scalar_lea.vmem %s1925_s27, 2560  ;;  %p1927_p7 = scmp.lt.s32.totalorder %s2344_s25, %s1925_s27 }
  0xe9   : > { %p1922_p1 = pnand %p1920_p4, %p1906_p8  ;;  %p1928_p11 = scmp.lt.s32.totalorder %s1926_s2, %s1919_s29 }
  0xeb   : > { %p1923_p9 = pneg %p1922_p1  ;;  %p1929_p12 = por %p1928_p11, %p1927_p7 }
  0xed   : > { %p1930_p13 = pnand %p1929_p12, %p1923_p9 }
  0xef   : > { %1933 = shalt.err (!%p1930_p13)
}
  0xf0   : > { %s2568_s9 = smov 4   ;;  %s2569_s20 = smov 64  }
  0xf1   : > { %1561 = dma.hbm_to_vmem [thread:$0]  (!%p2335_p10), %s2342_s22, 1280, %s2344_s25, %s2346_s13, %s2569_s20, %s2569_s20, %s2568_s9  }
  0xf2   : > { %p2570_p8 = scmp.ne.s32.totalorder %s2558_s16, 0 }
  0xf3   : > { %s2380_s26 = sand.u32 (!%p2570_p8), 1, %s2008_s10  }
  0xf4   : > { %386 = sbr.rel (%p2570_p8) target bundleno = 1079 (0x437), region = 56  ;;  %s389_s1 = scalar_lea.sflag (!%p2570_p8), [#allocation3], %s2380_s26 }
  0xf5   : > { %s1496_s23 = smul.u32 (!%p2570_p8), 80, %s2380_s26 }
  0xf7   : > { %s2384_s29 = scalar_lea.vmem (!%p2570_p8), [#allocation2], %s1496_s23 }
  0xfb   : > { %1979 = dma.done.wait (%p2319_p0), %s389_s1, 1280  }
  0xfc   : > { %1981 = vsyncadd (%p2319_p0), %s389_s1, 4294966016  ;;  %p2571_p7 = scmp.eq.s32.totalorder %s2107_s15, 0 }
  0xfe   : > { %1983 = dma.done.wait (%p2571_p7), [#allocation6], 160   ;;  %p2572_p9 = pmov %p2571_p7 }
  0xff   : > { %p2573_p10 = pmov %p2571_p7 }
 0x100   : > { %1985 = vsyncadd (%p2572_p9), [#allocation6], 4294967136 }
 0x101   : > { %1987 = dma.done.wait (%p2573_p10), [#allocation9], 1040   ;;  %p2574_p3 = pmov %p2571_p7 }
 0x103   : > { %1989 = vsyncadd (%p2574_p3), [#allocation9], 4294966256  ;;  %p2575_p6 = pmov %p2574_p3 }
 0x104   : > { %p2576_p2 = pmov %p2574_p3 }
 0x105   : > { %1991 = dma.done.wait (%p2575_p6), [#allocation12], 1040  }
 0x106   : > { %1993 = vsyncadd (%p2576_p2), [#allocation12], 4294966256  ;;  %p2577_p0 = pmov %p2576_p2 }
 0x108   : > { %1995 = dma.done.wait (%p2577_p0), [#allocation15], 1040   ;;  %p2578_p5 = pmov %p2577_p0 }
 0x109   : > { %v2031_v0 = vmov 0.0   ;;  %vm2032_vm0 = vmmov 0   ;;  %v1632_v1 = vld [vmem:[#allocation8] sm:$0xff]   ;;  %v1633_v2 = vld [vmem:[#allocation8 + $0x8] sm:$0xff]   ;;  %v1634_v3 = vld [vmem:[#allocation8 + $0x10] sm:$0xff]   ;;  %s1322_s16 = sshll.u32 %s2380_s26, 3 }
 0x10a   : > { %1997 = vsyncadd (%p2578_p5), [#allocation15], 4294966256  ;;  %1434 = vmatprep.subr.bf16.mxu0 %v2031_v0  ;;  %1450 = vmatprep.mubr.msk.bf16.mxu0 %vm2032_vm0, %v2031_v0  ;;  %v1635_v4 = vld [vmem:[#allocation8 + $0x18] sm:$0xff]   ;;  %v460_v5 = vld [vmem:[%s2384_s29] sm:$0x3]  ;;  %s458_s14 = scalar_lea.vmem [#allocation17], %s1322_s16 }
 0x10b   : > { %1454 = vmatprep.subr.bf16.mxu1 %v2031_v0  ;;  %1470 = vmatprep.mubr.msk.bf16.mxu1 %vm2032_vm0, %v2031_v0  ;;  %v461_v6 = vld [vmem:[%s2384_s29 + $0x4] sm:$0x3]  ;;  %v462_v7 = vld [vmem:[%s2384_s29 + $0x8] sm:$0x3]  ;;  %v463_v8 = vld [vmem:[%s2384_s29 + $0xc] sm:$0x3]  ;;  %v464_v9 = vunpack.c.l.bf16 %v460_v5 }
 0x10c   : > { %1435 = vmatpush3.bf16.msra.mxu0 %v1632_v1  ;;  %v465_v10 = vunpack.c.l.bf16 %v461_v6  ;;  %v466_v11 = vunpack.c.l.bf16 %v462_v7  ;;  %v1323_v12 = vld [vmem:[#allocation5] ss:$0 sm:$0xff]  ;;  %v1324_v13 = vld [vmem:[%s2384_s29 + $0x14] sm:$0x3]  ;;  %v467_v14 = vunpack.c.l.bf16 %v463_v8  ;;  %v1325_v15 = vld [vmem:[%s2384_s29 + $0x18] sm:$0x3] }
 0x10d   : > { %1436 = vmatprep.subr.bf16.mxu0 %v2031_v0  ;;  %v1326_v16 = vld [vmem:[%s2384_s29 + $0x1c] sm:$0x3]  ;;  %v1327_v17 = vld [vmem:[%s2384_s29 + $0x20] sm:$0x3]  ;;  %v488_v18 = vunpack.c.l.bf16 %v1324_v13  ;;  %v475_v19 = vmul.f32 %v1323_v12, %v464_v9  ;;  %v489_v22 = vunpack.c.l.bf16 %v1325_v15  ;;  %v509_v25 = vld [vmem:[%s2384_s29 + $0x4] sm:$0x7] }
 0x10e   : > { %v476_v20 = vmul.f32 %v1323_v12, %v465_v10  ;;  %v477_v21 = vmul.f32 %v1323_v12, %v466_v11  ;;  %v1328_v23 = vld [vmem:[#allocation5 + $0x1] ss:$0 sm:$0xff]  ;;  %v478_v26 = vmul.f32 %v1323_v12, %v467_v14  ;;  %v490_v27 = vunpack.c.l.bf16 %v1326_v16  ;;  %v510_v30 = vld [vmem:[%s2384_s29 + $0x8] sm:$0x7]  ;;  %v511_v31 = vld [vmem:[%s2384_s29 + $0xc] sm:$0x7] }
 0x10f   : > { %v508_v24 = vld [vmem:[%s2384_s29] sm:$0x7]  ;;  %v491_v28 = vunpack.c.l.bf16 %v1327_v17  ;;  %v500_v29 = vmul.f32 %v1328_v23, %v488_v18  ;;  %v501_v33 = vmul.f32 %v1328_v23, %v489_v22  ;;  %v513_v35 = vunpack.c.l.bf16 %v509_v25  ;;  %v1330_v37 = vld [vmem:[%s2384_s29 + $0x28] sm:$0x3]  ;;  %v1331_v43 = vld [vmem:[%s2384_s29 + $0x2c] sm:$0x3] }
 0x110   : > { %1437 = vmatpush3.bf16.msra.mxu0 %v1633_v2  ;;  %v1329_v32 = vld [vmem:[#allocation5 + $0x2] ss:$0 sm:$0xff]  ;;  %v512_v34 = vunpack.c.l.bf16 %v508_v24  ;;  %v514_v36 = vunpack.c.l.bf16 %v510_v30  ;;  %v1636_v38 = vld [vmem:[#allocation8 + $0x20] sm:$0xff]   ;;  %v502_v39 = vmul.f32 %v1328_v23, %v490_v27  ;;  %v515_v42 = vunpack.c.l.bf16 %v511_v31  ;;  %v1333_v49 = vld [vmem:[%s2384_s29 + $0x34] sm:$0x3]  ;;  %s1152_s28 = sshll.u32 %s458_s14, 4  ;;  %s2490_s28 = int_to_ptr.vmem [resolvable:$true] %s1152_s28 }
 0x111   : > { %1438 = vmatprep.subr.bf16.mxu0 %v2031_v0  ;;  %v503_v40 = vmul.f32 %v1328_v23, %v491_v28  ;;  %v504_v41 = vadd.f32 %v500_v29, %v475_v19  ;;  %v505_v44 = vadd.f32 %v501_v33, %v476_v20  ;;  %v525_v46 = vmul.f32 %v1329_v32, %v513_v35  ;;  %v1332_v48 = vld [vmem:[%s2384_s29 + $0x30] sm:$0x3]  ;;  %v1334_v50 = vld [vmem:[#allocation5 + $0x3] ss:$0 sm:$0xff]  ;;  %v1335_v59 = vld [vmem:[%s2384_s29 + $0x3c] sm:$0x3] }
 0x112   : > { %v524_v45 = vmul.f32 %v1329_v32, %v512_v34  ;;  %v526_v47 = vmul.f32 %v1329_v32, %v514_v36  ;;  %v506_v51 = vadd.f32 %v502_v39, %v477_v21  ;;  %v527_v53 = vmul.f32 %v1329_v32, %v515_v42  ;;  %v1637_v60 = vld [vmem:[#allocation8 + $0x28] sm:$0xff]   ;;  %v1336_v2 = vld [vmem:[%s2384_s29 + $0x40] sm:$0x3]  ;;  %v1339_v9 = vld [vmem:[#allocation5 + $0x4] ss:$0 sm:$0xff]  ;;  %s1401_s22 = sshll.u32 %s2107_s15, 7 }
 0x113   : > { %v507_v52 = vadd.f32 %v503_v40, %v478_v26  ;;  %v549_v54 = vunpack.c.l.bf16 %v1330_v37  ;;  %v533_v56 = vrot.slane %v525_v46, 1  ;;  %v550_v58 = vunpack.c.l.bf16 %v1331_v43  ;;  %v1338_v8 = vld [vmem:[%s2384_s29 + $0x48] sm:$0x3]  ;;  %v1341_v15 = vld [vmem:[%s2384_s29 + $0x2c] sm:$0x7]  ;;  %s2579_s21 = sld [smem:[#allocation26_spill]] }
 0x114   : > { %1439 = vmatpush3.bf16.msra.mxu0 %v1634_v3  ;;  %v532_v55 = vrot.slane %v524_v45, 1  ;;  %v534_v57 = vrot.slane %v526_v47, 1  ;;  %v535_v61 = vrot.slane %v527_v53, 1  ;;  %v551_v62 = vunpack.c.l.bf16 %v1332_v48  ;;  %v1337_v3 = vld [vmem:[%s2384_s29 + $0x44] sm:$0x3]  ;;  %v1638_v22 = vld [vmem:[#allocation8 + $0x30] sm:$0xff]  }
 0x115   : > { %1440 = vmatprep.subr.bf16.mxu0 %v2031_v0  ;;  %v552_v63 = vunpack.c.l.bf16 %v1333_v49  ;;  %v561_v1 = vmul.f32 %v1334_v50, %v549_v54  ;;  %v541_v5 = vadd.f32 %v533_v56, %v505_v44  ;;  %v562_v7 = vmul.f32 %v1334_v50, %v550_v58  ;;  %v1340_v14 = vld [vmem:[%s2384_s29 + $0x28] sm:$0x7]  ;;  %v1342_v20 = vld [vmem:[%s2384_s29 + $0x30] sm:$0x7]  ;;  %v1343_v21 = vld [vmem:[%s2384_s29 + $0x34] sm:$0x7] }
 0x116   : > { %v542_v6 = vadd.f32 %v534_v57, %v506_v51  ;;  %v543_v10 = vadd.f32 %v535_v61, %v507_v52  ;;  %v563_v11 = vmul.f32 %v1334_v50, %v551_v62  ;;  %v574_v13 = vunpack.c.l.bf16 %v1335_v59  ;;  %v1344_v27 = vld [vmem:[#allocation5 + $0x5] ss:$0 sm:$0xff]  ;;  %v1346_v33 = vld [vmem:[%s2384_s29 + $0x8] sm:$0x3]  ;;  %v1347_v34 = vld [vmem:[%s2384_s29 + $0xc] sm:$0x3] }
 0x117   : > { %v564_v12 = vmul.f32 %v1334_v50, %v552_v63  ;;  %v566_v17 = vadd.f32 %v562_v7, %v541_v5  ;;  %v575_v18 = vunpack.c.l.bf16 %v1336_v2  ;;  %v576_v19 = vunpack.c.l.bf16 %v1337_v3  ;;  %v1345_v32 = vld [vmem:[%s2384_s29 + $0x4] sm:$0x3]  ;;  %v1348_v40 = vld [vmem:[%s2384_s29 + $0x10] sm:$0x3]  ;;  %v1350_v46 = vld [vmem:[%s2384_s29 + $0x18] sm:$0x3] }
 0x118   : > { %1441 = vmatpush3.bf16.msra.mxu0 %v1635_v4  ;;  %v540_v4 = vadd.f32 %v532_v55, %v504_v41  ;;  %v567_v23 = vadd.f32 %v563_v11, %v542_v6  ;;  %v577_v25 = vunpack.c.l.bf16 %v1338_v8  ;;  %v586_v26 = vmul.f32 %v1339_v9, %v574_v13  ;;  %v1639_v35 = vld [vmem:[#allocation8 + $0x38] sm:$0xff]   ;;  %v1351_v51 = vld [vmem:[%s2384_s29 + $0x1c] sm:$0x3]  ;;  %v1352_v52 = vld [vmem:[%s2384_s29 + $0x20] sm:$0x3]  ;;  %s1139_s2 = scalar_lea.sflag [#allocation4], %s2380_s26 }
 0x119   : > { %1442 = vmatprep.subr.bf16.mxu0 %v2031_v0  ;;  %v568_v24 = vadd.f32 %v564_v12, %v543_v10  ;;  %v587_v28 = vmul.f32 %v1339_v9, %v575_v18  ;;  %v588_v29 = vmul.f32 %v1339_v9, %v576_v19  ;;  %v598_v30 = vunpack.c.l.bf16 %v1340_v14  ;;  %v1349_v41 = vld [vmem:[#allocation5 + $0x6] ss:$0 sm:$0xff]  ;;  %v1353_v57 = vld [vmem:[%s2384_s29 + $0x24] sm:$0x3]  ;;  %v1354_v58 = vld [vmem:[#allocation5 + $0x7] ss:$0 sm:$0xff]  ;;  %s2495_s27 = scalar_lea.hbm %s2579_s21, %s1401_s22 }
 0x11a   : > { %v565_v16 = vadd.f32 %v561_v1, %v540_v4  ;;  %v599_v31 = vunpack.c.l.bf16 %v1341_v15  ;;  %v589_v36 = vmul.f32 %v1339_v9, %v577_v25  ;;  %v601_v39 = vunpack.c.l.bf16 %v1343_v21  ;;  %v1355_v63 = vld [vmem:[%s2384_s29 + $0x4] sm:$0x7]  ;;  %v1356_v1 = vld [vmem:[%s2384_s29 + $0x8] sm:$0x7]  ;;  %v1357_v6 = vld [vmem:[%s2384_s29 + $0xc] sm:$0x7] }
 0x11b   : > { %v591_v42 = vadd.f32 %v587_v28, %v566_v17  ;;  %v592_v43 = vadd.f32 %v588_v29, %v567_v23  ;;  %v610_v44 = vmul.f32 %v1344_v27, %v598_v30  ;;  %v635_v50 = vunpack.c.l.bf16 %v1345_v32  ;;  %v1358_v7 = vld [vmem:[%s2384_s29 + $0x10] sm:$0x7]  ;;  %v1359_v12 = vld [vmem:[#allocation5 + $0x8] ss:$0 sm:$0xff]  ;;  %s1934_s9 = scalar_lea.vmem %s2490_s28, 128  ;;  %p2580_p1 = scmp.ne.s32.totalorder %s2565_s18, 0 }
 0x11c   : > { %1443 = vmatpush3.bf16.msra.mxu0 %v1636_v38  ;;  %v590_v37 = vadd.f32 %v586_v26, %v565_v16  ;;  %v600_v38 = vunpack.c.l.bf16 %v1342_v20  ;;  %v611_v45 = vmul.f32 %v1344_v27, %v599_v31  ;;  %v593_v47 = vadd.f32 %v589_v36, %v568_v24  ;;  %p1935_p4 = scmp.ne.s32.totalorder %s2490_s28, %s1934_s9  ;;  %s2033_s15 = smov [#allocation17]  }
 0x11d   : > { %1444 = vmatprep.subr.bf16.mxu0 %v2031_v0  ;;  %v613_v49 = vmul.f32 %v1344_v27, %v601_v39  ;;  %v618_v53 = vrot.slane %v610_v44, 1  ;;  %v636_v55 = vunpack.c.l.bf16 %v1346_v33  ;;  %v637_v56 = vunpack.c.l.bf16 %v1347_v34  ;;  %s1938_s20 = sshll.u32 %s2033_s15, 4  ;;  %s1939_s20 = int_to_ptr.vmem [resolvable:$false] %s1938_s20 }
 0x11e   : > { %v612_v48 = vmul.f32 %v1344_v27, %v600_v38  ;;  %v619_v54 = vrot.slane %v611_v45, 1  ;;  %v638_v61 = vunpack.c.l.bf16 %v1348_v40  ;;  %v647_v62 = vmul.f32 %v1349_v41, %v635_v50  ;;  %v1360_v40 = vld [vmem:[#allocation7] ss:$0 sm:$0xff]  ;;  %p1936_p11 = pnand %p1935_p4, %p2580_p1  ;;  %s1940_s23 = scalar_lea.vmem %s1939_s20, 256 }
 0x11f   : > { %v626_v2 = vadd.f32 %v618_v53, %v590_v37  ;;  %v648_v4 = vmul.f32 %v1349_v41, %v636_v55  ;;  %v649_v5 = vmul.f32 %v1349_v41, %v637_v56  ;;  %v660_v11 = vunpack.c.l.bf16 %v1350_v46  ;;  %p1941_p13 = scmp.lt.s32.totalorder %s2490_s28, %s1939_s20  ;;  %p1942_p8 = scmp.lt.s32.totalorder %s1940_s23, %s1934_s9 }
 0x120   : > { %1445 = vmatpush3.bf16.msra.mxu0 %v1637_v60  ;;  %v620_v59 = vrot.slane %v612_v48, 1  ;;  %v621_v60 = vrot.slane %v613_v49, 1  ;;  %v627_v3 = vadd.f32 %v619_v54, %v591_v42  ;;  %v650_v10 = vmul.f32 %v1349_v41, %v638_v61  ;;  %p1937_p12 = pneg %p1936_p11 }
 0x121   : > { %1446 = vmatprep.subr.bf16.mxu0 %v2031_v0  ;;  %v651_v13 = vadd.f32 %v647_v62, %v626_v2  ;;  %v661_v15 = vunpack.c.l.bf16 %v1351_v51  ;;  %v662_v16 = vunpack.c.l.bf16 %v1352_v52  ;;  %v663_v19 = vunpack.c.l.bf16 %v1353_v57  ;;  %p1943_p7 = por %p1942_p8, %p1941_p13 }
 0x122   : > { %v628_v8 = vadd.f32 %v620_v59, %v592_v43  ;;  %v629_v9 = vadd.f32 %v621_v60, %v593_v47  ;;  %v652_v14 = vadd.f32 %v648_v4, %v627_v3  ;;  %v672_v20 = vmul.f32 %v1354_v58, %v660_v11 }
 0x123   : > { %v673_v21 = vmul.f32 %v1354_v58, %v661_v15  ;;  %v684_v23 = vunpack.c.l.bf16 %v1355_v63  ;;  %v685_v24 = vunpack.c.l.bf16 %v1356_v1  ;;  %v675_v25 = vmul.f32 %v1354_v58, %v663_v19  ;;  %v1642_v19 = vld [vmem:[#allocation11 + $0x10] sm:$0xff]   ;;  %p1944_p9 = pnand %p1943_p7, %p1937_p12 }
 0x124   : > { %1447 = vmatpush3.bf16.msra.mxu0 %v1638_v22  ;;  %v653_v17 = vadd.f32 %v649_v5, %v628_v8  ;;  %v654_v18 = vadd.f32 %v650_v10, %v629_v9  ;;  %v674_v22 = vmul.f32 %v1354_v58, %v662_v16  ;;  %v686_v26 = vunpack.c.l.bf16 %v1357_v6 }
 0x125   : > { %1448 = vmatprep.subr.bf16.mxu0 %v2031_v0  ;;  %v687_v27 = vunpack.c.l.bf16 %v1358_v7  ;;  %v676_v28 = vadd.f32 %v672_v20, %v651_v13  ;;  %v677_v29 = vadd.f32 %v673_v21, %v652_v14  ;;  %v696_v30 = vmul.f32 %v1359_v12, %v684_v23  ;;  %v1643_v20 = vld [vmem:[#allocation11 + $0x18] sm:$0xff]   ;;  %v1644_v21 = vld [vmem:[#allocation11 + $0x20] sm:$0xff]   ;;  %v1646_v23 = vld [vmem:[#allocation11 + $0x30] sm:$0xff]  }
 0x126   : > { %v697_v31 = vmul.f32 %v1359_v12, %v685_v24  ;;  %v678_v32 = vadd.f32 %v674_v22, %v653_v17  ;;  %v679_v33 = vadd.f32 %v675_v25, %v654_v18  ;;  %v698_v34 = vmul.f32 %v1359_v12, %v686_v26  ;;  %v1640_v17 = vld [vmem:[#allocation11] sm:$0xff]   ;;  %v1641_v18 = vld [vmem:[#allocation11 + $0x8] sm:$0xff]   ;;  %v1647_v24 = vld [vmem:[#allocation11 + $0x38] sm:$0xff]  }
 0x127   : > { %v704_v36 = vrot.slane %v696_v30, 1  ;;  %1455 = vmatpush3.bf16.msra.mxu1 %v1640_v17  ;;  %v1645_v22 = vld [vmem:[#allocation11 + $0x28] sm:$0xff]   ;;  %v788_v25 = vld [vmem:[#allocation10] sm:$0x1] }
 0x128   : > { %1449 = vmatpush3.bf16.msra.mxu0 %v1639_v35  ;;  %v699_v35 = vmul.f32 %v1359_v12, %v687_v27  ;;  %v705_v37 = vrot.slane %v697_v31, 1  ;;  %v706_v38 = vrot.slane %v698_v34, 1  ;;  %1456 = vmatprep.subr.bf16.mxu1 %v2031_v0 }
 0x129   : > { %1474 = vmatprep.subr.bf16.mxu0 %v2031_v0  ;;  %v712_v41 = vadd.f32 %v704_v36, %v676_v28 }
 0x12a   : > { %v707_v39 = vrot.slane %v699_v35, 1  ;;  %v713_v42 = vadd.f32 %v705_v37, %v677_v29  ;;  %v714_v43 = vadd.f32 %v706_v38, %v678_v32  ;;  %v1648_v37 = vld [vmem:[#allocation14] sm:$0xff]   ;;  %v1649_v38 = vld [vmem:[#allocation14 + $0x8] sm:$0xff]  }
 0x12b   : > { %v723_v45 = vadd.f32 %v1360_v40, %v712_v41  ;;  %1457 = vmatpush3.bf16.msra.mxu1 %v1641_v18  ;;  %v1652_v41 = vld [vmem:[#allocation14 + $0x20] sm:$0xff]  }
 0x12c   : > { %v715_v44 = vadd.f32 %v707_v39, %v679_v33  ;;  %v724_v46 = vadd.f32 %v1360_v40, %v713_v42  ;;  %v725_v47 = vadd.f32 %v1360_v40, %v714_v43  ;;  %1458 = vmatprep.subr.bf16.mxu1 %v2031_v0  ;;  %v1650_v39 = vld [vmem:[#allocation14 + $0x10] sm:$0xff]   ;;  %v1653_v42 = vld [vmem:[#allocation14 + $0x28] sm:$0xff]  }
 0x12d   : > { %v1361_v49 = vmul.f32 -1.442695, %v723_v45  ;;  %v1654_v43 = vld [vmem:[#allocation14 + $0x30] sm:$0xff]  }
 0x12e   : > { %v726_v48 = vadd.f32 %v1360_v40, %v715_v44  ;;  %v1362_v50 = vmul.f32 -1.442695, %v724_v46  ;;  %v1363_v51 = vmul.f32 -1.442695, %v725_v47  ;;  %v1651_v40 = vld [vmem:[#allocation14 + $0x18] sm:$0xff]  }
 0x12f   : > { %1656 = vpow2.f32 %v1361_v49  ;;  %1459 = vmatpush3.bf16.msra.mxu1 %v1642_v19  ;;  %v1655_v44 = vld [vmem:[#allocation14 + $0x38] sm:$0xff]  }
 0x130   : > { %v1364_v52 = vmul.f32 -1.442695, %v726_v48  ;;  %1658 = vpow2.f32 %v1362_v50  ;;  %1460 = vmatprep.subr.bf16.mxu1 %v2031_v0 }
 0x131   : > { %1660 = vpow2.f32 %v1363_v51 }
 0x132   : > { %1662 = vpow2.f32 %v1364_v52 }
 0x133   : > { %1461 = vmatpush3.bf16.msra.mxu1 %v1643_v20 }
 0x134   : > { %1462 = vmatprep.subr.bf16.mxu1 %v2031_v0 }
 0x137   : > { %1463 = vmatpush3.bf16.msra.mxu1 %v1644_v21 }
 0x138   : > { %1464 = vmatprep.subr.bf16.mxu1 %v2031_v0 }
 0x139   : > { %v1657_v53 = vpop.eup %1656 }
 0x13a   : > { %v1659_v54 = vpop.eup %1658  ;;  %v739_v55 = vadd.f32 1.0, %v1657_v53 }
 0x13b   : > { %v1661_v56 = vpop.eup %1660  ;;  %v740_v57 = vadd.f32 1.0, %v1659_v54  ;;  %1465 = vmatpush3.bf16.msra.mxu1 %v1645_v22  ;;  %v996_v54 = vlaneseq }
 0x13c   : > { %v1663_v58 = vpop.eup %1662  ;;  %v741_v59 = vadd.f32 1.0, %v1661_v56  ;;  %1664 = vrcp.f32 %v739_v55  ;;  %1466 = vmatprep.subr.bf16.mxu1 %v2031_v0 }
 0x13d   : > { %v742_v60 = vadd.f32 1.0, %v1663_v58  ;;  %1666 = vrcp.f32 %v740_v57  ;;  %v997_v55 = vshrl.u32 %v996_v54, 7 }
 0x13e   : > { %1668 = vrcp.f32 %v741_v59 }
 0x13f   : > { %1670 = vrcp.f32 %v742_v60  ;;  %1467 = vmatpush3.bf16.msra.mxu1 %v1646_v23  ;;  %v998_v56 = vsub.s32 0, %v997_v55 }
 0x140   : > { %1468 = vmatprep.subr.bf16.mxu1 %v2031_v0 }
 0x143   : > { %1469 = vmatpush3.bf16.msra.mxu1 %v1647_v24 }
 0x146   : > { %v1665_v61 = vpop.eup %1664 }
 0x147   : > { %v1667_v62 = vpop.eup %1666  ;;  %v2456_v63 = vmul.f32 %v1665_v61, %v723_v45  ;;  %v901_v45 = vld [vmem:[#allocation13] sm:$0x1] }
 0x148   : > { %v1669_v1 = vpop.eup %1668  ;;  %v2458_v2 = vmul.f32 %v1667_v62, %v724_v46 }
 0x149   : > { %v1671_v3 = vpop.eup %1670  ;;  %v2460_v4 = vmul.f32 %v1669_v1, %v725_v47 }
 0x14a   : > { %v2462_v5 = vmul.f32 %v1671_v3, %v726_v48  ;;  %v759_v6 = vcombine.low %v2456_v63, %v2458_v2 }
 0x14c   : > { %v760_v7 = vcombine.low %v2460_v4, %v2462_v5 }
 0x14e   : > { %v763_v8 = vadd.f32 %v760_v7, %v759_v6  ;;  %v1383_v7 = vld [vmem:[#allocation16] ss:$0 sm:$0xff] }
 0x150   : > { %v764_v9 = vrot.slane %v763_v8, 4 }
 0x152   : > { %v765_v10 = vadd.f32 %v764_v9, %v763_v8 }
 0x154   : > { %v766_v11 = vrot.slane %v765_v10, 2 }
 0x156   : > { %v767_v12 = vadd.f32 %v766_v11, %v765_v10 }
 0x158   : > { %v768_v13 = vrot.slane %v767_v12, 1 }
 0x15a   : > { %v769_v14 = vadd.f32 %v768_v13, %v767_v12 }
 0x15c   : > { %v770_v15 = vmul.f32 0.0625, %v769_v14 }
 0x15e   : > { %v771_v16 = vpack.c.bf16 %v770_v15, %v770_v15 }
 0x160   : > { %1451 = vmatmul.mubr.bf16.vlgmr.msra.gmra.mrb[0].mxu0 %v771_v16 }
 0x161   : > { %1490 = vmatprep.mubr.msk.bf16.mxu0 %vm2032_vm0, %v2031_v0  ;;  %1475 = vmatpush3.bf16.msra.mxu0 %v1648_v37 }
 0x162   : > { %1476 = vmatprep.subr.bf16.mxu0 %v2031_v0 }
 0x165   : > { %1477 = vmatpush3.bf16.msra.mxu0 %v1649_v38 }
 0x166   : > { %1478 = vmatprep.subr.bf16.mxu0 %v2031_v0 }
 0x169   : > { %1479 = vmatpush3.bf16.msra.mxu0 %v1650_v39 }
 0x16a   : > { %1480 = vmatprep.subr.bf16.mxu0 %v2031_v0 }
 0x16d   : > { %1481 = vmatpush3.bf16.msra.mxu0 %v1651_v40 }
 0x16e   : > { %1482 = vmatprep.subr.bf16.mxu0 %v2031_v0 }
 0x171   : > { %1483 = vmatpush3.bf16.msra.mxu0 %v1652_v41 }
 0x172   : > { %1484 = vmatprep.subr.bf16.mxu0 %v2031_v0 }
 0x175   : > { %1485 = vmatpush3.bf16.msra.mxu0 %v1653_v42 }
 0x176   : > { %1486 = vmatprep.subr.bf16.mxu0 %v2031_v0 }
 0x179   : > { %1487 = vmatpush3.bf16.msra.mxu0 %v1654_v43 }
 0x17a   : > { %1488 = vmatprep.subr.bf16.mxu0 %v2031_v0 }
 0x17d   : > { %1489 = vmatpush3.bf16.msra.mxu0 %v1655_v44 }
 0x233   : > { %v871_v26 = vpop.f32.mrb[0].mxu0 }
 0x234   : > { %v872_v27 = vadd.f32 %v871_v26, %v788_v25  ;;  %v1452_v28 = vpop.f32.mrb[1].mxu0 }
 0x235   : > { %v874_v29 = vpop.f32.mrb[2].mxu0 }
 0x236   : > { %v1373_v30 = vmul.f32 -1.442695, %v872_v27  ;;  %v1453_v31 = vpop.f32.mrb[3].mxu0 }
 0x238   : > { %1672 = vpow2.f32 %v1373_v30 }
 0x242   : > { %v1673_v32 = vpop.eup %1672 }
 0x243   : > { %v880_v33 = vadd.f32 1.0, %v1673_v32 }
 0x245   : > { %1674 = vrcp.f32 %v880_v33 }
 0x24f   : > { %v1675_v34 = vpop.eup %1674 }
 0x250   : > { %v883_v35 = vmul.f32 %v1675_v34, %v872_v27 }
 0x252   : > { %v884_v36 = vpack.c.bf16 %v883_v35, %v883_v35 }
 0x254   : > { %1471 = vmatmul.mubr.bf16.vlgmr.msra.gmra.mrb[0].mxu1 %v884_v36 }
 0x327   : > { %v984_v46 = vpop.f32.mrb[0].mxu1 }
 0x328   : > { %v985_v47 = vadd.f32 %v984_v46, %v901_v45  ;;  %v1472_v48 = vpop.f32.mrb[1].mxu1 }
 0x329   : > { %v987_v49 = vpop.f32.mrb[2].mxu1 }
 0x32a   : > { %v1382_v50 = vmul.f32 -1.442695, %v985_v47  ;;  %v1473_v51 = vpop.f32.mrb[3].mxu1 }
 0x32c   : > { %1676 = vpow2.f32 %v1382_v50 }
 0x336   : > { %v1677_v52 = vpop.eup %1676 }
 0x337   : > { %v993_v53 = vadd.f32 1.0, %v1677_v52 }
 0x339   : > { %1678 = vrcp.f32 %v993_v53 }
 0x343   : > { %v1679_v57 = vpop.eup %1678 }
 0x344   : > { %v999_v58 = vrot.slane %v1679_v57, %v998_v56 }
 0x346   : > { %v1001_v0 = vcombine.high %v999_v58, %v999_v58  ;;  %v1003_v59 = vmul.f32 %v999_v58, %v2456_v63  ;;  %v1005_v61 = vmul.f32 %v999_v58, %v2460_v4 }
 0x348   : > { %v1004_v60 = vmul.f32 %v1001_v0, %v2458_v2  ;;  %v1006_v62 = vmul.f32 %v1001_v0, %v2462_v5 }
 0x34a   : > { %v1011_v1 = vcombine.low %v1003_v59, %v1004_v60  ;;  %v1012_v3 = vcombine.low %v1005_v61, %v1006_v62 }
 0x34c   : > { %v1015_v6 = vpack.c.bf16 %v1012_v3, %v1011_v1 }
 0x34e   : > { %1491 = vmatmul.mubr.bf16.vlgmr.msra.gmra.mrb[4].mxu0 %v1015_v6 }
 0x421   : > { %v1121_v8 = vpop.f32.mrb[4].mxu0 }
 0x422   : > { %v1492_v9 = vpop.f32.mrb[5].mxu0  ;;  %v1122_v10 = vadd.f32 %v1383_v7, %v1121_v8 }
 0x423   : > { %v1124_v63 = vpop.f32.mrb[6].mxu0 }
 0x424   : > { %v1125_v2 = vadd.f32 %v1383_v7, %v1124_v63  ;;  %v1493_v4 = vpop.f32.mrb[7].mxu0 }
 0x426   : > { %v1405_v5 = vpack.c.bf16 %v1125_v2, %v1122_v10 }
 0x428   : > { %1406 = vst [vmem:[%s458_s14] sm:$0xff] %v1405_v5  }
 0x429   : > { %1947 = shalt.err (!%p1944_p9)
}
 0x42a   : > { %s1948_s1 = scalar_lea.hbm %s2495_s27, 128  ;;  %s1952_s14 = scalar_lea.hbm %s2579_s21, 256 }
 0x42b   : > { %p1949_p10 = scmp.ne.s32.totalorder %s2495_s27, %s1948_s1  ;;  %p1953_p2 = scmp.lt.u32.totalorder %s2495_s27, %s2579_s21 }
 0x42c   : > { %p1954_p0 = scmp.lt.u32.totalorder %s1952_s14, %s1948_s1  ;;  %p1956_p4 = scmp.lt.u32.totalorder %s1948_s1, %s2495_s27 }
 0x42d   : > { %p1950_p3 = pnand %p1949_p10, %p2580_p1 }
 0x42e   : > { %p1955_p5 = por %p1954_p0, %p1953_p2 }
 0x42f   : > { %p1951_p6 = pneg %p1950_p3 }
 0x430   : > { %p1957_p11 = por %p1956_p4, %p1955_p5 }
 0x432   : > { %p1958_p12 = pnand %p1957_p11, %p1951_p6 }
 0x434   : > { %1961 = shalt.err (!%p1958_p12)
}
 0x435   : > { %s2034_s13 = smov 64   ;;  %s2035_s9 = smov 4  }
 0x436   : > { %1531 = dma.vmem_to_hbm [thread:$0]  (%p2580_p1), %s2490_s28, 128, %s2495_s27, %s1139_s2, %s2034_s13, %s2034_s13, %s2035_s9  }
 0x437 PF: > { %s1167_s15 = sand.u32 1, %s2004_s30   ;;  %p2581_p13 = scmp.ne.s32.totalorder %s2566_s24, 0 }
 0x438   : > { %p2582_p8 = scmp.ge.s32.totalorder %s2016_s12, 2  ;;  %s1168_s20 = scalar_lea.sflag [#allocation4], %s1167_s15 }
 0x43a   : > { %p1563_p7 = pnand %p2582_p8, %p2581_p13 }
 0x43c   : > { %1999 = dma.done.wait (!%p1563_p7), %s1168_s20, 128  }
 0x43d   : > { %2001 = vsyncadd (!%p1563_p7), %s1168_s20, 4294967168  ;;  %p26_p9 = scmp.ge.s32.totalorder %s2304_s19, 4   ;;  %s2583_s30 = smov %s2008_s10 }
 0x43e   : > { %s2584_s10 = smov %s2012_s11  ;;  %s2585_s11 = smov %s2315_s17 }
 0x43f   : > { %s2586_s12 = smov %s2304_s19  ;;  %28 = sbr.rel (!%p26_p9) target bundleno = 13 (0xd), region = 146 }
 0x446   :  { %1173 = vsyncpa [#allocation3], 1 }
 0x447   :  { %1175 = vsyncpa [#allocation3 + $0x1], 1 }
 0x448   :  { %1176 = vsyncpa [#allocation6], 1 }
 0x449   :  { %1177 = vsyncpa [#allocation9], 1 }
 0x44a   :  { %1178 = vsyncpa [#allocation12], 1 }
 0x44b   :  { %1179 = vsyncpa [#allocation15], 1 }
 0x44c   :  { %1180 = vsyncpa [#allocation4], 1 }
 0x44d   :  { %1182 = vsyncpa [#allocation4 + $0x1], 1 }

</bundles_post_ra>
